<compile_context>
chip_gen: v5e
topology: v5e:2x2
jax: 0.10.0
libtpu: 0.0.40
codegen_flags: <defaults>
</compile_context>

<pallas_src>
import math
import functools

import jax
import jax.numpy as jnp
from jax import lax
from jax.experimental import pallas as pl
from jax.experimental.pallas import tpu as pltpu


def _round_up(x, m):
    return (x + m - 1) // m * m


def _value_proj_kernel(num_heads, y_ref, w_ref, v_ref):
    """v_ref[h] = source_aug_tile @ wv3[h]  (outer-Wv ∘ attention-Wv, biases folded)."""
    y = y_ref[...]                                             # [TL, Cp] bf16
    for h in range(num_heads):
        v_ref[h] = jnp.dot(y, w_ref[h],
                           preferred_element_type=jnp.float32).astype(v_ref.dtype)


def _attention_kernel(num_heads, x_ref, y_ref, v_ref, a_ref, o_ref, t_sc):
    """Grid (N tiles, L tiles); L is the reduction axis (last, 'arbitrary').

    o_ref block [H, TN, d_out] stays resident across L and is the f32 accumulator.
    t_sc caches x_aug @ A_h for the current N tile (computed at the first L step only).
    """
    j = pl.program_id(1)

    @pl.when(j == 0)
    def _init():
        x = x_ref[...]                                         # [TN, Cp] bf16
        for h in range(num_heads):
            t_sc[h] = jnp.dot(x, a_ref[h],
                              preferred_element_type=jnp.float32).astype(t_sc.dtype)
        o_ref[...] = jnp.zeros_like(o_ref)

    y = y_ref[...]                                             # [TL, Cp] bf16

    # Per-head scores s_h = (x_aug A_h) y_aug^T  -> [TN, TL] f32, contraction K = Cp.
    scores = []
    for h in range(num_heads):
        scores.append(lax.dot_general(
            t_sc[h], y, (((1,), (1,)), ((), ())),
            preferred_element_type=jnp.float32))

    # Softmax over the HEAD axis (as in the PyTorch module), in f32.
    m = scores[0]
    for h in range(1, num_heads):
        m = jnp.maximum(m, scores[h])
    probs = [jnp.exp(s - m) for s in scores]
    denom = probs[0]
    for h in range(1, num_heads):
        denom = denom + probs[h]
    inv_denom = pl.reciprocal(denom, approx=True)

    # Accumulate out[h] += softmax_h @ v_h   (K = TL on the MXU; leading-dim head index).
    for h in range(num_heads):
        w_h = (probs[h] * inv_denom).astype(v_ref.dtype)       # [TN, TL] bf16
        o_ref[h] = o_ref[h] + jnp.dot(w_h, v_ref[h],
                                      preferred_element_type=jnp.float32)


@functools.partial(jax.jit, static_argnames=("num_heads", "tile_n", "tile_l"))
def trans_conv_layer_gat(query_input, source_input, params, num_heads,
                         tile_n=128, tile_l=128):
    """Returns attention output [N, num_heads, out_channels] (float32)."""
    n, c_in = query_input.shape
    l = source_input.shape[0]
    dk = params["wq_t"].shape[1] // num_heads
    d_out = params["wva_t"].shape[1] // num_heads

    tn = min(tile_n, n)
    tl = min(tile_l, l)
    assert n % tn == 0 and l % tl == 0, "N and L must be multiples of the tile sizes"
    cp = _round_up(c_in + 1, 8)                 # augmented ("ones") feature width

    f32 = jnp.float32
    bf16 = jnp.bfloat16
    scale = 1.0 / math.sqrt(float(dk))

    # ---------------- host-side folding (f32), then cast to bf16 ----------------
    wq3 = params["wq_t"].astype(f32).reshape(c_in, num_heads, dk).transpose(1, 0, 2)
    wk3 = params["wk_t"].astype(f32).reshape(c_in, num_heads, dk).transpose(1, 0, 2)
    bq2 = params["bq"].astype(f32).reshape(num_heads, dk)
    bk2 = params["bk"].astype(f32).reshape(num_heads, dk)

    a = scale * jnp.einsum("hcd,hed->hce", wq3, wk3)        # [H, C_in, C_in]
    u = scale * jnp.einsum("hcd,hd->hc", wq3, bk2)          # query-side bias term
    r = scale * jnp.einsum("hcd,hd->hc", wk3, bq2)          # source-side bias term
    c0 = scale * jnp.einsum("hd,hd->h", bq2, bk2)           # constant term
    a3 = jnp.zeros((num_heads, cp, cp), f32)
    a3 = a3.at[:, :c_in, :c_in].set(a)
    a3 = a3.at[:, :c_in, c_in].set(u)
    a3 = a3.at[:, c_in, :c_in].set(r)
    a3 = a3.at[:, c_in, c_in].set(c0)
    a3 = a3.astype(bf16)

    # Outer Wv composed with attention Wv; both biases folded via the augmented row.
    wvf = params["wvo_t"].astype(f32) @ params["wva_t"].astype(f32)        # [C_in, H*d_out]
    bvf = params["bvo"].astype(f32) @ params["wva_t"].astype(f32) + params["bva"].astype(f32)
    wv3 = jnp.zeros((num_heads, cp, d_out), f32)
    wv3 = wv3.at[:, :c_in, :].set(wvf.reshape(c_in, num_heads, d_out).transpose(1, 0, 2))
    wv3 = wv3.at[:, c_in, :].set(bvf.reshape(num_heads, d_out))
    wv3 = wv3.astype(bf16)

    def augment(x):
        xa = jnp.zeros((x.shape[0], cp), f32)
        xa = xa.at[:, :c_in].set(x.astype(f32))
        xa = xa.at[:, c_in].set(1.0)
        return xa.astype(bf16)

    x_aug = augment(query_input)                 # [N, Cp] bf16
    y_aug = augment(source_input)                # [L, Cp] bf16

    vmem_bytes = 64 * 1024 * 1024                # explicit; <= v7x physical VMEM

    # -------- kernel 1: per-head value projection, computed once over L ---------
    v3 = pl.pallas_call(
        functools.partial(_value_proj_kernel, num_heads),
        out_shape=jax.ShapeDtypeStruct((num_heads, l, d_out), bf16),
        grid=(l // tl,),
        in_specs=[pl.BlockSpec((tl, cp), lambda j: (j, 0)),
                  pl.BlockSpec((num_heads, cp, d_out), lambda j: (0, 0, 0))],
        out_specs=pl.BlockSpec((num_heads, tl, d_out), lambda j: (0, j, 0)),
        compiler_params=pltpu.CompilerParams(
            dimension_semantics=("parallel",),
            vmem_limit_bytes=vmem_bytes),
    )(y_aug, wv3)

    # -------- kernel 2: scores + head-softmax + output, accumulated over L ------
    out3 = pl.pallas_call(
        functools.partial(_attention_kernel, num_heads),
        out_shape=jax.ShapeDtypeStruct((num_heads, n, d_out), jnp.float32),
        grid=(n // tn, l // tl),
        in_specs=[pl.BlockSpec((tn, cp), lambda i, j: (i, 0)),
                  pl.BlockSpec((tl, cp), lambda i, j: (j, 0)),
                  pl.BlockSpec((num_heads, tl, d_out), lambda i, j: (0, j, 0)),
                  pl.BlockSpec((num_heads, cp, cp), lambda i, j: (0, 0, 0))],
        out_specs=pl.BlockSpec((num_heads, tn, d_out), lambda i, j: (0, i, 0)),
        scratch_shapes=[pltpu.VMEM((num_heads, tn, cp), bf16)],
        compiler_params=pltpu.CompilerParams(
            dimension_semantics=("parallel", "arbitrary"),
            vmem_limit_bytes=vmem_bytes),
    )(x_aug, y_aug, v3, a3)

    # Wrapper-side layout plumbing only: [H, N, d_out] -> [N, H, d_out].
    return jnp.transpose(out3, (1, 0, 2))


def _linear_init(key, fan_in, fan_out):
    """Deterministic, PyTorch-Linear-like uniform init: (W^T [in,out], b [out])."""
    kw, kb = jax.random.split(key)
    bound = 1.0 / math.sqrt(fan_in)
    w_t = jax.random.uniform(kw, (fan_in, fan_out), jnp.float32, -bound, bound)
    b = jax.random.uniform(kb, (fan_out,), jnp.float32, -bound, bound)
    return w_t, b


def make_params(key, in_channels, out_channels, num_heads):
    dk = in_channels // num_heads
    keys = jax.random.split(key, 4)
    wvo_t, bvo = _linear_init(keys[0], in_channels, out_channels)       # outer Wv
    wq_t, bq = _linear_init(keys[1], in_channels, num_heads * dk)       # attention Wq
    wk_t, bk = _linear_init(keys[2], in_channels, num_heads * dk)       # attention Wk
    # attention Wv consumes `value` (dim out_channels); the PyTorch module is only
    # shape-consistent when out_channels == in_channels (used in the demo below).
    wva_t, bva = _linear_init(keys[3], out_channels, num_heads * out_channels)
    return dict(wvo_t=wvo_t, bvo=bvo, wq_t=wq_t, bq=bq,
                wk_t=wk_t, bk=bk, wva_t=wva_t, bva=bva)


def _reference(query, source, p, num_heads):
    """Pure-JAX f32 reference matching the PyTorch forward."""
    dk = p["wq_t"].shape[1] // num_heads
    d_out = p["wva_t"].shape[1] // num_heads
    value = source @ p["wvo_t"] + p["bvo"]
    q = (query @ p["wq_t"] + p["bq"]).reshape(-1, num_heads, dk)
    k = (source @ p["wk_t"] + p["bk"]).reshape(-1, num_heads, dk)
    v = (value @ p["wva_t"] + p["bva"]).reshape(-1, num_heads, d_out)
    scores = jnp.einsum("nhm,lhm->nlh", q, k) / jnp.sqrt(jnp.float32(dk))
    w = jax.nn.softmax(scores, axis=-1)          # softmax over heads, as in the module
    return jnp.einsum("nlh,lhd->nhd", w, v)


if __name__ == "__main__":
    # Small but tile-aligned config (grid 2x2) so the pipelined path is exercised.
    in_channels = 128
    out_channels = 128          # attention.Wv requires out_channels == in_channels
    num_heads = 4
    n_query = 256
    n_source = 256

    root = jax.random.PRNGKey(0)
    k_params, k_q, k_s = jax.random.split(root, 3)

    params = make_params(k_params, in_channels, out_channels, num_heads)
    query_input = jax.random.normal(k_q, (n_query, in_channels), jnp.float32)
    source_input = jax.random.normal(k_s, (n_source, in_channels), jnp.float32)

    out = trans_conv_layer_gat(query_input, source_input, params, num_heads)
    out = jax.block_until_ready(out)
    assert out.shape == (n_query, num_heads, out_channels)

    ref = jax.block_until_ready(_reference(query_input, source_input, params, num_heads))
    max_err = float(jnp.max(jnp.abs(out - ref)))
    ref_scale = float(jnp.max(jnp.abs(ref)))
    # bf16 matmul operands with f32 accumulation -> compare at bf16-level tolerance.
    assert max_err <= 5e-2 * max(ref_scale, 1.0), (
        f"mismatch vs reference: max_err={max_err:.4e}, ref_scale={ref_scale:.4e}")

    print("KERNEL_OK")
</pallas_src>

<mosaic_0001>
module attributes {stable_mosaic.version = 11 : i64} {
  func.func @_value_proj_kernel(%arg0: i32, %arg1: memref<128x136xbf16, #tpu.memory_space<vmem>>, %arg2: memref<4x136x128xbf16, #tpu.memory_space<vmem>>, %arg3: memref<4x128x128xbf16, #tpu.memory_space<vmem>>) attributes {dimension_semantics = [#tpu.dimension_semantics<parallel>], iteration_bounds = array<i64: 2>, scalar_prefetch = 0 : i64, scratch_operands = 0 : i64, tpu.core_type = #tpu.core_type<tc>, window_params = [{transform_indices = @transform_0, window_bounds = array<i64: 128, 136>}, {pipeline_mode = #tpu.pipeline_mode<synchronous>, transform_indices = @transform_1, window_bounds = array<i64: 4, 136, 128>}, {transform_indices = @transform_2, window_bounds = array<i64: 4, 128, 128>}]} {
    %c0 = arith.constant 0 : index
    %c0_0 = arith.constant 0 : index
    %0 = vector.load %arg1[%c0, %c0_0] : memref<128x136xbf16, #tpu.memory_space<vmem>>, vector<128x136xbf16>
    %c0_1 = arith.constant 0 : index
    %c0_2 = arith.constant 0 : index
    %c0_3 = arith.constant 0 : index
    %1 = vector.load %arg2[%c0_1, %c0_2, %c0_3] : memref<4x136x128xbf16, #tpu.memory_space<vmem>>, vector<1x136x128xbf16>
    %2 = vector.shape_cast %1 : vector<1x136x128xbf16> to vector<136x128xbf16>
    %cst = arith.constant dense<0.000000e+00> : vector<128x128xf32>
    %3 = tpu.matmul %0, %2, %cst {dimension_numbers = #tpu.dot_dimension_numbers<[1], [0], [0], [1], [0, 0, 1, 1], [], []>} : vector<128x136xbf16>, vector<136x128xbf16>, vector<128x128xf32> -> vector<128x128xf32>
    %4 = arith.truncf %3 : vector<128x128xf32> to vector<128x128xbf16>
    %c0_4 = arith.constant 0 : index
    %c0_5 = arith.constant 0 : index
    %c0_6 = arith.constant 0 : index
    %5 = vector.load %arg3[%c0_4, %c0_5, %c0_6] : memref<4x128x128xbf16, #tpu.memory_space<vmem>>, vector<1x128x128xbf16>
    %6 = vector.shape_cast %5 : vector<1x128x128xbf16> to vector<128x128xbf16>
    %7 = vector.shape_cast %4 : vector<128x128xbf16> to vector<1x128x128xbf16>
    tpu.vector_store %arg3[%c0_4, %c0_5, %c0_6], %7 {strides = array<i32>} : memref<4x128x128xbf16, #tpu.memory_space<vmem>>, vector<1x128x128xbf16>,
    %c1 = arith.constant 1 : index
    %c0_7 = arith.constant 0 : index
    %c0_8 = arith.constant 0 : index
    %8 = vector.load %arg2[%c1, %c0_7, %c0_8] : memref<4x136x128xbf16, #tpu.memory_space<vmem>>, vector<1x136x128xbf16>
    %9 = vector.shape_cast %8 : vector<1x136x128xbf16> to vector<136x128xbf16>
    %cst_9 = arith.constant dense<0.000000e+00> : vector<128x128xf32>
    %10 = tpu.matmul %0, %9, %cst_9 {dimension_numbers = #tpu.dot_dimension_numbers<[1], [0], [0], [1], [0, 0, 1, 1], [], []>} : vector<128x136xbf16>, vector<136x128xbf16>, vector<128x128xf32> -> vector<128x128xf32>
    %11 = arith.truncf %10 : vector<128x128xf32> to vector<128x128xbf16>
    %c1_10 = arith.constant 1 : index
    %c0_11 = arith.constant 0 : index
    %c0_12 = arith.constant 0 : index
    %12 = vector.load %arg3[%c1_10, %c0_11, %c0_12] : memref<4x128x128xbf16, #tpu.memory_space<vmem>>, vector<1x128x128xbf16>
    %13 = vector.shape_cast %12 : vector<1x128x128xbf16> to vector<128x128xbf16>
    %14 = vector.shape_cast %11 : vector<128x128xbf16> to vector<1x128x128xbf16>
    tpu.vector_store %arg3[%c1_10, %c0_11, %c0_12], %14 {strides = array<i32>} : memref<4x128x128xbf16, #tpu.memory_space<vmem>>, vector<1x128x128xbf16>,
    %c2 = arith.constant 2 : index
    %c0_13 = arith.constant 0 : index
    %c0_14 = arith.constant 0 : index
    %15 = vector.load %arg2[%c2, %c0_13, %c0_14] : memref<4x136x128xbf16, #tpu.memory_space<vmem>>, vector<1x136x128xbf16>
    %16 = vector.shape_cast %15 : vector<1x136x128xbf16> to vector<136x128xbf16>
    %cst_15 = arith.constant dense<0.000000e+00> : vector<128x128xf32>
    %17 = tpu.matmul %0, %16, %cst_15 {dimension_numbers = #tpu.dot_dimension_numbers<[1], [0], [0], [1], [0, 0, 1, 1], [], []>} : vector<128x136xbf16>, vector<136x128xbf16>, vector<128x128xf32> -> vector<128x128xf32>
    %18 = arith.truncf %17 : vector<128x128xf32> to vector<128x128xbf16>
    %c2_16 = arith.constant 2 : index
    %c0_17 = arith.constant 0 : index
    %c0_18 = arith.constant 0 : index
    %19 = vector.load %arg3[%c2_16, %c0_17, %c0_18] : memref<4x128x128xbf16, #tpu.memory_space<vmem>>, vector<1x128x128xbf16>
    %20 = vector.shape_cast %19 : vector<1x128x128xbf16> to vector<128x128xbf16>
    %21 = vector.shape_cast %18 : vector<128x128xbf16> to vector<1x128x128xbf16>
    tpu.vector_store %arg3[%c2_16, %c0_17, %c0_18], %21 {strides = array<i32>} : memref<4x128x128xbf16, #tpu.memory_space<vmem>>, vector<1x128x128xbf16>,
    %c3 = arith.constant 3 : index
    %c0_19 = arith.constant 0 : index
    %c0_20 = arith.constant 0 : index
    %22 = vector.load %arg2[%c3, %c0_19, %c0_20] : memref<4x136x128xbf16, #tpu.memory_space<vmem>>, vector<1x136x128xbf16>
    %23 = vector.shape_cast %22 : vector<1x136x128xbf16> to vector<136x128xbf16>
    %cst_21 = arith.constant dense<0.000000e+00> : vector<128x128xf32>
    %24 = tpu.matmul %0, %23, %cst_21 {dimension_numbers = #tpu.dot_dimension_numbers<[1], [0], [0], [1], [0, 0, 1, 1], [], []>} : vector<128x136xbf16>, vector<136x128xbf16>, vector<128x128xf32> -> vector<128x128xf32>
    %25 = arith.truncf %24 : vector<128x128xf32> to vector<128x128xbf16>
    %c3_22 = arith.constant 3 : index
    %c0_23 = arith.constant 0 : index
    %c0_24 = arith.constant 0 : index
    %26 = vector.load %arg3[%c3_22, %c0_23, %c0_24] : memref<4x128x128xbf16, #tpu.memory_space<vmem>>, vector<1x128x128xbf16>
    %27 = vector.shape_cast %26 : vector<1x128x128xbf16> to vector<128x128xbf16>
    %28 = vector.shape_cast %25 : vector<128x128xbf16> to vector<1x128x128xbf16>
    tpu.vector_store %arg3[%c3_22, %c0_23, %c0_24], %28 {strides = array<i32>} : memref<4x128x128xbf16, #tpu.memory_space<vmem>>, vector<1x128x128xbf16>,
    return
  }
  func.func @transform_0(%arg0: i32) -> (i32, i32) {
    %c0_i32 = arith.constant 0 : i32
    %c0_i32_0 = arith.constant 0 : i32
    return %arg0, %c0_i32 : i32, i32
  }
  func.func @transform_1(%arg0: i32) -> (i32, i32, i32) {
    %c0_i32 = arith.constant 0 : i32
    %c0_i32_0 = arith.constant 0 : i32
    %c0_i32_1 = arith.constant 0 : i32
    %c0_i32_2 = arith.constant 0 : i32
    return %c0_i32, %c0_i32_0, %c0_i32_1 : i32, i32, i32
  }
  func.func @transform_2(%arg0: i32) -> (i32, i32, i32) {
    %c0_i32 = arith.constant 0 : i32
    %c0_i32_0 = arith.constant 0 : i32
    %c0_i32_1 = arith.constant 0 : i32
    return %c0_i32, %arg0, %c0_i32_0 : i32, i32, i32
  }
}

module attributes {stable_mosaic.version = 11 : i64} {
  func.func @_attention_kernel(%arg0: i32, %arg1: i32, %arg2: memref<128x136xbf16, #tpu.memory_space<vmem>>, %arg3: memref<128x136xbf16, #tpu.memory_space<vmem>>, %arg4: memref<4x128x128xbf16, #tpu.memory_space<vmem>>, %arg5: memref<4x136x136xbf16, #tpu.memory_space<vmem>>, %arg6: memref<4x128x128xf32, #tpu.memory_space<vmem>>, %arg7: memref<4x128x136xbf16, #tpu.memory_space<vmem>>) attributes {dimension_semantics = [#tpu.dimension_semantics<parallel>, #tpu.dimension_semantics<arbitrary>], iteration_bounds = array<i64: 2, 2>, scalar_prefetch = 0 : i64, scratch_operands = 1 : i64, tpu.core_type = #tpu.core_type<tc>, window_params = [{transform_indices = @transform_0, window_bounds = array<i64: 128, 136>}, {transform_indices = @transform_1, window_bounds = array<i64: 128, 136>}, {transform_indices = @transform_2, window_bounds = array<i64: 4, 128, 128>}, {pipeline_mode = #tpu.pipeline_mode<synchronous>, transform_indices = @transform_3, window_bounds = array<i64: 4, 136, 136>}, {transform_indices = @transform_4, window_bounds = array<i64: 4, 128, 128>}]} {
    %c0_i32 = arith.constant 0 : i32
    %0 = arith.cmpi eq, %arg1, %c0_i32 : i32
    %1 = arith.extui %0 : i1 to i32
    %c0_i32_0 = arith.constant 0 : i32
    %2 = arith.cmpi ne, %1, %c0_i32_0 : i32
    scf.if %2 {
      %c0_54 = arith.constant 0 : index
      %c0_55 = arith.constant 0 : index
      %75 = vector.load %arg2[%c0_54, %c0_55] : memref<128x136xbf16, #tpu.memory_space<vmem>>, vector<128x136xbf16>
      %c0_56 = arith.constant 0 : index
      %c0_57 = arith.constant 0 : index
      %c0_58 = arith.constant 0 : index
      %76 = vector.load %arg5[%c0_56, %c0_57, %c0_58] : memref<4x136x136xbf16, #tpu.memory_space<vmem>>, vector<1x136x136xbf16>
      %77 = vector.shape_cast %76 : vector<1x136x136xbf16> to vector<136x136xbf16>
      %cst_59 = arith.constant dense<0.000000e+00> : vector<128x136xf32>
      %78 = tpu.matmul %75, %77, %cst_59 {dimension_numbers = #tpu.dot_dimension_numbers<[1], [0], [0], [1], [0, 0, 1, 1], [], []>} : vector<128x136xbf16>, vector<136x136xbf16>, vector<128x136xf32> -> vector<128x136xf32>
      %79 = arith.truncf %78 : vector<128x136xf32> to vector<128x136xbf16>
      %c0_60 = arith.constant 0 : index
      %c0_61 = arith.constant 0 : index
      %c0_62 = arith.constant 0 : index
      %80 = vector.load %arg7[%c0_60, %c0_61, %c0_62] : memref<4x128x136xbf16, #tpu.memory_space<vmem>>, vector<1x128x136xbf16>
      %81 = vector.shape_cast %80 : vector<1x128x136xbf16> to vector<128x136xbf16>
      %82 = vector.shape_cast %79 : vector<128x136xbf16> to vector<1x128x136xbf16>
      tpu.vector_store %arg7[%c0_60, %c0_61, %c0_62], %82 {strides = array<i32>} : memref<4x128x136xbf16, #tpu.memory_space<vmem>>, vector<1x128x136xbf16>,
      %c1_63 = arith.constant 1 : index
      %c0_64 = arith.constant 0 : index
      %c0_65 = arith.constant 0 : index
      %83 = vector.load %arg5[%c1_63, %c0_64, %c0_65] : memref<4x136x136xbf16, #tpu.memory_space<vmem>>, vector<1x136x136xbf16>
      %84 = vector.shape_cast %83 : vector<1x136x136xbf16> to vector<136x136xbf16>
      %cst_66 = arith.constant dense<0.000000e+00> : vector<128x136xf32>
      %85 = tpu.matmul %75, %84, %cst_66 {dimension_numbers = #tpu.dot_dimension_numbers<[1], [0], [0], [1], [0, 0, 1, 1], [], []>} : vector<128x136xbf16>, vector<136x136xbf16>, vector<128x136xf32> -> vector<128x136xf32>
      %86 = arith.truncf %85 : vector<128x136xf32> to vector<128x136xbf16>
      %c1_67 = arith.constant 1 : index
      %c0_68 = arith.constant 0 : index
      %c0_69 = arith.constant 0 : index
      %87 = vector.load %arg7[%c1_67, %c0_68, %c0_69] : memref<4x128x136xbf16, #tpu.memory_space<vmem>>, vector<1x128x136xbf16>
      %88 = vector.shape_cast %87 : vector<1x128x136xbf16> to vector<128x136xbf16>
      %89 = vector.shape_cast %86 : vector<128x136xbf16> to vector<1x128x136xbf16>
      tpu.vector_store %arg7[%c1_67, %c0_68, %c0_69], %89 {strides = array<i32>} : memref<4x128x136xbf16, #tpu.memory_space<vmem>>, vector<1x128x136xbf16>,
      %c2_70 = arith.constant 2 : index
      %c0_71 = arith.constant 0 : index
      %c0_72 = arith.constant 0 : index
      %90 = vector.load %arg5[%c2_70, %c0_71, %c0_72] : memref<4x136x136xbf16, #tpu.memory_space<vmem>>, vector<1x136x136xbf16>
      %91 = vector.shape_cast %90 : vector<1x136x136xbf16> to vector<136x136xbf16>
      %cst_73 = arith.constant dense<0.000000e+00> : vector<128x136xf32>
      %92 = tpu.matmul %75, %91, %cst_73 {dimension_numbers = #tpu.dot_dimension_numbers<[1], [0], [0], [1], [0, 0, 1, 1], [], []>} : vector<128x136xbf16>, vector<136x136xbf16>, vector<128x136xf32> -> vector<128x136xf32>
      %93 = arith.truncf %92 : vector<128x136xf32> to vector<128x136xbf16>
      %c2_74 = arith.constant 2 : index
      %c0_75 = arith.constant 0 : index
      %c0_76 = arith.constant 0 : index
      %94 = vector.load %arg7[%c2_74, %c0_75, %c0_76] : memref<4x128x136xbf16, #tpu.memory_space<vmem>>, vector<1x128x136xbf16>
      %95 = vector.shape_cast %94 : vector<1x128x136xbf16> to vector<128x136xbf16>
      %96 = vector.shape_cast %93 : vector<128x136xbf16> to vector<1x128x136xbf16>
      tpu.vector_store %arg7[%c2_74, %c0_75, %c0_76], %96 {strides = array<i32>} : memref<4x128x136xbf16, #tpu.memory_space<vmem>>, vector<1x128x136xbf16>,
      %c3_77 = arith.constant 3 : index
      %c0_78 = arith.constant 0 : index
      %c0_79 = arith.constant 0 : index
      %97 = vector.load %arg5[%c3_77, %c0_78, %c0_79] : memref<4x136x136xbf16, #tpu.memory_space<vmem>>, vector<1x136x136xbf16>
      %98 = vector.shape_cast %97 : vector<1x136x136xbf16> to vector<136x136xbf16>
      %cst_80 = arith.constant dense<0.000000e+00> : vector<128x136xf32>
      %99 = tpu.matmul %75, %98, %cst_80 {dimension_numbers = #tpu.dot_dimension_numbers<[1], [0], [0], [1], [0, 0, 1, 1], [], []>} : vector<128x136xbf16>, vector<136x136xbf16>, vector<128x136xf32> -> vector<128x136xf32>
      %100 = arith.truncf %99 : vector<128x136xf32> to vector<128x136xbf16>
      %c3_81 = arith.constant 3 : index
      %c0_82 = arith.constant 0 : index
      %c0_83 = arith.constant 0 : index
      %101 = vector.load %arg7[%c3_81, %c0_82, %c0_83] : memref<4x128x136xbf16, #tpu.memory_space<vmem>>, vector<1x128x136xbf16>
      %102 = vector.shape_cast %101 : vector<1x128x136xbf16> to vector<128x136xbf16>
      %103 = vector.shape_cast %100 : vector<128x136xbf16> to vector<1x128x136xbf16>
      tpu.vector_store %arg7[%c3_81, %c0_82, %c0_83], %103 {strides = array<i32>} : memref<4x128x136xbf16, #tpu.memory_space<vmem>>, vector<1x128x136xbf16>,
      %cst_84 = arith.constant 0.000000e+00 : f32
      %104 = vector.broadcast %cst_84 : f32 to vector<4x128x128xf32>
      %c0_85 = arith.constant 0 : index
      %c0_86 = arith.constant 0 : index
      %c0_87 = arith.constant 0 : index
      %105 = vector.load %arg6[%c0_85, %c0_86, %c0_87] : memref<4x128x128xf32, #tpu.memory_space<vmem>>, vector<4x128x128xf32>
      tpu.vector_store %arg6[%c0_85, %c0_86, %c0_87], %104 {strides = array<i32>} : memref<4x128x128xf32, #tpu.memory_space<vmem>>, vector<4x128x128xf32>,
    } else {
    }
    %c0 = arith.constant 0 : index
    %c0_1 = arith.constant 0 : index
    %3 = vector.load %arg3[%c0, %c0_1] : memref<128x136xbf16, #tpu.memory_space<vmem>>, vector<128x136xbf16>
    %c0_2 = arith.constant 0 : index
    %c0_3 = arith.constant 0 : index
    %c0_4 = arith.constant 0 : index
    %4 = vector.load %arg7[%c0_2, %c0_3, %c0_4] : memref<4x128x136xbf16, #tpu.memory_space<vmem>>, vector<1x128x136xbf16>
    %5 = vector.shape_cast %4 : vector<1x128x136xbf16> to vector<128x136xbf16>
    %cst = arith.constant dense<0.000000e+00> : vector<128x128xf32>
    %6 = tpu.matmul %5, %3, %cst {dimension_numbers = #tpu.dot_dimension_numbers<[1], [1], [0], [0], [0, 0, 1, 0], [], []>} : vector<128x136xbf16>, vector<128x136xbf16>, vector<128x128xf32> -> vector<128x128xf32>
    %c1 = arith.constant 1 : index
    %c0_5 = arith.constant 0 : index
    %c0_6 = arith.constant 0 : index
    %7 = vector.load %arg7[%c1, %c0_5, %c0_6] : memref<4x128x136xbf16, #tpu.memory_space<vmem>>, vector<1x128x136xbf16>
    %8 = vector.shape_cast %7 : vector<1x128x136xbf16> to vector<128x136xbf16>
    %cst_7 = arith.constant dense<0.000000e+00> : vector<128x128xf32>
    %9 = tpu.matmul %8, %3, %cst_7 {dimension_numbers = #tpu.dot_dimension_numbers<[1], [1], [0], [0], [0, 0, 1, 0], [], []>} : vector<128x136xbf16>, vector<128x136xbf16>, vector<128x128xf32> -> vector<128x128xf32>
    %c2 = arith.constant 2 : index
    %c0_8 = arith.constant 0 : index
    %c0_9 = arith.constant 0 : index
    %10 = vector.load %arg7[%c2, %c0_8, %c0_9] : memref<4x128x136xbf16, #tpu.memory_space<vmem>>, vector<1x128x136xbf16>
    %11 = vector.shape_cast %10 : vector<1x128x136xbf16> to vector<128x136xbf16>
    %cst_10 = arith.constant dense<0.000000e+00> : vector<128x128xf32>
    %12 = tpu.matmul %11, %3, %cst_10 {dimension_numbers = #tpu.dot_dimension_numbers<[1], [1], [0], [0], [0, 0, 1, 0], [], []>} : vector<128x136xbf16>, vector<128x136xbf16>, vector<128x128xf32> -> vector<128x128xf32>
    %c3 = arith.constant 3 : index
    %c0_11 = arith.constant 0 : index
    %c0_12 = arith.constant 0 : index
    %13 = vector.load %arg7[%c3, %c0_11, %c0_12] : memref<4x128x136xbf16, #tpu.memory_space<vmem>>, vector<1x128x136xbf16>
    %14 = vector.shape_cast %13 : vector<1x128x136xbf16> to vector<128x136xbf16>
    %cst_13 = arith.constant dense<0.000000e+00> : vector<128x128xf32>
    %15 = tpu.matmul %14, %3, %cst_13 {dimension_numbers = #tpu.dot_dimension_numbers<[1], [1], [0], [0], [0, 0, 1, 0], [], []>} : vector<128x136xbf16>, vector<128x136xbf16>, vector<128x128xf32> -> vector<128x128xf32>
    %16 = arith.maximumf %6, %9 : vector<128x128xf32>
    %17 = arith.maximumf %16, %12 : vector<128x128xf32>
    %18 = arith.maximumf %17, %15 : vector<128x128xf32>
    %19 = arith.subf %6, %18 : vector<128x128xf32>
    %20 = math.exp %19 : vector<128x128xf32>
    %21 = arith.subf %9, %18 : vector<128x128xf32>
    %22 = math.exp %21 : vector<128x128xf32>
    %23 = arith.subf %12, %18 : vector<128x128xf32>
    %24 = math.exp %23 : vector<128x128xf32>
    %25 = arith.subf %15, %18 : vector<128x128xf32>
    %26 = math.exp %25 : vector<128x128xf32>
    %27 = arith.addf %20, %22 : vector<128x128xf32>
    %28 = arith.addf %27, %24 : vector<128x128xf32>
    %29 = arith.addf %28, %26 : vector<128x128xf32>
    %30 = tpu.reciprocal %29 {approx = true} : vector<128x128xf32> -> vector<128x128xf32>
    %31 = arith.mulf %20, %30 : vector<128x128xf32>
    %32 = arith.truncf %31 : vector<128x128xf32> to vector<128x128xbf16>
    %c0_14 = arith.constant 0 : index
    %c0_15 = arith.constant 0 : index
    %c0_16 = arith.constant 0 : index
    %33 = vector.load %arg6[%c0_14, %c0_15, %c0_16] : memref<4x128x128xf32, #tpu.memory_space<vmem>>, vector<1x128x128xf32>
    %34 = vector.shape_cast %33 : vector<1x128x128xf32> to vector<128x128xf32>
    %c0_17 = arith.constant 0 : index
    %c0_18 = arith.constant 0 : index
    %c0_19 = arith.constant 0 : index
    %35 = vector.load %arg4[%c0_17, %c0_18, %c0_19] : memref<4x128x128xbf16, #tpu.memory_space<vmem>>, vector<1x128x128xbf16>
    %36 = vector.shape_cast %35 : vector<1x128x128xbf16> to vector<128x128xbf16>
    %cst_20 = arith.constant dense<0.000000e+00> : vector<128x128xf32>
    %37 = tpu.matmul %32, %36, %cst_20 {dimension_numbers = #tpu.dot_dimension_numbers<[1], [0], [0], [1], [0, 0, 1, 1], [], []>} : vector<128x128xbf16>, vector<128x128xbf16>, vector<128x128xf32> -> vector<128x128xf32>
    %38 = arith.addf %34, %37 : vector<128x128xf32>
    %c0_21 = arith.constant 0 : index
    %c0_22 = arith.constant 0 : index
    %c0_23 = arith.constant 0 : index
    %39 = vector.load %arg6[%c0_21, %c0_22, %c0_23] : memref<4x128x128xf32, #tpu.memory_space<vmem>>, vector<1x128x128xf32>
    %40 = vector.shape_cast %39 : vector<1x128x128xf32> to vector<128x128xf32>
    %41 = vector.shape_cast %38 : vector<128x128xf32> to vector<1x128x128xf32>
    tpu.vector_store %arg6[%c0_21, %c0_22, %c0_23], %41 {strides = array<i32>} : memref<4x128x128xf32, #tpu.memory_space<vmem>>, vector<1x128x128xf32>,
    %42 = arith.mulf %22, %30 : vector<128x128xf32>
    %43 = arith.truncf %42 : vector<128x128xf32> to vector<128x128xbf16>
    %c1_24 = arith.constant 1 : index
    %c0_25 = arith.constant 0 : index
    %c0_26 = arith.constant 0 : index
    %44 = vector.load %arg6[%c1_24, %c0_25, %c0_26] : memref<4x128x128xf32, #tpu.memory_space<vmem>>, vector<1x128x128xf32>
    %45 = vector.shape_cast %44 : vector<1x128x128xf32> to vector<128x128xf32>
    %c1_27 = arith.constant 1 : index
    %c0_28 = arith.constant 0 : index
    %c0_29 = arith.constant 0 : index
    %46 = vector.load %arg4[%c1_27, %c0_28, %c0_29] : memref<4x128x128xbf16, #tpu.memory_space<vmem>>, vector<1x128x128xbf16>
    %47 = vector.shape_cast %46 : vector<1x128x128xbf16> to vector<128x128xbf16>
    %cst_30 = arith.constant dense<0.000000e+00> : vector<128x128xf32>
    %48 = tpu.matmul %43, %47, %cst_30 {dimension_numbers = #tpu.dot_dimension_numbers<[1], [0], [0], [1], [0, 0, 1, 1], [], []>} : vector<128x128xbf16>, vector<128x128xbf16>, vector<128x128xf32> -> vector<128x128xf32>
    %49 = arith.addf %45, %48 : vector<128x128xf32>
    %c1_31 = arith.constant 1 : index
    %c0_32 = arith.constant 0 : index
    %c0_33 = arith.constant 0 : index
    %50 = vector.load %arg6[%c1_31, %c0_32, %c0_33] : memref<4x128x128xf32, #tpu.memory_space<vmem>>, vector<1x128x128xf32>
    %51 = vector.shape_cast %50 : vector<1x128x128xf32> to vector<128x128xf32>
    %52 = vector.shape_cast %49 : vector<128x128xf32> to vector<1x128x128xf32>
    tpu.vector_store %arg6[%c1_31, %c0_32, %c0_33], %52 {strides = array<i32>} : memref<4x128x128xf32, #tpu.memory_space<vmem>>, vector<1x128x128xf32>,
    %53 = arith.mulf %24, %30 : vector<128x128xf32>
    %54 = arith.truncf %53 : vector<128x128xf32> to vector<128x128xbf16>
    %c2_34 = arith.constant 2 : index
    %c0_35 = arith.constant 0 : index
    %c0_36 = arith.constant 0 : index
    %55 = vector.load %arg6[%c2_34, %c0_35, %c0_36] : memref<4x128x128xf32, #tpu.memory_space<vmem>>, vector<1x128x128xf32>
    %56 = vector.shape_cast %55 : vector<1x128x128xf32> to vector<128x128xf32>
    %c2_37 = arith.constant 2 : index
    %c0_38 = arith.constant 0 : index
    %c0_39 = arith.constant 0 : index
    %57 = vector.load %arg4[%c2_37, %c0_38, %c0_39] : memref<4x128x128xbf16, #tpu.memory_space<vmem>>, vector<1x128x128xbf16>
    %58 = vector.shape_cast %57 : vector<1x128x128xbf16> to vector<128x128xbf16>
    %cst_40 = arith.constant dense<0.000000e+00> : vector<128x128xf32>
    %59 = tpu.matmul %54, %58, %cst_40 {dimension_numbers = #tpu.dot_dimension_numbers<[1], [0], [0], [1], [0, 0, 1, 1], [], []>} : vector<128x128xbf16>, vector<128x128xbf16>, vector<128x128xf32> -> vector<128x128xf32>
    %60 = arith.addf %56, %59 : vector<128x128xf32>
    %c2_41 = arith.constant 2 : index
    %c0_42 = arith.constant 0 : index
    %c0_43 = arith.constant 0 : index
    %61 = vector.load %arg6[%c2_41, %c0_42, %c0_43] : memref<4x128x128xf32, #tpu.memory_space<vmem>>, vector<1x128x128xf32>
    %62 = vector.shape_cast %61 : vector<1x128x128xf32> to vector<128x128xf32>
    %63 = vector.shape_cast %60 : vector<128x128xf32> to vector<1x128x128xf32>
    tpu.vector_store %arg6[%c2_41, %c0_42, %c0_43], %63 {strides = array<i32>} : memref<4x128x128xf32, #tpu.memory_space<vmem>>, vector<1x128x128xf32>,
    %64 = arith.mulf %26, %30 : vector<128x128xf32>
    %65 = arith.truncf %64 : vector<128x128xf32> to vector<128x128xbf16>
    %c3_44 = arith.constant 3 : index
    %c0_45 = arith.constant 0 : index
    %c0_46 = arith.constant 0 : index
    %66 = vector.load %arg6[%c3_44, %c0_45, %c0_46] : memref<4x128x128xf32, #tpu.memory_space<vmem>>, vector<1x128x128xf32>
    %67 = vector.shape_cast %66 : vector<1x128x128xf32> to vector<128x128xf32>
    %c3_47 = arith.constant 3 : index
    %c0_48 = arith.constant 0 : index
    %c0_49 = arith.constant 0 : index
    %68 = vector.load %arg4[%c3_47, %c0_48, %c0_49] : memref<4x128x128xbf16, #tpu.memory_space<vmem>>, vector<1x128x128xbf16>
    %69 = vector.shape_cast %68 : vector<1x128x128xbf16> to vector<128x128xbf16>
    %cst_50 = arith.constant dense<0.000000e+00> : vector<128x128xf32>
    %70 = tpu.matmul %65, %69, %cst_50 {dimension_numbers = #tpu.dot_dimension_numbers<[1], [0], [0], [1], [0, 0, 1, 1], [], []>} : vector<128x128xbf16>, vector<128x128xbf16>, vector<128x128xf32> -> vector<128x128xf32>
    %71 = arith.addf %67, %70 : vector<128x128xf32>
    %c3_51 = arith.constant 3 : index
    %c0_52 = arith.constant 0 : index
    %c0_53 = arith.constant 0 : index
    %72 = vector.load %arg6[%c3_51, %c0_52, %c0_53] : memref<4x128x128xf32, #tpu.memory_space<vmem>>, vector<1x128x128xf32>
    %73 = vector.shape_cast %72 : vector<1x128x128xf32> to vector<128x128xf32>
    %74 = vector.shape_cast %71 : vector<128x128xf32> to vector<1x128x128xf32>
    tpu.vector_store %arg6[%c3_51, %c0_52, %c0_53], %74 {strides = array<i32>} : memref<4x128x128xf32, #tpu.memory_space<vmem>>, vector<1x128x128xf32>,
    return
  }
  func.func @transform_0(%arg0: i32, %arg1: i32) -> (i32, i32) {
    %c0_i32 = arith.constant 0 : i32
    %c0_i32_0 = arith.constant 0 : i32
    return %arg0, %c0_i32 : i32, i32
  }
  func.func @transform_1(%arg0: i32, %arg1: i32) -> (i32, i32) {
    %c0_i32 = arith.constant 0 : i32
    %c0_i32_0 = arith.constant 0 : i32
    return %arg1, %c0_i32 : i32, i32
  }
  func.func @transform_2(%arg0: i32, %arg1: i32) -> (i32, i32, i32) {
    %c0_i32 = arith.constant 0 : i32
    %c0_i32_0 = arith.constant 0 : i32
    %c0_i32_1 = arith.constant 0 : i32
    return %c0_i32, %arg1, %c0_i32_0 : i32, i32, i32
  }
  func.func @transform_3(%arg0: i32, %arg1: i32) -> (i32, i32, i32) {
    %c0_i32 = arith.constant 0 : i32
    %c0_i32_0 = arith.constant 0 : i32
    %c0_i32_1 = arith.constant 0 : i32
    %c0_i32_2 = arith.constant 0 : i32
    return %c0_i32, %c0_i32_0, %c0_i32_1 : i32, i32, i32
  }
  func.func @transform_4(%arg0: i32, %arg1: i32) -> (i32, i32, i32) {
    %c0_i32 = arith.constant 0 : i32
    %c0_i32_0 = arith.constant 0 : i32
    %c0_i32_1 = arith.constant 0 : i32
    return %c0_i32, %arg0, %c0_i32_0 : i32, i32, i32
  }
}

</mosaic_0001>

<bundles_post_ra>
// kernel: trans_conv_layer_gat.2
= control target key start
LH: loop header
LB: loop body
LE: loop exit
PB: predicated region body
PF: predicated region fallthrough
CT: control target
= control target key end

     0   :  { %s2063_s9 = smov 0   ;;  %s2065_s10 = smov 0   ;;  %s2487_s0 = inlined_call_operand.vmem [shape: bf16[256,136], index: 0, kind: input, shape index: {}]   ;;  %s2488_s1 = inlined_call_operand.vmem [shape: bf16[4,136,128], index: 1, kind: input, shape index: {}]   ;;  %s2489_s2 = inlined_call_operand.vmem [shape: bf16[4,256,128], index: 2, kind: output, shape index: {}]  }
   0x1   :  { %s2067_s11 = smov 0  }
   0x2 LB: > { %s2076_s12 = sadd.s32 4294967295, %s2046_s11   ;;  %s2078_s13 = sadd.s32 1, %s2046_s11   ;;  %s2046_s11 = sphi %s2067_s11, %s2493_s11   ;;  %s2042_s10 = sphi %s2065_s10, %s2492_s10   ;;  %s2038_s9 = sphi %s2063_s9, %s2491_s9  }
   0x3   : > { %s63_s14 = ssub.s32 %s2046_s11, %s2078_s13  ;;  %s66_s15 = sadd.s32 1, %s2042_s10 }
   0x4   : > { %p64_p0 = scmp.eq.s32.totalorder %s63_s14, 0  ;;  %p76_p1 = scmp.ne.s32.totalorder %s2042_s10, %s2038_s9 }
   0x5   : > { %p77_p2 = scmp.eq.s32.totalorder %s2076_s12, 1  ;;  %p1426_p3 = scmp.ge.s32.totalorder %s2046_s11, 1 }
   0x6   : > { %s2086_s16 = scalar_select %p64_p0, %s2042_s10, %s66_s15  }
   0x7   : > { %p2088_p4 = por %p77_p2, %p76_p1  ;;  %p114_p5 = scmp.lt.s32.totalorder %s2046_s11, 3 }
   0x9   : > { %p115_p6 = pnand %p1426_p3, %p114_p5 }
   0xa   : > { %s1428_s22 = sshll.u32 (!%p115_p6), %s2076_s12, 4 }
   0xb   : > { %118 = sbr.rel (%p115_p6) target bundleno = 442 (0x1ba), region = 28  ;;  %p137_p7 = scmp.lt.s32.totalorder (!%p115_p6), %s1428_s22, 31 }
  0x10   : > { %v1783_v0 = vld [vmem:[%s2488_s1 + $0x38] sm:$0xff]  ;;  %v1782_v2 = vld [vmem:[%s2488_s1 + $0x30] sm:$0xff]  ;;  %s2495_s22 = smov (!%p137_p7, %s1428_s22), 31  ;;  %v1551_v4 = vld [vmem:[%s2488_s1 + $0x84] sm:$0xf]  ;;  %vm326_vm0 = vcmask 1043456  }
  0x11   : > { %v1791_v1 = vld [vmem:[%s2488_s1 + $0x7c] sm:$0xff]  ;;  %330 = vmatpush.bf16.msra.mxu0 %v1783_v0  ;;  %v1790_v3 = vld [vmem:[%s2488_s1 + $0x74] sm:$0xff]  ;;  %v511_v5 = vunpack.c.l.b16 %v1551_v4  ;;  %s1759_s29 = sshll.u32 %s2495_s22, 3  ;;  %v1781_v7 = vld [vmem:[%s2488_s1 + $0x28] sm:$0xff]  ;;  %vm301_vm1 = vcmask 64512  }
  0x12   : > { %532 = vmatpush.bf16.msra.mxu2 %v1791_v1  ;;  %v177_v6 = vld [vmem:[%s2488_s1 + $0x40] sm:$0xf]  ;;  %v1789_v8 = vld [vmem:[%s2488_s1 + $0x6c] sm:$0xff]  ;;  %s2120_s14 = scalar_lea.vmem %s2487_s0, %s1759_s29  ;;  %v1624_v10 = vld [vmem:[%s2488_s1 + $0xc8] sm:$0xf] }
  0x13   : > { %v283_v9 = vunpack.c.l.b16 %v177_v6  ;;  %v520_v11 = vpack.c.b16 %v511_v5, %v511_v5  ;;  %v714_v12 = vunpack.c.l.b16 %v1624_v10  ;;  %v1760_v13 = vld [vmem:[%s2120_s14 + $0x4] sm:$0xf]  ;;  %v1435_v14 = vld [vmem:[%s2120_s14 + $0x8] sm:$0xf0]  ;;  %v1779_v24 = vld [vmem:[%s2488_s1 + $0x18] sm:$0xff] }
  0x14   : > { %v1799_v16 = vld [vmem:[%s2488_s1 + $0xc0] sm:$0xff]  ;;  %v2138_v22 = vor.u32 %v1760_v13, %v1435_v14  ;;  %v1697_v26 = vld [vmem:[%s2488_s1 + $0x10c] sm:$0xf]  ;;  %v1798_v27 = vld [vmem:[%s2488_s1 + $0xb8] sm:$0xff] }
  0x15   : > { %331 = vmatpush.bf16.msra.mxu0 %v1782_v2  ;;  %v292_v15 = vpack.c.b16 %v283_v9, %v283_v9  ;;  %v530_v17 = vsel %vm326_vm0, %v520_v11, 0  ;;  %v723_v18 = vpack.c.b16 %v714_v12, %v714_v12  ;;  %v1780_v19 = vld [vmem:[%s2488_s1 + $0x20] sm:$0xff]  ;;  %v1778_v28 = vld [vmem:[%s2488_s1 + $0x10] sm:$0xff]  ;;  %v917_v30 = vunpack.c.l.b16 %v1697_v26  ;;  %v1777_v31 = vld [vmem:[%s2488_s1 + $0x8] sm:$0xff] }
  0x16   : > { %533 = vmatpush.bf16.msra.mxu2 %v1790_v3  ;;  %v1788_v20 = vld [vmem:[%s2488_s1 + $0x64] sm:$0xff]  ;;  %588 = vmatpush.bf16.msra.mxu3 %v530_v17  ;;  %v1787_v25 = vld [vmem:[%s2488_s1 + $0x5c] sm:$0xff]  ;;  %v1786_v29 = vld [vmem:[%s2488_s1 + $0x54] sm:$0xff] }
  0x17   : > { %v328_v21 = vsel %vm326_vm0, %v292_v15, 0  ;;  %v733_v23 = vsel %vm326_vm0, %v723_v18, 0  ;;  %v1785_v32 = vld [vmem:[%s2488_s1 + $0x4c] sm:$0xff]  ;;  %v926_v33 = vpack.c.b16 %v917_v30, %v917_v30  ;;  %v1776_v34 = vld [vmem:[%s2488_s1] sm:$0xff]  ;;  %v1762_v35 = vld [vmem:[%s2120_s14 + $0x14] sm:$0xf] }
  0x18   : > { %386 = vmatpush.bf16.msra.mxu1 %v328_v21  ;;  %v1443_v36 = vld [vmem:[%s2120_s14 + $0x18] sm:$0xf0]  ;;  %v1784_v37 = vld [vmem:[%s2488_s1 + $0x44] sm:$0xff]  ;;  %v1433_v38 = vld [vmem:[%s2120_s14] sm:$0xf] }
  0x19   : > { %332 = vmatpush.bf16.msra.mxu0 %v1781_v7  ;;  %1584 = vmatmul.msk.bf16.vlgmr.msra.gmra.mxu3 %vm301_vm1, %v2138_v22  ;;  %v1761_v39 = vld [vmem:[%s2120_s14 + $0x4] sm:$0xf0]  ;;  %v936_v41 = vsel %vm326_vm0, %v926_v33, 0  ;;  %v2183_v42 = vor.u32 %v1762_v35, %v1443_v36  ;;  %v1806_v44 = vld [vmem:[%s2488_s1 + $0xfc] sm:$0xff]  ;;  %v1797_v45 = vld [vmem:[%s2488_s1 + $0xb0] sm:$0xff] }
  0x1a   : > { %534 = vmatpush.bf16.msra.mxu2 %v1789_v8  ;;  %791 = vmatpush.bf16.msrb.mxu3 %v733_v23  ;;  %v1807_v40 = vld [vmem:[%s2488_s1 + $0x104] sm:$0xff]  ;;  %v2185_v43 = vor.u32 %v1761_v39, %v1433_v38  ;;  %v1805_v46 = vld [vmem:[%s2488_s1 + $0xf4] sm:$0xff]  ;;  %v1451_v48 = vld [vmem:[%s2120_s14 + $0x28] sm:$0xf0] }
  0x1b   : > { %1527 = vmatmul.msk.bf16.vlgmr.msra.gmra.mxu1 %vm301_vm1, %v2138_v22  ;;  %v1764_v47 = vld [vmem:[%s2120_s14 + $0x24] sm:$0xf]  ;;  %v1441_v49 = vld [vmem:[%s2120_s14 + $0x10] sm:$0xf]  ;;  %v1763_v50 = vld [vmem:[%s2120_s14 + $0x14] sm:$0xf0] }
  0x1c   : > { %735 = vmatpush.bf16.msrb.mxu1 %v1799_v16  ;;  %v2206_v51 = vor.u32 %v1764_v47, %v1451_v48  ;;  %v2208_v52 = vor.u32 %v1763_v50, %v1441_v49  ;;  %v1796_v53 = vld [vmem:[%s2488_s1 + $0xa8] sm:$0xff]  ;;  %v1766_v55 = vld [vmem:[%s2120_s14 + $0x34] sm:$0xf]  ;;  %v1459_v56 = vld [vmem:[%s2120_s14 + $0x38] sm:$0xf0] }
  0x1d   : > { %333 = vmatpush.bf16.msra.mxu0 %v1780_v19  ;;  %v1804_v54 = vld [vmem:[%s2488_s1 + $0xec] sm:$0xff]  ;;  %v1449_v57 = vld [vmem:[%s2120_s14 + $0x20] sm:$0xf]  ;;  %v1765_v58 = vld [vmem:[%s2120_s14 + $0x24] sm:$0xf0]  ;;  %v2226_v59 = vor.u32 %v1766_v55, %v1459_v56 }
  0x1e   : > { %535 = vmatpush.bf16.msra.mxu2 %v1788_v20  ;;  %v2228_v60 = vor.u32 %v1765_v58, %v1449_v57  ;;  %v1795_v61 = vld [vmem:[%s2488_s1 + $0xa0] sm:$0xff]  ;;  %v1467_v0 = vld [vmem:[%s2120_s14 + $0x48] sm:$0xf0]  ;;  %v1457_v1 = vld [vmem:[%s2120_s14 + $0x30] sm:$0xf] }
  0x1f   : > { %v1803_v62 = vld [vmem:[%s2488_s1 + $0xe4] sm:$0xff]  ;;  %v1767_v2 = vld [vmem:[%s2120_s14 + $0x34] sm:$0xf0]  ;;  %v1802_v6 = vld [vmem:[%s2488_s1 + $0xdc] sm:$0xff] }
  0x20   : > { %736 = vmatpush.bf16.msrb.mxu1 %v1798_v27  ;;  %v1768_v63 = vld [vmem:[%s2120_s14 + $0x44] sm:$0xf]  ;;  %v2248_v4 = vor.u32 %v1767_v2, %v1457_v1  ;;  %v1794_v5 = vld [vmem:[%s2488_s1 + $0x98] sm:$0xff]  ;;  %v1770_v7 = vld [vmem:[%s2120_s14 + $0x54] sm:$0xf] }
  0x21   : > { %334 = vmatpush.bf16.msra.mxu0 %v1779_v24  ;;  %v2246_v3 = vor.u32 %v1768_v63, %v1467_v0  ;;  %v1475_v8 = vld [vmem:[%s2120_s14 + $0x58] sm:$0xf0]  ;;  %v1465_v9 = vld [vmem:[%s2120_s14 + $0x40] sm:$0xf]  ;;  %v1769_v10 = vld [vmem:[%s2120_s14 + $0x44] sm:$0xf0] }
  0x22   : > { %536 = vmatpush.bf16.msra.mxu2 %v1787_v25  ;;  %v2266_v11 = vor.u32 %v1770_v7, %v1475_v8  ;;  %v2268_v12 = vor.u32 %v1769_v10, %v1465_v9  ;;  %v1793_v13 = vld [vmem:[%s2488_s1 + $0x90] sm:$0xff]  ;;  %v1772_v15 = vld [vmem:[%s2120_s14 + $0x64] sm:$0xf]  ;;  %v1483_v16 = vld [vmem:[%s2120_s14 + $0x68] sm:$0xf0] }
  0x23   : > { %v1801_v14 = vld [vmem:[%s2488_s1 + $0xd4] sm:$0xff]  ;;  %v1473_v17 = vld [vmem:[%s2120_s14 + $0x50] sm:$0xf]  ;;  %v2286_v19 = vor.u32 %v1772_v15, %v1483_v16  ;;  %v1792_v21 = vld [vmem:[%s2488_s1 + $0x88] sm:$0xff] }
  0x24   : > { %737 = vmatpush.bf16.msrb.mxu1 %v1797_v45  ;;  %v1771_v18 = vld [vmem:[%s2120_s14 + $0x54] sm:$0xf0]  ;;  %v1800_v23 = vld [vmem:[%s2488_s1 + $0xcc] sm:$0xff]  ;;  %v1774_v24 = vld [vmem:[%s2120_s14 + $0x74] sm:$0xf] }
  0x25   : > { %335 = vmatpush.bf16.msra.mxu0 %v1778_v28  ;;  %v2288_v20 = vor.u32 %v1771_v18, %v1473_v17  ;;  %v1491_v25 = vld [vmem:[%s2120_s14 + $0x78] sm:$0xf0]  ;;  %v1481_v26 = vld [vmem:[%s2120_s14 + $0x60] sm:$0xf]  ;;  %v1773_v27 = vld [vmem:[%s2120_s14 + $0x64] sm:$0xf0] }
  0x26   : > { %537 = vmatpush.bf16.msra.mxu2 %v1786_v29  ;;  %v2306_v28 = vor.u32 %v1774_v24, %v1491_v25  ;;  %v2308_v29 = vor.u32 %v1773_v27, %v1481_v26  ;;  %v1489_v30 = vld [vmem:[%s2120_s14 + $0x70] sm:$0xf] }
  0x28   : > { %738 = vmatpush.bf16.msrb.mxu1 %v1796_v53 }
  0x29   : > { %336 = vmatpush.bf16.msra.mxu0 %v1777_v31  ;;  %1585 = vmatmul.msk.bf16.gmra.mxu3 %vm301_vm1, %v2183_v42  ;;  %v1775_v31 = vld [vmem:[%s2120_s14 + $0x74] sm:$0xf0]  ;;  %s133_s14 = sand.u32 1, %s2038_s9   ;;  %s1808_s9 = sshll.u32 (%p2088_p4), %s2076_s12, 6 }
  0x2a   : > { %538 = vmatpush.bf16.msra.mxu2 %v1785_v32  ;;  %v2318_v33 = vor.u32 %v1775_v31, %v1489_v30  ;;  %s1427_s3 = sshll.u32 %s133_s14, 8  ;;  %s2413_s7 = scalar_lea.vmem (%p2088_p4), %s2489_s2, %s1808_s9 }
  0x2b   : > { %1528 = vmatmul.msk.bf16.gmra.mxu1 %vm301_vm1, %v2183_v42  ;;  %s2332_s4 = scalar_lea.vmem [#allocation2], %s1427_s3 }
  0x2c   : > { %739 = vmatpush.bf16.msrb.mxu1 %v1795_v61 }
  0x2d   : > { %337 = vmatpush.bf16.msra.mxu0 %v1776_v34 }
  0x2e   : > { %539 = vmatpush.bf16.msra.mxu2 %v1784_v37 }
  0x30   : > { %338 = vmatmul.bf16.vlgmr.msra.gmra.mxu0 %v2185_v43  ;;  %740 = vmatpush.bf16.msrb.mxu1 %v1794_v5 }
  0x31   : > { %938 = vmatpush.bf16.msrb.mxu0 %v1807_v40  ;;  %540 = vmatmul.bf16.vlgmr.msra.gmra.mxu2 %v2185_v43 }
  0x32   : > { %994 = vmatpush.bf16.msrb.mxu2 %v936_v41 }
  0x34   : > { %741 = vmatpush.bf16.msrb.mxu1 %v1793_v13 }
  0x35   : > { %939 = vmatpush.bf16.msrb.mxu0 %v1806_v44 }
  0x38   : > { %742 = vmatpush.bf16.msrb.mxu1 %v1792_v21 }
  0x39   : > { %940 = vmatpush.bf16.msrb.mxu0 %v1805_v46  ;;  %1586 = vmatmul.msk.bf16.gmra.mxu3 %vm301_vm1, %v2206_v51 }
  0x3b   : > { %1529 = vmatmul.msk.bf16.gmra.mxu1 %vm301_vm1, %v2206_v51 }
  0x3d   : > { %941 = vmatpush.bf16.msrb.mxu0 %v1804_v54 }
  0x40   : > { %343 = vmatmul.bf16.gmra.mxu0 %v2208_v52 }
  0x41   : > { %545 = vmatmul.bf16.gmra.mxu2 %v2208_v52  ;;  %942 = vmatpush.bf16.msrb.mxu0 %v1803_v62 }
  0x45   : > { %943 = vmatpush.bf16.msrb.mxu0 %v1802_v6 }
  0x49   : > { %1587 = vmatmul.msk.bf16.gmra.mxu3 %vm301_vm1, %v2226_v59  ;;  %944 = vmatpush.bf16.msrb.mxu0 %v1801_v14 }
  0x4b   : > { %1530 = vmatmul.msk.bf16.gmra.mxu1 %vm301_vm1, %v2226_v59 }
  0x4d   : > { %945 = vmatpush.bf16.msrb.mxu0 %v1800_v23 }
  0x50   : > { %348 = vmatmul.bf16.gmra.mxu0 %v2228_v60 }
  0x51   : > { %550 = vmatmul.bf16.gmra.mxu2 %v2228_v60 }
  0x59   : > { %1588 = vmatmul.msk.bf16.gmra.mxu3 %vm301_vm1, %v2246_v3 }
  0x5b   : > { %1531 = vmatmul.msk.bf16.gmra.mxu1 %vm301_vm1, %v2246_v3 }
  0x60   : > { %353 = vmatmul.bf16.gmra.mxu0 %v2248_v4 }
  0x61   : > { %555 = vmatmul.bf16.gmra.mxu2 %v2248_v4 }
  0x69   : > { %1589 = vmatmul.msk.bf16.gmra.mxu3 %vm301_vm1, %v2266_v11 }
  0x6b   : > { %1532 = vmatmul.msk.bf16.gmra.mxu1 %vm301_vm1, %v2266_v11 }
  0x70   : > { %358 = vmatmul.bf16.gmra.mxu0 %v2268_v12 }
  0x71   : > { %560 = vmatmul.bf16.gmra.mxu2 %v2268_v12 }
  0x79   : > { %1590 = vmatmul.msk.bf16.gmra.mxu3 %vm301_vm1, %v2286_v19 }
  0x7b   : > { %1533 = vmatmul.msk.bf16.gmra.mxu1 %vm301_vm1, %v2286_v19 }
  0x80   : > { %363 = vmatmul.bf16.gmra.mxu0 %v2288_v20 }
  0x81   : > { %565 = vmatmul.bf16.gmra.mxu2 %v2288_v20 }
  0x89   : > { %1591 = vmatmul.msk.bf16.gmra.mxu3 %vm301_vm1, %v2306_v28 }
  0x8b   : > { %1534 = vmatmul.msk.bf16.gmra.mxu1 %vm301_vm1, %v2306_v28 }
  0x90   : > { %368 = vmatmul.bf16.gmra.mxu0 %v2308_v29 }
  0x91   : > { %570 = vmatmul.bf16.gmra.mxu2 %v2308_v29 }
  0x98   : > { %v388_v32 = vpop.f32.mrf.mxu1 }
  0x99   : > { %1657 = vmatmul.msk.bf16.vlgmr.msrb.gmra.mxu3 %vm301_vm1, %v2138_v22 }
  0x9b   : > { %743 = vmatmul.bf16.vlgmr.msrb.gmra.mxu1 %v2185_v43 }
  0x9c   : > { %v590_v34 = vpop.f32.mrf.mxu3 }
  0xa0   : > { %373 = vmatmul.bf16.gmra.mxu0 %v2318_v33  ;;  %v390_v35 = vpop.f32.mrf.mxu1 }
  0xa1   : > { %575 = vmatmul.bf16.gmra.mxu2 %v2318_v33 }
  0xa4   : > { %v592_v36 = vpop.f32.mrf.mxu3 }
  0xa8   : > { %v393_v37 = vpop.f32.mrf.mxu1 }
  0xa9   : > { %1658 = vmatmul.msk.bf16.gmra.mxu3 %vm301_vm1, %v2183_v42 }
  0xab   : > { %748 = vmatmul.bf16.gmra.mxu1 %v2208_v52 }
  0xac   : > { %v595_v39 = vpop.f32.mrf.mxu3 }
  0xad   : > { %v339_v38 = vpop.f32.mrf.mxu0 }
  0xae   : > { %v389_v45 = vadd.f32 %v388_v32, %v339_v38 }
  0xb0   : > { %946 = vmatmul.bf16.vlgmr.msrb.gmra.mxu0 %v2185_v43  ;;  %v395_v41 = vpop.f32.mrf.mxu1 }
  0xb1   : > { %1730 = vmatmul.msk.bf16.vlgmr.msrb.gmra.mxu2 %vm301_vm1, %v2138_v22 }
  0xb4   : > { %v541_v40 = vpop.f32.mrf.mxu2  ;;  %v597_v48 = vpop.f32.mrf.mxu3 }
  0xb5   : > { %v341_v44 = vpop.f32.mrf.mxu0  ;;  %v591_v43 = vadd.f32 %v590_v34, %v541_v40 }
  0xb6   : > { %v391_v46 = vadd.f32 %v390_v35, %v341_v44 }
  0xb8   : > { %v1812_v47 = vpack.c.bf16 %v391_v46, %v389_v45  ;;  %v398_v22 = vpop.f32.mrf.mxu1 }
  0xb9   : > { %1659 = vmatmul.msk.bf16.gmra.mxu3 %vm301_vm1, %v2206_v51 }
  0xba   : > { %1813 = vst [vmem:[%s2332_s4] sm:$0xff] %v1812_v47  }
  0xbb   : > { %753 = vmatmul.bf16.gmra.mxu1 %v2228_v60 }
  0xbc   : > { %v543_v49 = vpop.f32.mrf.mxu2  ;;  %v600_v55 = vpop.f32.mrf.mxu3 }
  0xbd   : > { %v593_v50 = vadd.f32 %v592_v36, %v543_v49  ;;  %v344_v53 = vpop.f32.mrf.mxu0 }
  0xbe   : > { %v394_v61 = vadd.f32 %v393_v37, %v344_v53 }
  0xbf   : > { %v1852_v54 = vpack.c.bf16 %v593_v50, %v591_v43 }
  0xc0   : > { %951 = vmatmul.bf16.gmra.mxu0 %v2208_v52  ;;  %v400_v57 = vpop.f32.mrf.mxu1 }
  0xc1   : > { %1976 = vst [vmem:[%s2332_s4 + $0x40] sm:$0xff] %v1852_v54   ;;  %1731 = vmatmul.msk.bf16.gmra.mxu2 %vm301_vm1, %v2183_v42 }
  0xc4   : > { %v546_v56 = vpop.f32.mrf.mxu2  ;;  %v602_v0 = vpop.f32.mrf.mxu3 }
  0xc5   : > { %v346_v58 = vpop.f32.mrf.mxu0  ;;  %v596_v2 = vadd.f32 %v595_v39, %v546_v56 }
  0xc6   : > { %v396_v62 = vadd.f32 %v395_v41, %v346_v58 }
  0xc8   : > { %v1817_v63 = vpack.c.bf16 %v396_v62, %v394_v61  ;;  %v403_v6 = vpop.f32.mrf.mxu1 }
  0xc9   : > { %1660 = vmatmul.msk.bf16.gmra.mxu3 %vm301_vm1, %v2226_v59 }
  0xca   : > { %1969 = vst [vmem:[%s2332_s4 + $0x8] sm:$0xff] %v1817_v63  }
  0xcb   : > { %758 = vmatmul.bf16.gmra.mxu1 %v2248_v4 }
  0xcc   : > { %v548_v1 = vpop.f32.mrf.mxu2  ;;  %v605_v42 = vpop.f32.mrf.mxu3 }
  0xcd   : > { %v598_v5 = vadd.f32 %v597_v48, %v548_v1  ;;  %v349_v7 = vpop.f32.mrf.mxu0 }
  0xce   : > { %v399_v13 = vadd.f32 %v398_v22, %v349_v7 }
  0xcf   : > { %v1857_v52 = vpack.c.bf16 %v598_v5, %v596_v2 }
  0xd0   : > { %956 = vmatmul.bf16.gmra.mxu0 %v2228_v60  ;;  %v405_v9 = vpop.f32.mrf.mxu1 }
  0xd1   : > { %1977 = vst [vmem:[%s2332_s4 + $0x48] sm:$0xff] %v1857_v52   ;;  %1732 = vmatmul.msk.bf16.gmra.mxu2 %vm301_vm1, %v2206_v51 }
  0xd4   : > { %v551_v8 = vpop.f32.mrf.mxu2  ;;  %v607_v16 = vpop.f32.mrf.mxu3 }
  0xd5   : > { %v351_v10 = vpop.f32.mrf.mxu0  ;;  %v601_v18 = vadd.f32 %v600_v55, %v551_v8 }
  0xd6   : > { %v401_v14 = vadd.f32 %v400_v57, %v351_v10 }
  0xd8   : > { %v1822_v15 = vpack.c.bf16 %v401_v14, %v399_v13  ;;  %v408_v23 = vpop.f32.mrf.mxu1 }
  0xd9   : > { %1661 = vmatmul.msk.bf16.gmra.mxu3 %vm301_vm1, %v2246_v3 }
  0xda   : > { %1970 = vst [vmem:[%s2332_s4 + $0x10] sm:$0xff] %v1822_v15  }
  0xdb   : > { %763 = vmatmul.bf16.gmra.mxu1 %v2268_v12 }
  0xdc   : > { %v553_v17 = vpop.f32.mrf.mxu2  ;;  %v610_v51 = vpop.f32.mrf.mxu3 }
  0xdd   : > { %v603_v21 = vadd.f32 %v602_v0, %v553_v17  ;;  %v354_v24 = vpop.f32.mrf.mxu0 }
  0xde   : > { %v404_v30 = vadd.f32 %v403_v6, %v354_v24 }
  0xdf   : > { %v1862_v60 = vpack.c.bf16 %v603_v21, %v601_v18 }
  0xe0   : > { %961 = vmatmul.bf16.gmra.mxu0 %v2248_v4  ;;  %v410_v26 = vpop.f32.mrf.mxu1 }
  0xe1   : > { %1978 = vst [vmem:[%s2332_s4 + $0x50] sm:$0xff] %v1862_v60   ;;  %1733 = vmatmul.msk.bf16.gmra.mxu2 %vm301_vm1, %v2226_v59 }
  0xe4   : > { %v556_v25 = vpop.f32.mrf.mxu2  ;;  %v612_v34 = vpop.f32.mrf.mxu3 }
  0xe5   : > { %v356_v27 = vpop.f32.mrf.mxu0  ;;  %v606_v36 = vadd.f32 %v605_v42, %v556_v25 }
  0xe6   : > { %v406_v31 = vadd.f32 %v405_v9, %v356_v27 }
  0xe8   : > { %v1827_v32 = vpack.c.bf16 %v406_v31, %v404_v30  ;;  %v413_v38 = vpop.f32.mrf.mxu1 }
  0xe9   : > { %1662 = vmatmul.msk.bf16.gmra.mxu3 %vm301_vm1, %v2266_v11 }
  0xea   : > { %1971 = vst [vmem:[%s2332_s4 + $0x18] sm:$0xff] %v1827_v32  }
  0xeb   : > { %768 = vmatmul.bf16.gmra.mxu1 %v2288_v20 }
  0xec   : > { %v558_v35 = vpop.f32.mrf.mxu2  ;;  %v615_v59 = vpop.f32.mrf.mxu3 }
  0xed   : > { %v608_v37 = vadd.f32 %v607_v16, %v558_v35  ;;  %v359_v39 = vpop.f32.mrf.mxu0 }
  0xee   : > { %v409_v45 = vadd.f32 %v408_v23, %v359_v39 }
  0xef   : > { %v1867_v4 = vpack.c.bf16 %v608_v37, %v606_v36 }
  0xf0   : > { %966 = vmatmul.bf16.gmra.mxu0 %v2268_v12  ;;  %v415_v41 = vpop.f32.mrf.mxu1 }
  0xf1   : > { %1979 = vst [vmem:[%s2332_s4 + $0x58] sm:$0xff] %v1867_v4   ;;  %1734 = vmatmul.msk.bf16.gmra.mxu2 %vm301_vm1, %v2246_v3 }
  0xf4   : > { %v561_v40 = vpop.f32.mrf.mxu2  ;;  %v617_v48 = vpop.f32.mrf.mxu3 }
  0xf5   : > { %v361_v44 = vpop.f32.mrf.mxu0  ;;  %v611_v43 = vadd.f32 %v610_v51, %v561_v40 }
  0xf6   : > { %v411_v46 = vadd.f32 %v410_v26, %v361_v44 }
  0xf8   : > { %v1832_v47 = vpack.c.bf16 %v411_v46, %v409_v45  ;;  %v418_v22 = vpop.f32.mrf.mxu1 }
  0xf9   : > { %1663 = vmatmul.msk.bf16.gmra.mxu3 %vm301_vm1, %v2286_v19 }
  0xfa   : > { %1972 = vst [vmem:[%s2332_s4 + $0x20] sm:$0xff] %v1832_v47  }
  0xfb   : > { %773 = vmatmul.bf16.gmra.mxu1 %v2308_v29 }
  0xfc   : > { %v563_v49 = vpop.f32.mrf.mxu2  ;;  %v620_v3 = vpop.f32.mrf.mxu3 }
  0xfd   : > { %v613_v50 = vadd.f32 %v612_v34, %v563_v49  ;;  %v364_v53 = vpop.f32.mrf.mxu0 }
  0xfe   : > { %v414_v57 = vadd.f32 %v413_v38, %v364_v53 }
  0xff   : > { %v1872_v12 = vpack.c.bf16 %v613_v50, %v611_v43 }
 0x100   : > { %971 = vmatmul.bf16.gmra.mxu0 %v2288_v20  ;;  %v420_v55 = vpop.f32.mrf.mxu1 }
 0x101   : > { %1980 = vst [vmem:[%s2332_s4 + $0x60] sm:$0xff] %v1872_v12   ;;  %1735 = vmatmul.msk.bf16.gmra.mxu2 %vm301_vm1, %v2266_v11 }
 0x104   : > { %v566_v54 = vpop.f32.mrf.mxu2  ;;  %v622_v62 = vpop.f32.mrf.mxu3 }
 0x105   : > { %v366_v56 = vpop.f32.mrf.mxu0  ;;  %v616_v0 = vadd.f32 %v615_v59, %v566_v54 }
 0x106   : > { %v416_v58 = vadd.f32 %v415_v41, %v366_v56 }
 0x108   : > { %v1837_v61 = vpack.c.bf16 %v416_v58, %v414_v57  ;;  %v423_v2 = vpop.f32.mrf.mxu1 }
 0x109   : > { %1664 = vmatmul.msk.bf16.gmra.mxu3 %vm301_vm1, %v2306_v28 }
 0x10a   : > { %1973 = vst [vmem:[%s2332_s4 + $0x28] sm:$0xff] %v1837_v61  }
 0x10b   : > { %778 = vmatmul.bf16.gmra.mxu1 %v2318_v33 }
 0x10c   : > { %v568_v63 = vpop.f32.mrf.mxu2  ;;  %v625_v11 = vpop.f32.mrf.mxu3 }
 0x10d   : > { %v618_v1 = vadd.f32 %v617_v48, %v568_v63  ;;  %v369_v5 = vpop.f32.mrf.mxu0 }
 0x10e   : > { %v419_v42 = vadd.f32 %v418_v22, %v369_v5 }
 0x10f   : > { %v1877_v20 = vpack.c.bf16 %v618_v1, %v616_v0 }
 0x110   : > { %976 = vmatmul.bf16.gmra.mxu0 %v2308_v29  ;;  %v425_v7 = vpop.f32.mrf.mxu1 }
 0x111   : > { %1981 = vst [vmem:[%s2332_s4 + $0x68] sm:$0xff] %v1877_v20   ;;  %1736 = vmatmul.msk.bf16.gmra.mxu2 %vm301_vm1, %v2286_v19 }
 0x114   : > { %v571_v6 = vpop.f32.mrf.mxu2  ;;  %v627_v10 = vpop.f32.mrf.mxu3 }
 0x115   : > { %v371_v52 = vpop.f32.mrf.mxu0  ;;  %v621_v14 = vadd.f32 %v620_v3, %v571_v6 }
 0x116   : > { %v421_v8 = vadd.f32 %v420_v55, %v371_v52 }
 0x118   : > { %v1842_v9 = vpack.c.bf16 %v421_v8, %v419_v42  ;;  %v744_v16 = vpop.f32.mrf.mxu1 }
 0x11a   : > { %1974 = vst [vmem:[%s2332_s4 + $0x30] sm:$0xff] %v1842_v9  }
 0x11c   : > { %v573_v13 = vpop.f32.mrf.mxu2  ;;  %v793_v19 = vpop.f32.mrf.mxu3 }
 0x11d   : > { %v623_v15 = vadd.f32 %v622_v62, %v573_v13  ;;  %v374_v17 = vpop.f32.mrf.mxu0  ;;  %v794_v25 = vadd.f32 %v793_v19, %v744_v16 }
 0x11e   : > { %v424_v24 = vadd.f32 %v423_v2, %v374_v17 }
 0x11f   : > { %v1882_v29 = vpack.c.bf16 %v623_v15, %v621_v14 }
 0x120   : > { %981 = vmatmul.bf16.gmra.mxu0 %v2318_v33  ;;  %v746_v21 = vpop.f32.mrf.mxu1 }
 0x121   : > { %1982 = vst [vmem:[%s2332_s4 + $0x70] sm:$0xff] %v1882_v29   ;;  %1737 = vmatmul.msk.bf16.gmra.mxu2 %vm301_vm1, %v2306_v28 }
 0x124   : > { %v576_v18 = vpop.f32.mrf.mxu2  ;;  %v795_v26 = vpop.f32.mrf.mxu3 }
 0x125   : > { %v376_v23 = vpop.f32.mrf.mxu0  ;;  %v796_v30 = vadd.f32 %v795_v26, %v746_v21  ;;  %v626_v31 = vadd.f32 %v625_v11, %v576_v18 }
 0x126   : > { %v426_v60 = vadd.f32 %v425_v7, %v376_v23 }
 0x127   : > { %v1892_v35 = vpack.c.bf16 %v796_v30, %v794_v25 }
 0x128   : > { %v1847_v51 = vpack.c.bf16 %v426_v60, %v424_v24  ;;  %v749_v33 = vpop.f32.mrf.mxu1 }
 0x129   : > { %1984 = vst [vmem:[%s2332_s4 + $0x80] sm:$0xff] %v1892_v35  }
 0x12a   : > { %1975 = vst [vmem:[%s2332_s4 + $0x38] sm:$0xff] %v1847_v51  }
 0x12c   : > { %v578_v27 = vpop.f32.mrf.mxu2  ;;  %v798_v36 = vpop.f32.mrf.mxu3 }
 0x12d   : > { %v628_v32 = vadd.f32 %v627_v10, %v578_v27  ;;  %v947_v34 = vpop.f32.mrf.mxu0  ;;  %v799_v4 = vadd.f32 %v798_v36, %v749_v33 }
 0x12f   : > { %v1887_v28 = vpack.c.bf16 %v628_v32, %v626_v31 }
 0x130   : > { %v751_v38 = vpop.f32.mrf.mxu1 }
 0x131   : > { %1983 = vst [vmem:[%s2332_s4 + $0x78] sm:$0xff] %v1887_v28  }
 0x134   : > { %v996_v37 = vpop.f32.mrf.mxu2  ;;  %v800_v59 = vpop.f32.mrf.mxu3 }
 0x135   : > { %v949_v39 = vpop.f32.mrf.mxu0  ;;  %v801_v41 = vadd.f32 %v800_v59, %v751_v38  ;;  %v997_v44 = vadd.f32 %v996_v37, %v947_v34 }
 0x137   : > { %v1897_v48 = vpack.c.bf16 %v801_v41, %v799_v4 }
 0x138   : > { %v754_v46 = vpop.f32.mrf.mxu1 }
 0x139   : > { %1985 = vst [vmem:[%s2332_s4 + $0x88] sm:$0xff] %v1897_v48  }
 0x13c   : > { %v998_v40 = vpop.f32.mrf.mxu2  ;;  %v803_v43 = vpop.f32.mrf.mxu3 }
 0x13d   : > { %v999_v45 = vadd.f32 %v998_v40, %v949_v39  ;;  %v952_v47 = vpop.f32.mrf.mxu0  ;;  %v804_v12 = vadd.f32 %v803_v43, %v754_v46 }
 0x13f   : > { %v1932_v49 = vpack.c.bf16 %v999_v45, %v997_v44 }
 0x140   : > { %v756_v22 = vpop.f32.mrf.mxu1 }
 0x141   : > { %1992 = vst [vmem:[%s2332_s4 + $0xc0] sm:$0xff] %v1932_v49  }
 0x144   : > { %v1001_v50 = vpop.f32.mrf.mxu2  ;;  %v805_v3 = vpop.f32.mrf.mxu3 }
 0x145   : > { %v954_v53 = vpop.f32.mrf.mxu0  ;;  %v806_v55 = vadd.f32 %v805_v3, %v756_v22  ;;  %v1002_v56 = vadd.f32 %v1001_v50, %v952_v47 }
 0x147   : > { %v1902_v62 = vpack.c.bf16 %v806_v55, %v804_v12 }
 0x148   : > { %v759_v58 = vpop.f32.mrf.mxu1 }
 0x149   : > { %1986 = vst [vmem:[%s2332_s4 + $0x90] sm:$0xff] %v1902_v62  }
 0x14c   : > { %v1003_v54 = vpop.f32.mrf.mxu2  ;;  %v808_v0 = vpop.f32.mrf.mxu3 }
 0x14d   : > { %v1004_v57 = vadd.f32 %v1003_v54, %v954_v53  ;;  %v957_v61 = vpop.f32.mrf.mxu0  ;;  %v809_v20 = vadd.f32 %v808_v0, %v759_v58 }
 0x14f   : > { %v1937_v63 = vpack.c.bf16 %v1004_v57, %v1002_v56 }
 0x150   : > { %v761_v2 = vpop.f32.mrf.mxu1 }
 0x151   : > { %1993 = vst [vmem:[%s2332_s4 + $0xc8] sm:$0xff] %v1937_v63  }
 0x154   : > { %v1006_v1 = vpop.f32.mrf.mxu2  ;;  %v810_v11 = vpop.f32.mrf.mxu3 }
 0x155   : > { %v959_v5 = vpop.f32.mrf.mxu0  ;;  %v811_v7 = vadd.f32 %v810_v11, %v761_v2  ;;  %v1007_v52 = vadd.f32 %v1006_v1, %v957_v61 }
 0x157   : > { %v1907_v10 = vpack.c.bf16 %v811_v7, %v809_v20 }
 0x158   : > { %v764_v8 = vpop.f32.mrf.mxu1 }
 0x159   : > { %1987 = vst [vmem:[%s2332_s4 + $0x98] sm:$0xff] %v1907_v10   ;;  %v1099_v10 = vld [vmem:[%s2332_s4 + $0x8] sm:$0xff] (%p2088_p4)  }
 0x15a   : > { %1100 = vst [vmem:[%s2413_s7 + $0x8] sm:$0xff] (%p2088_p4), %v1099_v10  }
 0x15c   : > { %v1008_v6 = vpop.f32.mrf.mxu2  ;;  %v813_v14 = vpop.f32.mrf.mxu3 }
 0x15d   : > { %v1009_v42 = vadd.f32 %v1008_v6, %v959_v5  ;;  %v962_v9 = vpop.f32.mrf.mxu0  ;;  %v814_v29 = vadd.f32 %v813_v14, %v764_v8  ;;  %v1107_v14 = vld [vmem:[%s2332_s4 + $0x18] sm:$0xff] (%p2088_p4)  }
 0x15e   : > { %1108 = vst [vmem:[%s2413_s7 + $0x18] sm:$0xff] (%p2088_p4), %v1107_v14  }
 0x15f   : > { %v1942_v13 = vpack.c.bf16 %v1009_v42, %v1007_v52 }
 0x160   : > { %v766_v16 = vpop.f32.mrf.mxu1 }
 0x161   : > { %1994 = vst [vmem:[%s2332_s4 + $0xd0] sm:$0xff] %v1942_v13   ;;  %v1103_v13 = vld [vmem:[%s2332_s4 + $0x10] sm:$0xff] (%p2088_p4)  }
 0x162   : > { %1104 = vst [vmem:[%s2413_s7 + $0x10] sm:$0xff] (%p2088_p4), %v1103_v13  }
 0x164   : > { %v1011_v15 = vpop.f32.mrf.mxu2  ;;  %v815_v19 = vpop.f32.mrf.mxu3 }
 0x165   : > { %v964_v17 = vpop.f32.mrf.mxu0  ;;  %v816_v21 = vadd.f32 %v815_v19, %v766_v16  ;;  %v1012_v23 = vadd.f32 %v1011_v15, %v962_v9  ;;  %v1095_v9 = vld [vmem:[%s2332_s4] sm:$0xff] (%p2088_p4)   ;;  %v1115_v16 = vld [vmem:[%s2332_s4 + $0x28] sm:$0xff] (%p2088_p4)  }
 0x166   : > { %1096 = vst [vmem:[%s2413_s7] sm:$0xff] (%p2088_p4), %v1095_v9   ;;  %v1111_v15 = vld [vmem:[%s2332_s4 + $0x20] sm:$0xff] (%p2088_p4)  }
 0x167   : > { %v1912_v25 = vpack.c.bf16 %v816_v21, %v814_v29  ;;  %1112 = vst [vmem:[%s2413_s7 + $0x20] sm:$0xff] (%p2088_p4), %v1111_v15   ;;  %v1123_v29 = vld [vmem:[%s2332_s4 + $0x38] sm:$0xff] (%p2088_p4)   ;;  %v1127_v19 = vld [vmem:[%s2332_s4 + $0x40] sm:$0xff] (%p2088_p4)   ;;  %v1135_v21 = vld [vmem:[%s2332_s4 + $0x50] sm:$0xff] (%p2088_p4)  }
 0x168   : > { %v769_v60 = vpop.f32.mrf.mxu1  ;;  %1116 = vst [vmem:[%s2413_s7 + $0x28] sm:$0xff] (%p2088_p4), %v1115_v16  }
 0x169   : > { %1988 = vst [vmem:[%s2332_s4 + $0xa0] sm:$0xff] %v1912_v25   ;;  %v1155_v25 = vld [vmem:[%s2332_s4 + $0x78] sm:$0xff] (%p2088_p4)  }
 0x16a   : > { %1124 = vst [vmem:[%s2413_s7 + $0x38] sm:$0xff] (%p2088_p4), %v1123_v29  }
 0x16b   : > { %1128 = vst [vmem:[%s2413_s7 + $0x80] sm:$0xff] (%p2088_p4), %v1127_v19  }
 0x16c   : > { %v1013_v18 = vpop.f32.mrf.mxu2  ;;  %v818_v27 = vpop.f32.mrf.mxu3  ;;  %1136 = vst [vmem:[%s2413_s7 + $0x90] sm:$0xff] (%p2088_p4), %v1135_v21  }
 0x16d   : > { %v1014_v24 = vadd.f32 %v1013_v18, %v964_v17  ;;  %v967_v51 = vpop.f32.mrf.mxu0  ;;  %v819_v33 = vadd.f32 %v818_v27, %v769_v60  ;;  %v1119_v17 = vld [vmem:[%s2332_s4 + $0x30] sm:$0xff] (%p2088_p4)   ;;  %v1131_v18 = vld [vmem:[%s2332_s4 + $0x48] sm:$0xff] (%p2088_p4)   ;;  %1156 = vst [vmem:[%s2413_s7 + $0xb8] sm:$0xff] (%p2088_p4), %v1155_v25  }
 0x16e   : > { %1120 = vst [vmem:[%s2413_s7 + $0x30] sm:$0xff] (%p2088_p4), %v1119_v17   ;;  %v1147_v60 = vld [vmem:[%s2332_s4 + $0x68] sm:$0xff] (%p2088_p4)  }
 0x16f   : > { %v1947_v26 = vpack.c.bf16 %v1014_v24, %v1012_v23  ;;  %v1139_v23 = vld [vmem:[%s2332_s4 + $0x58] sm:$0xff] (%p2088_p4)   ;;  %1132 = vst [vmem:[%s2413_s7 + $0x88] sm:$0xff] (%p2088_p4), %v1131_v18   ;;  %v1143_v24 = vld [vmem:[%s2332_s4 + $0x60] sm:$0xff] (%p2088_p4)   ;;  %v1163_v27 = vld [vmem:[%s2332_s4 + $0x88] sm:$0xff] (%p2088_p4)  }
 0x170   : > { %v771_v31 = vpop.f32.mrf.mxu1  ;;  %1140 = vst [vmem:[%s2413_s7 + $0x98] sm:$0xff] (%p2088_p4), %v1139_v23  }
 0x171   : > { %1995 = vst [vmem:[%s2332_s4 + $0xd8] sm:$0xff] %v1947_v26   ;;  %v1159_v26 = vld [vmem:[%s2332_s4 + $0x80] sm:$0xff] (%p2088_p4)  }
 0x172   : > { %1144 = vst [vmem:[%s2413_s7 + $0xa0] sm:$0xff] (%p2088_p4), %v1143_v24  }
 0x173   : > { %1148 = vst [vmem:[%s2413_s7 + $0xa8] sm:$0xff] (%p2088_p4), %v1147_v60  }
 0x174   : > { %v1016_v30 = vpop.f32.mrf.mxu2  ;;  %v820_v34 = vpop.f32.mrf.mxu3  ;;  %1160 = vst [vmem:[%s2413_s7 + $0x100] sm:$0xff] (%p2088_p4), %v1159_v26  }
 0x175   : > { %v969_v32 = vpop.f32.mrf.mxu0  ;;  %v821_v28 = vadd.f32 %v820_v34, %v771_v31  ;;  %v1017_v36 = vadd.f32 %v1016_v30, %v967_v51  ;;  %v1151_v51 = vld [vmem:[%s2332_s4 + $0x70] sm:$0xff] (%p2088_p4)   ;;  %v1171_v31 = vld [vmem:[%s2332_s4 + $0x98] sm:$0xff] (%p2088_p4)   ;;  %1164 = vst [vmem:[%s2413_s7 + $0x108] sm:$0xff] (%p2088_p4), %v1163_v27  }
 0x176   : > { %1152 = vst [vmem:[%s2413_s7 + $0xb0] sm:$0xff] (%p2088_p4), %v1151_v51   ;;  %v1167_v30 = vld [vmem:[%s2332_s4 + $0x90] sm:$0xff] (%p2088_p4)  }
 0x177   : > { %v1917_v4 = vpack.c.bf16 %v821_v28, %v819_v33  ;;  %1168 = vst [vmem:[%s2413_s7 + $0x110] sm:$0xff] (%p2088_p4), %v1167_v30   ;;  %v1191_v28 = vld [vmem:[%s2332_s4 + $0xc0] sm:$0xff] (%p2088_p4)  }
 0x178   : > { %v774_v38 = vpop.f32.mrf.mxu1  ;;  %1172 = vst [vmem:[%s2413_s7 + $0x118] sm:$0xff] (%p2088_p4), %v1171_v31  }
 0x179   : > { %1989 = vst [vmem:[%s2332_s4 + $0xa8] sm:$0xff] %v1917_v4  }
 0x17a   : > { %1192 = vst [vmem:[%s2413_s7 + $0x180] sm:$0xff] (%p2088_p4), %v1191_v28  }
 0x17c   : > { %v1018_v35 = vpop.f32.mrf.mxu2  ;;  %v823_v40 = vpop.f32.mrf.mxu3 }
 0x17d   : > { %v1019_v37 = vadd.f32 %v1018_v35, %v969_v32  ;;  %v972_v39 = vpop.f32.mrf.mxu0  ;;  %v824_v46 = vadd.f32 %v823_v40, %v774_v38  ;;  %v1175_v32 = vld [vmem:[%s2332_s4 + $0xa0] sm:$0xff] (%p2088_p4)   ;;  %v1203_v38 = vld [vmem:[%s2332_s4 + $0xd8] sm:$0xff] (%p2088_p4)  }
 0x17e   : > { %1176 = vst [vmem:[%s2413_s7 + $0x120] sm:$0xff] (%p2088_p4), %v1175_v32  }
 0x17f   : > { %v1952_v59 = vpack.c.bf16 %v1019_v37, %v1017_v36  ;;  %v1195_v36 = vld [vmem:[%s2332_s4 + $0xc8] sm:$0xff] (%p2088_p4)   ;;  %v1199_v37 = vld [vmem:[%s2332_s4 + $0xd0] sm:$0xff] (%p2088_p4)   ;;  %1204 = vst [vmem:[%s2413_s7 + $0x198] sm:$0xff] (%p2088_p4), %v1203_v38  }
 0x180   : > { %v776_v44 = vpop.f32.mrf.mxu1  ;;  %v1179_v33 = vld [vmem:[%s2332_s4 + $0xa8] sm:$0xff] (%p2088_p4)   ;;  %1196 = vst [vmem:[%s2413_s7 + $0x188] sm:$0xff] (%p2088_p4), %v1195_v36  }
 0x181   : > { %1996 = vst [vmem:[%s2332_s4 + $0xe0] sm:$0xff] %v1952_v59  }
 0x182   : > { %1180 = vst [vmem:[%s2413_s7 + $0x128] sm:$0xff] (%p2088_p4), %v1179_v33  }
 0x183   : > { %1200 = vst [vmem:[%s2413_s7 + $0x190] sm:$0xff] (%p2088_p4), %v1199_v37  }
 0x184   : > { %v1021_v41 = vpop.f32.mrf.mxu2  ;;  %v825_v47 = vpop.f32.mrf.mxu3 }
 0x185   : > { %v974_v45 = vpop.f32.mrf.mxu0  ;;  %v826_v49 = vadd.f32 %v825_v47, %v776_v44  ;;  %v1022_v43 = vadd.f32 %v1021_v41, %v972_v39 }
 0x187   : > { %v1922_v53 = vpack.c.bf16 %v826_v49, %v824_v46 }
 0x188   : > { %v779_v3 = vpop.f32.mrf.mxu1  ;;  %v1207_v39 = vld [vmem:[%s2332_s4 + $0xe0] sm:$0xff] (%p2088_p4)  }
 0x189   : > { %1990 = vst [vmem:[%s2332_s4 + $0xb0] sm:$0xff] %v1922_v53  }
 0x18a   : > { %1208 = vst [vmem:[%s2413_s7 + $0x1a0] sm:$0xff] (%p2088_p4), %v1207_v39  }
 0x18c   : > { %v1023_v48 = vpop.f32.mrf.mxu2  ;;  %v828_v54 = vpop.f32.mrf.mxu3 }
 0x18d   : > { %v1024_v50 = vadd.f32 %v1023_v48, %v974_v45  ;;  %v977_v22 = vpop.f32.mrf.mxu0  ;;  %v829_v58 = vadd.f32 %v828_v54, %v779_v3 }
 0x18f   : > { %v1957_v12 = vpack.c.bf16 %v1024_v50, %v1022_v43 }
 0x190   : > { %v781_v57 = vpop.f32.mrf.mxu1  ;;  %v1183_v34 = vld [vmem:[%s2332_s4 + $0xb0] sm:$0xff] (%p2088_p4)  }
 0x191   : > { %1997 = vst [vmem:[%s2332_s4 + $0xe8] sm:$0xff] %v1957_v12  }
 0x192   : > { %1184 = vst [vmem:[%s2413_s7 + $0x130] sm:$0xff] (%p2088_p4), %v1183_v34  }
 0x194   : > { %v1026_v55 = vpop.f32.mrf.mxu2  ;;  %v830_v61 = vpop.f32.mrf.mxu3 }
 0x195   : > { %v979_v56 = vpop.f32.mrf.mxu0  ;;  %v831_v63 = vadd.f32 %v830_v61, %v781_v57  ;;  %v1027_v0 = vadd.f32 %v1026_v55, %v977_v22 }
 0x197   : > { %v1927_v2 = vpack.c.bf16 %v831_v63, %v829_v58 }
 0x198   : > { %v1211_v4 = vld [vmem:[%s2332_s4 + $0xe8] sm:$0xff] (%p2088_p4)  }
 0x199   : > { %1991 = vst [vmem:[%s2332_s4 + $0xb8] sm:$0xff] %v1927_v2  }
 0x19a   : > { %1212 = vst [vmem:[%s2413_s7 + $0x1a8] sm:$0xff] (%p2088_p4), %v1211_v4  }
 0x19c   : > { %v1028_v62 = vpop.f32.mrf.mxu2 }
 0x19d   : > { %v1029_v1 = vadd.f32 %v1028_v62, %v979_v56  ;;  %v982_v20 = vpop.f32.mrf.mxu0 }
 0x19f   : > { %v1962_v5 = vpack.c.bf16 %v1029_v1, %v1027_v0 }
 0x1a0   : > { %v1187_v35 = vld [vmem:[%s2332_s4 + $0xb8] sm:$0xff] (%p2088_p4)  }
 0x1a1   : > { %1998 = vst [vmem:[%s2332_s4 + $0xf0] sm:$0xff] %v1962_v5  }
 0x1a2   : > { %1188 = vst [vmem:[%s2413_s7 + $0x138] sm:$0xff] (%p2088_p4), %v1187_v35  }
 0x1a4   : > { %v1031_v11 = vpop.f32.mrf.mxu2 }
 0x1a5   : > { %v984_v6 = vpop.f32.mrf.mxu0  ;;  %v1032_v52 = vadd.f32 %v1031_v11, %v982_v20 }
 0x1a8   : > { %v1215_v59 = vld [vmem:[%s2332_s4 + $0xf0] sm:$0xff] (%p2088_p4)  }
 0x1a9   : > { %1216 = vst [vmem:[%s2413_s7 + $0x1b0] sm:$0xff] (%p2088_p4), %v1215_v59  }
 0x1ac   : > { %v1033_v7 = vpop.f32.mrf.mxu2 }
 0x1ad   : > { %v1034_v42 = vadd.f32 %v1033_v7, %v984_v6  ;;  %1075 = sbr.rel (!%p2088_p4) target bundleno = 442 (0x1ba), region = 32 }
 0x1af   : > { %v1967_v8 = vpack.c.bf16 %v1034_v42, %v1032_v52 }
 0x1b1   : > { %1999 = vst [vmem:[%s2332_s4 + $0xf8] sm:$0xff] %v1967_v8  }
 0x1b8   : > { %v1219_v40 = vld [vmem:[%s2332_s4 + $0xf8] sm:$0xff]  }
 0x1b9   : > { %1220 = vst [vmem:[%s2413_s7 + $0x1b8] sm:$0xff] %v1219_v40  }
 0x1ba PF: > { %p9_p8 = scmp.ge.s32.totalorder %s2078_s13, 4   ;;  %s2491_s9 = smov %s2042_s10 }
 0x1bb   : > { %s2492_s10 = smov %s2086_s16  ;;  %s2493_s11 = smov %s2078_s13 }
 0x1bc   :  { %11 = sbr.rel (!%p9_p8) target bundleno = 2 (0x2), region = 105 }

// kernel: trans_conv_layer_gat.3
= control target key start
LH: loop header
LB: loop body
LE: loop exit
PB: predicated region body
PF: predicated region fallthrough
CT: control target
= control target key end

     0   :  { %s8072_s0 = inlined_call_operand.vmem [shape: bf16[256,136], index: 0, kind: input, shape index: {}]   ;;  %s8073_s1 = inlined_call_operand.vmem [shape: bf16[256,136], index: 1, kind: input, shape index: {}]   ;;  %s8074_s2 = inlined_call_operand.vmem [shape: bf16[4,256,128], index: 2, kind: input, shape index: {}]   ;;  %s8075_s3 = inlined_call_operand.vmem [shape: bf16[4,136,136], index: 3, kind: input, shape index: {}]   ;;  %s8076_s4 = inlined_call_operand.vmem [shape: f32[4,256,128], index: 4, kind: output, shape index: {}]  }
   0x1   :  { %8077 = sst [smem:[#allocation6_spill]] %s8074_s2 }
   0x2   :  { %s6088_s15 = smov 0   ;;  %s6090_s16 = smov 0  }
   0x3   :  { %s6092_s17 = smov 0   ;;  %s6094_s18 = smov 0  }
   0x4   :  { %s6096_s19 = smov 0   ;;  %s6098_s20 = smov 0  }
   0x5   :  { %s6100_s21 = smov 0   ;;  %s6102_s22 = smov 0  }
   0x6   :  { %s6104_s23 = smov 0  }
   0x7 LB: > { %s4480_s24 = sadd.s32 4294967295, %s6060_s23   ;;  %s23_s25 = sadd.s32 1, %s6052_s21  ;;  %s6060_s23 = sphi %s6104_s23, %s14_s23   ;;  %s6056_s22 = sphi %s6102_s22, %s8100_s22   ;;  %s6052_s21 = sphi %s6100_s21, %s8099_s21   ;;  %s6048_s20 = sphi %s6098_s20, %s8098_s20   ;;  %s6044_s19 = sphi %s6096_s19, %s8097_s19   ;;  %s6040_s18 = sphi %s6094_s18, %s8096_s18   ;;  %s6036_s17 = sphi %s6092_s17, %s8095_s17   ;;  %s6032_s16 = sphi %s6090_s16, %s8094_s16   ;;  %s6028_s15 = sphi %s6088_s15, %s8093_s15  }
   0x8   : > { %p24_p0 = scmp.ge.s32.totalorder %s23_s25, 2  ;;  %s26_s26 = sadd.s32 1, %s6056_s22 }
   0x9   : > { %s85_s27 = sadd.s32 1, %s6040_s18  ;;  %p92_p1 = scmp.ne.s32.totalorder %s6040_s18, %s6036_s17 }
   0xa   : > { %s8102_s25 = smov (%p24_p0, %s23_s25), 0  ;;  %s8104_s26 = smov (!%p24_p0, %s26_s26), %s6056_s22 }
   0xb   : > { %s82_s28 = ssub.s32 %s6052_s21, %s8102_s25  ;;  %p93_p2 = scmp.eq.s32.totalorder %s6060_s23, 0 }
   0xc   : > { %p28_p3 = scmp.ge.s32.totalorder %s8104_s26, 2  ;;  %p83_p4 = scmp.eq.s32.totalorder %s82_s28, 0 }
   0xd   : > { %p94_p5 = por %p93_p2, %p92_p1  ;;  %s132_s29 = sadd.s32 1, %s6032_s16 }
   0xe   : > { %s8106_s26 = smov (%p28_p3, %s8104_s26), 0  ;;  %p142_p6 = scmp.ne.s32.totalorder %s6032_s16, %s6028_s15 }
   0xf   : > { %s6149_s30 = scalar_select %p83_p4, %s6040_s18, %s85_s27  }
  0x10   : > { %s129_s5 = ssub.s32 %s6056_s22, %s8106_s26  ;;  %p143_p8 = scmp.eq.s32.totalorder %s4480_s24, 3 }
  0x11   : > { %p130_p7 = scmp.eq.s32.totalorder %s129_s5, 0  ;;  %p4483_p10 = scmp.ge.s32.totalorder %s6060_s23, 4 }
  0x12   : > { %p6158_p9 = por %p143_p8, %p142_p6 }
  0x13   : > { %s6156_s6 = scalar_select %p130_p7, %s6032_s16, %s132_s29  }
  0x14   : > { %168 = sbr.rel (%p4483_p10) target bundleno = 67 (0x43), region = 20 }
  0x19   : > { %191 = sbr.rel (!%p94_p5) target bundleno = 67 (0x43), region = 32  ;;  %s193_s8 = sand.u32 (%p94_p5), 1, %s6040_s18  }
  0x1a   : > { %s5561_s9 = sshll.u32 (%p94_p5), %s6052_s21, 6  ;;  %s4484_s10 = sshll.u32 (%p94_p5), %s193_s8, 8 }
  0x1b   : > { %s8079_s2 = sld [smem:[#allocation6_spill]] (%p94_p5)  ;;  %s6173_s14 = scalar_lea.vmem (%p94_p5), [#allocation3], %s4484_s10 }
  0x21   : > { %s6168_s13 = scalar_lea.vmem %s8079_s2, %s5561_s9 }
  0x22   : > { %v215_v0 = vld [vmem:[%s6168_s13] sm:$0xff]   ;;  %v219_v1 = vld [vmem:[%s6168_s13 + $0x8] sm:$0xff]   ;;  %v223_v2 = vld [vmem:[%s6168_s13 + $0x10] sm:$0xff]  }
  0x23   : > { %216 = vst [vmem:[%s6173_s14] sm:$0xff] %v215_v0   ;;  %v227_v3 = vld [vmem:[%s6168_s13 + $0x18] sm:$0xff]   ;;  %v231_v4 = vld [vmem:[%s6168_s13 + $0x20] sm:$0xff]   ;;  %v235_v5 = vld [vmem:[%s6168_s13 + $0x28] sm:$0xff]  }
  0x24   : > { %220 = vst [vmem:[%s6173_s14 + $0x8] sm:$0xff] %v219_v1   ;;  %v239_v6 = vld [vmem:[%s6168_s13 + $0x30] sm:$0xff]   ;;  %v243_v7 = vld [vmem:[%s6168_s13 + $0x38] sm:$0xff]   ;;  %v247_v8 = vld [vmem:[%s6168_s13 + $0x80] sm:$0xff]  }
  0x25   : > { %224 = vst [vmem:[%s6173_s14 + $0x10] sm:$0xff] %v223_v2   ;;  %v251_v9 = vld [vmem:[%s6168_s13 + $0x88] sm:$0xff]   ;;  %v255_v10 = vld [vmem:[%s6168_s13 + $0x90] sm:$0xff]   ;;  %v259_v11 = vld [vmem:[%s6168_s13 + $0x98] sm:$0xff]  }
  0x26   : > { %228 = vst [vmem:[%s6173_s14 + $0x18] sm:$0xff] %v227_v3   ;;  %v263_v12 = vld [vmem:[%s6168_s13 + $0xa0] sm:$0xff]   ;;  %v267_v13 = vld [vmem:[%s6168_s13 + $0xa8] sm:$0xff]   ;;  %v271_v14 = vld [vmem:[%s6168_s13 + $0xb0] sm:$0xff]  }
  0x27   : > { %232 = vst [vmem:[%s6173_s14 + $0x20] sm:$0xff] %v231_v4   ;;  %v275_v15 = vld [vmem:[%s6168_s13 + $0xb8] sm:$0xff]   ;;  %v279_v16 = vld [vmem:[%s6168_s13 + $0x100] sm:$0xff]   ;;  %v283_v17 = vld [vmem:[%s6168_s13 + $0x108] sm:$0xff]  }
  0x28   : > { %236 = vst [vmem:[%s6173_s14 + $0x28] sm:$0xff] %v235_v5   ;;  %v287_v18 = vld [vmem:[%s6168_s13 + $0x110] sm:$0xff]   ;;  %v291_v19 = vld [vmem:[%s6168_s13 + $0x118] sm:$0xff]   ;;  %v295_v20 = vld [vmem:[%s6168_s13 + $0x120] sm:$0xff]  }
  0x29   : > { %240 = vst [vmem:[%s6173_s14 + $0x30] sm:$0xff] %v239_v6   ;;  %v299_v21 = vld [vmem:[%s6168_s13 + $0x128] sm:$0xff]   ;;  %v303_v22 = vld [vmem:[%s6168_s13 + $0x130] sm:$0xff]   ;;  %v307_v23 = vld [vmem:[%s6168_s13 + $0x138] sm:$0xff]  }
  0x2a   : > { %244 = vst [vmem:[%s6173_s14 + $0x38] sm:$0xff] %v243_v7   ;;  %v311_v24 = vld [vmem:[%s6168_s13 + $0x180] sm:$0xff]   ;;  %v315_v25 = vld [vmem:[%s6168_s13 + $0x188] sm:$0xff]   ;;  %v319_v26 = vld [vmem:[%s6168_s13 + $0x190] sm:$0xff]  }
  0x2b   : > { %248 = vst [vmem:[%s6173_s14 + $0x40] sm:$0xff] %v247_v8   ;;  %v323_v27 = vld [vmem:[%s6168_s13 + $0x198] sm:$0xff]   ;;  %v327_v28 = vld [vmem:[%s6168_s13 + $0x1a0] sm:$0xff]   ;;  %v331_v29 = vld [vmem:[%s6168_s13 + $0x1a8] sm:$0xff]  }
  0x2c   : > { %252 = vst [vmem:[%s6173_s14 + $0x48] sm:$0xff] %v251_v9   ;;  %v335_v30 = vld [vmem:[%s6168_s13 + $0x1b0] sm:$0xff]   ;;  %v339_v31 = vld [vmem:[%s6168_s13 + $0x1b8] sm:$0xff]  }
  0x2d   : > { %256 = vst [vmem:[%s6173_s14 + $0x50] sm:$0xff] %v255_v10  }
  0x2e   : > { %260 = vst [vmem:[%s6173_s14 + $0x58] sm:$0xff] %v259_v11  }
  0x2f   : > { %264 = vst [vmem:[%s6173_s14 + $0x60] sm:$0xff] %v263_v12  }
  0x30   : > { %268 = vst [vmem:[%s6173_s14 + $0x68] sm:$0xff] %v267_v13  }
  0x31   : > { %272 = vst [vmem:[%s6173_s14 + $0x70] sm:$0xff] %v271_v14  }
  0x32   : > { %276 = vst [vmem:[%s6173_s14 + $0x78] sm:$0xff] %v275_v15  }
  0x33   : > { %280 = vst [vmem:[%s6173_s14 + $0x80] sm:$0xff] %v279_v16  }
  0x34   : > { %284 = vst [vmem:[%s6173_s14 + $0x88] sm:$0xff] %v283_v17  }
  0x35   : > { %288 = vst [vmem:[%s6173_s14 + $0x90] sm:$0xff] %v287_v18  }
  0x36   : > { %292 = vst [vmem:[%s6173_s14 + $0x98] sm:$0xff] %v291_v19  }
  0x37   : > { %296 = vst [vmem:[%s6173_s14 + $0xa0] sm:$0xff] %v295_v20  }
  0x38   : > { %300 = vst [vmem:[%s6173_s14 + $0xa8] sm:$0xff] %v299_v21  }
  0x39   : > { %304 = vst [vmem:[%s6173_s14 + $0xb0] sm:$0xff] %v303_v22  }
  0x3a   : > { %308 = vst [vmem:[%s6173_s14 + $0xb8] sm:$0xff] %v307_v23  }
  0x3b   : > { %312 = vst [vmem:[%s6173_s14 + $0xc0] sm:$0xff] %v311_v24  }
  0x3c   : > { %316 = vst [vmem:[%s6173_s14 + $0xc8] sm:$0xff] %v315_v25  }
  0x3d   : > { %320 = vst [vmem:[%s6173_s14 + $0xd0] sm:$0xff] %v319_v26  }
  0x3e   : > { %324 = vst [vmem:[%s6173_s14 + $0xd8] sm:$0xff] %v323_v27  }
  0x3f   : > { %328 = vst [vmem:[%s6173_s14 + $0xe0] sm:$0xff] %v327_v28  }
  0x40   : > { %332 = vst [vmem:[%s6173_s14 + $0xe8] sm:$0xff] %v331_v29  }
  0x41   : > { %336 = vst [vmem:[%s6173_s14 + $0xf0] sm:$0xff] %v335_v30  }
  0x42   : > { %340 = vst [vmem:[%s6173_s14 + $0xf8] sm:$0xff] %v339_v31  }
  0x43 PF: > { %p4487_p11 = scmp.ge.s32.totalorder %s6060_s23, 1  ;;  %p493_p12 = scmp.lt.s32.totalorder %s6060_s23, 5 }
  0x45   : > { %p494_p13 = pnand %p4487_p11, %p493_p12 }
  0x47   : > { %497 = sbr.rel (%p494_p13) target bundleno = 1437 (0x59d), region = 73 }
  0x4c   : > { %s500_s24 = sand.u32 1, %s6036_s17   ;;  %s533_s27 = sand.u32 1, %s6028_s15  }
  0x4d   : > { %s4488_s28 = sshll.u32 %s500_s24, 8  ;;  %s4489_s29 = sshll.u32 %s533_s27, 9 }
  0x4e   : > { %s4490_s5 = sshll.u32 %s6048_s20, 4  ;;  %s4493_s8 = sshll.u32 %s6044_s19, 4 }
  0x4f   : > { %p537_p0 = scmp.lt.s32.totalorder %s4490_s5, 31  ;;  %p544_p1 = scmp.lt.s32.totalorder %s4493_s8, 31 }
  0x50   : > { %s6252_s15 = scalar_lea.vmem [#allocation3], %s4488_s28  ;;  %s6254_s24 = scalar_lea.vmem [#allocation4], %s4489_s29 }
  0x51   : > { %s8108_s5 = smov (!%p537_p0, %s4490_s5), 31  ;;  %s8110_s8 = smov (!%p544_p1, %s4493_s8), 31 }
  0x52   : > { %s5562_s9 = sshll.u32 %s8108_s5, 3  ;;  %s5563_s13 = sshll.u32 %s8110_s8, 3 }
  0x53   : > { %s6245_s12 = scalar_lea.vmem %s8072_s0, %s5562_s9  ;;  %s6250_s17 = scalar_lea.vmem %s8073_s1, %s5563_s13 }
  0x54   : > { %p4496_p2 = scmp.ne.s32.totalorder %s6044_s19, 0 }
  0x56   : > { %556 = sbr.rel (%p4496_p2) target bundleno = 767 (0x2ff), region = 81 }
  0x5b   : > { %v4619_v32 = vld [vmem:[%s8075_s3 + $0x70] sm:$0xf]  ;;  %v5595_v33 = vld [vmem:[%s8075_s3 + $0x74] sm:$0xf0]  ;;  %v5594_v34 = vld [vmem:[%s8075_s3 + $0x74] sm:$0xf] }
  0x5c   : > { %v4620_v35 = vor.u32 %v5595_v33, %v4619_v32  ;;  %v4621_v36 = vld [vmem:[%s8075_s3 + $0x78] sm:$0xf0]  ;;  %v4611_v37 = vld [vmem:[%s8075_s3 + $0x60] sm:$0xf]  ;;  %v5593_v38 = vld [vmem:[%s8075_s3 + $0x64] sm:$0xf0] }
  0x5d   : > { %v4624_v39 = vor.u32 %v5594_v34, %v4621_v36  ;;  %v5592_v40 = vld [vmem:[%s8075_s3 + $0x64] sm:$0xf]  ;;  %v4613_v41 = vld [vmem:[%s8075_s3 + $0x68] sm:$0xf0]  ;;  %v4612_v42 = vor.u32 %v5593_v38, %v4611_v37  ;;  %v4603_v44 = vld [vmem:[%s8075_s3 + $0x50] sm:$0xf] }
  0x5e   : > { %779 = vmatpush.bf16.msra.mxu0 %v4620_v35  ;;  %v4616_v43 = vor.u32 %v5592_v40, %v4613_v41  ;;  %v5591_v45 = vld [vmem:[%s8075_s3 + $0x54] sm:$0xf0]  ;;  %v5590_v46 = vld [vmem:[%s8075_s3 + $0x54] sm:$0xf]  ;;  %v4605_v47 = vld [vmem:[%s8075_s3 + $0x58] sm:$0xf0] }
  0x5f   : > { %877 = vmatpush.bf16.msra.mxu2 %v4624_v39  ;;  %v4604_v48 = vor.u32 %v5591_v45, %v4603_v44  ;;  %v4608_v49 = vor.u32 %v5590_v46, %v4605_v47  ;;  %v4595_v50 = vld [vmem:[%s8075_s3 + $0x40] sm:$0xf]  ;;  %v5589_v51 = vld [vmem:[%s8075_s3 + $0x44] sm:$0xf0]  ;;  %v5588_v53 = vld [vmem:[%s8075_s3 + $0x44] sm:$0xf] }
  0x60   : > { %v589_v52 = vld [vmem:[%s8075_s3 + $0x80] sm:$0xff]  ;;  %v4597_v54 = vld [vmem:[%s8075_s3 + $0x48] sm:$0xf0]  ;;  %vm772_vm0 = vcmask 1043456   ;;  %v4596_v61 = vor.u32 %v5589_v51, %v4595_v50  ;;  %v4587_v62 = vld [vmem:[%s8075_s3 + $0x30] sm:$0xf] }
  0x61   : > { %v712_v55 = vunpack.c.h.b16 %v589_v52  ;;  %v711_v56 = vunpack.c.l.b16 %v589_v52  ;;  %v4657_v57 = vld [vmem:[%s8075_s3 + $0x108] sm:$0xff]  ;;  %v5564_v58 = vld [vmem:[%s6245_s12 + $0x4] sm:$0xf]  ;;  %v4600_v1 = vor.u32 %v5588_v53, %v4597_v54  ;;  %v5587_v2 = vld [vmem:[%s8075_s3 + $0x34] sm:$0xf0]  ;;  %vm747_vm1 = vcmask 64512  }
  0x62   : > { %780 = vmatpush.bf16.msra.mxu0 %v4612_v42  ;;  %v4501_v59 = vld [vmem:[%s6245_s12 + $0x8] sm:$0xf0]  ;;  %v1076_v60 = vunpack.c.l.b16 %v4657_v57  ;;  %v5586_v3 = vld [vmem:[%s8075_s3 + $0x34] sm:$0xf]  ;;  %v4716_v5 = vld [vmem:[%s8075_s3 + $0xf8] sm:$0xf]  ;;  %v4588_v13 = vor.u32 %v5587_v2, %v4587_v62  ;;  %v1077_v28 = vunpack.c.h.b16 %v4657_v57 }
  0x63   : > { %878 = vmatpush.bf16.msra.mxu2 %v4616_v43  ;;  %v730_v63 = vpack.c.b16 %v712_v55, %v712_v55  ;;  %v729_v0 = vpack.c.b16 %v711_v56, %v711_v56  ;;  %v4589_v6 = vld [vmem:[%s8075_s3 + $0x38] sm:$0xf0]  ;;  %v6329_v8 = vor.u32 %v5564_v58, %v4501_v59  ;;  %v5611_v10 = vld [vmem:[%s8075_s3 + $0xfc] sm:$0xf0]  ;;  %v5585_v16 = vld [vmem:[%s8075_s3 + $0x24] sm:$0xf0] }
  0x64   : > { %v1094_v4 = vpack.c.b16 %v1076_v60, %v1076_v60  ;;  %v4717_v12 = vor.u32 %v5611_v10, %v4716_v5  ;;  %v4592_v14 = vor.u32 %v5586_v3, %v4589_v6  ;;  %v4579_v15 = vld [vmem:[%s8075_s3 + $0x20] sm:$0xf]  ;;  %v5584_v17 = vld [vmem:[%s8075_s3 + $0x24] sm:$0xf]  ;;  %v4581_v18 = vld [vmem:[%s8075_s3 + $0x28] sm:$0xf0]  ;;  %v1095_v37 = vpack.c.b16 %v1077_v28, %v1077_v28 }
  0x65   : > { %v777_v7 = vsel %vm772_vm0, %v730_v63, 0  ;;  %v774_v9 = vsel %vm772_vm0, %v729_v0, 0  ;;  %v4580_v19 = vor.u32 %v5585_v16, %v4579_v15  ;;  %v4708_v20 = vld [vmem:[%s8075_s3 + $0xe8] sm:$0xf]  ;;  %v5609_v21 = vld [vmem:[%s8075_s3 + $0xec] sm:$0xf0]  ;;  %v4584_v22 = vor.u32 %v5584_v17, %v4581_v18 }
  0x66   : > { %781 = vmatpush.bf16.msra.mxu0 %v4604_v48  ;;  %933 = vmatpush.bf16.msra.mxu3 %v777_v7  ;;  %v1113_v11 = vsel %vm772_vm0, %v1094_v4, 0  ;;  %v4571_v23 = vld [vmem:[%s8075_s3 + $0x10] sm:$0xf]  ;;  %v5583_v24 = vld [vmem:[%s8075_s3 + $0x14] sm:$0xf0]  ;;  %v4709_v25 = vor.u32 %v5609_v21, %v4708_v20  ;;  %vm991_vm2 = vcmask 64516  }
  0x67   : > { %879 = vmatpush.bf16.msra.mxu2 %v4608_v49  ;;  %835 = vmatpush.bf16.msra.mxu1 %v774_v9  ;;  %v5582_v26 = vld [vmem:[%s8075_s3 + $0x14] sm:$0xf]  ;;  %v4573_v27 = vld [vmem:[%s8075_s3 + $0x18] sm:$0xf0]  ;;  %v4572_v29 = vor.u32 %v5583_v24, %v4571_v23  ;;  %v4563_v31 = vld [vmem:[%s8075_s3] sm:$0xf] }
  0x68   : > { %v4576_v30 = vor.u32 %v5582_v26, %v4573_v27  ;;  %v5581_v32 = vld [vmem:[%s8075_s3 + $0x4] sm:$0xf0]  ;;  %v5580_v33 = vld [vmem:[%s8075_s3 + $0x4] sm:$0xf]  ;;  %v4565_v34 = vld [vmem:[%s8075_s3 + $0x8] sm:$0xf0] }
  0x69   : > { %4633 = vmatmul.msk.bf16.vlgmr.msra.gmra.mxu3 %vm747_vm1, %v6329_v8  ;;  %v5610_v35 = vld [vmem:[%s8075_s3 + $0xfc] sm:$0xf]  ;;  %v4718_v36 = vld [vmem:[%s8075_s3 + $0x100] sm:$0xf0]  ;;  %v5566_v38 = vld [vmem:[%s6245_s12 + $0x14] sm:$0xf]  ;;  %v4564_v40 = vor.u32 %v5581_v32, %v4563_v31  ;;  %v4568_v43 = vor.u32 %v5580_v33, %v4565_v34 }
  0x6a   : > { %782 = vmatpush.bf16.msra.mxu0 %v4596_v61  ;;  %1174 = vmatpush.bf16.msrb.mxu3 %v1113_v11  ;;  %v4509_v39 = vld [vmem:[%s6245_s12 + $0x18] sm:$0xf0]  ;;  %v4499_v41 = vld [vmem:[%s6245_s12] sm:$0xf]  ;;  %v5565_v42 = vld [vmem:[%s6245_s12 + $0x4] sm:$0xf0]  ;;  %v4721_v44 = vor.u32 %v5610_v35, %v4718_v36 }
  0x6b   : > { %880 = vmatpush.bf16.msra.mxu2 %v4600_v1  ;;  %1118 = vmatpush.bf16.msrb.mxu1 %v4717_v12  ;;  %v6392_v45 = vor.u32 %v5566_v38, %v4509_v39  ;;  %v5608_v46 = vld [vmem:[%s8075_s3 + $0xec] sm:$0xf]  ;;  %v4710_v47 = vld [vmem:[%s8075_s3 + $0xf0] sm:$0xf0]  ;;  %v6400_v48 = vor.u32 %v5565_v42, %v4499_v41  ;;  %v1116_v49 = vsel %vm772_vm0, %v1095_v37, 0  ;;  %vm6610_vm3 = vmor %vm991_vm2, %vm772_vm0 }
  0x6c   : > { %4625 = vmatmul.msk.bf16.vlgmr.msra.gmra.mxu1 %vm747_vm1, %v6329_v8  ;;  %v4713_v50 = vor.u32 %v5608_v46, %v4710_v47  ;;  %v4700_v51 = vld [vmem:[%s8075_s3 + $0xd8] sm:$0xf]  ;;  %v5607_v52 = vld [vmem:[%s8075_s3 + $0xdc] sm:$0xf0]  ;;  %v5606_v53 = vld [vmem:[%s8075_s3 + $0xdc] sm:$0xf] }
  0x6d   : > { %v4701_v54 = vor.u32 %v5607_v52, %v4700_v51  ;;  %v4702_v55 = vld [vmem:[%s8075_s3 + $0xe0] sm:$0xf0]  ;;  %v4517_v58 = vld [vmem:[%s6245_s12 + $0x28] sm:$0xf0]  ;;  %v4507_v59 = vld [vmem:[%s6245_s12 + $0x10] sm:$0xf] }
  0x6e   : > { %783 = vmatpush.bf16.msra.mxu0 %v4588_v13  ;;  %v4705_v56 = vor.u32 %v5606_v53, %v4702_v55  ;;  %v5568_v57 = vld [vmem:[%s6245_s12 + $0x24] sm:$0xf]  ;;  %v5567_v60 = vld [vmem:[%s6245_s12 + $0x14] sm:$0xf0]  ;;  %v4692_v63 = vld [vmem:[%s8075_s3 + $0xc8] sm:$0xf] }
  0x6f   : > { %881 = vmatpush.bf16.msra.mxu2 %v4592_v14  ;;  %1119 = vmatpush.bf16.msrb.mxu1 %v4709_v25  ;;  %v6425_v61 = vor.u32 %v5568_v57, %v4517_v58  ;;  %v6427_v62 = vor.u32 %v5567_v60, %v4507_v59  ;;  %v5605_v0 = vld [vmem:[%s8075_s3 + $0xcc] sm:$0xf0]  ;;  %v5604_v1 = vld [vmem:[%s8075_s3 + $0xcc] sm:$0xf]  ;;  %v4694_v3 = vld [vmem:[%s8075_s3 + $0xd0] sm:$0xf0] }
  0x70   : > { %v4693_v2 = vor.u32 %v5605_v0, %v4692_v63  ;;  %v4697_v4 = vor.u32 %v5604_v1, %v4694_v3  ;;  %v5570_v5 = vld [vmem:[%s6245_s12 + $0x34] sm:$0xf]  ;;  %v4525_v6 = vld [vmem:[%s6245_s12 + $0x38] sm:$0xf0]  ;;  %v4515_v7 = vld [vmem:[%s6245_s12 + $0x20] sm:$0xf] }
  0x71   : > { %v5569_v9 = vld [vmem:[%s6245_s12 + $0x24] sm:$0xf0]  ;;  %v6451_v10 = vor.u32 %v5570_v5, %v4525_v6  ;;  %v4684_v12 = vld [vmem:[%s8075_s3 + $0xb8] sm:$0xf]  ;;  %v5603_v13 = vld [vmem:[%s8075_s3 + $0xbc] sm:$0xf0] }
  0x72   : > { %784 = vmatpush.bf16.msra.mxu0 %v4580_v19  ;;  %v6453_v11 = vor.u32 %v5569_v9, %v4515_v7  ;;  %v5602_v14 = vld [vmem:[%s8075_s3 + $0xbc] sm:$0xf]  ;;  %v4685_v15 = vor.u32 %v5603_v13, %v4684_v12  ;;  %v4686_v16 = vld [vmem:[%s8075_s3 + $0xc0] sm:$0xf0]  ;;  %v4533_v19 = vld [vmem:[%s6245_s12 + $0x48] sm:$0xf0] }
  0x73   : > { %882 = vmatpush.bf16.msra.mxu2 %v4584_v22  ;;  %1120 = vmatpush.bf16.msrb.mxu1 %v4701_v54  ;;  %v4689_v17 = vor.u32 %v5602_v14, %v4686_v16  ;;  %v5572_v18 = vld [vmem:[%s6245_s12 + $0x44] sm:$0xf]  ;;  %v4523_v20 = vld [vmem:[%s6245_s12 + $0x30] sm:$0xf]  ;;  %v5571_v21 = vld [vmem:[%s6245_s12 + $0x34] sm:$0xf0] }
  0x74   : > { %v6477_v22 = vor.u32 %v5572_v18, %v4533_v19  ;;  %v6479_v23 = vor.u32 %v5571_v21, %v4523_v20  ;;  %v4676_v24 = vld [vmem:[%s8075_s3 + $0xa8] sm:$0xf]  ;;  %v5601_v25 = vld [vmem:[%s8075_s3 + $0xac] sm:$0xf0]  ;;  %v5600_v26 = vld [vmem:[%s8075_s3 + $0xac] sm:$0xf] }
  0x75   : > { %v4677_v27 = vor.u32 %v5601_v25, %v4676_v24  ;;  %v4678_v28 = vld [vmem:[%s8075_s3 + $0xb0] sm:$0xf0]  ;;  %v4541_v31 = vld [vmem:[%s6245_s12 + $0x58] sm:$0xf0]  ;;  %v4531_v32 = vld [vmem:[%s6245_s12 + $0x40] sm:$0xf] }
  0x76   : > { %785 = vmatpush.bf16.msra.mxu0 %v4572_v29  ;;  %v4681_v29 = vor.u32 %v5600_v26, %v4678_v28  ;;  %v5573_v33 = vld [vmem:[%s6245_s12 + $0x44] sm:$0xf0]  ;;  %v4668_v36 = vld [vmem:[%s8075_s3 + $0x98] sm:$0xf]  ;;  %v5599_v37 = vld [vmem:[%s8075_s3 + $0x9c] sm:$0xf0] }
  0x77   : > { %883 = vmatpush.bf16.msra.mxu2 %v4576_v30  ;;  %1121 = vmatpush.bf16.msrb.mxu1 %v4693_v2  ;;  %v5574_v30 = vld [vmem:[%s6245_s12 + $0x54] sm:$0xf]  ;;  %v6505_v35 = vor.u32 %v5573_v33, %v4531_v32  ;;  %v5598_v38 = vld [vmem:[%s8075_s3 + $0x9c] sm:$0xf]  ;;  %v4669_v39 = vor.u32 %v5599_v37, %v4668_v36  ;;  %v5576_v42 = vld [vmem:[%s6245_s12 + $0x64] sm:$0xf] }
  0x78   : > { %v6503_v34 = vor.u32 %v5574_v30, %v4541_v31  ;;  %v5575_v46 = vld [vmem:[%s6245_s12 + $0x54] sm:$0xf0]  ;;  %v5597_v51 = vld [vmem:[%s8075_s3 + $0x8c] sm:$0xf0]  ;;  %v5596_v52 = vld [vmem:[%s8075_s3 + $0x8c] sm:$0xf] }
  0x79   : > { %4634 = vmatmul.msk.bf16.gmra.mxu3 %vm747_vm1, %v6392_v45  ;;  %v4662_v54 = vld [vmem:[%s8075_s3 + $0x90] sm:$0xf0]  ;;  %v4557_v57 = vld [vmem:[%s6245_s12 + $0x78] sm:$0xf0]  ;;  %v4547_v58 = vld [vmem:[%s6245_s12 + $0x60] sm:$0xf] }
  0x7a   : > { %786 = vmatpush.bf16.msra.mxu0 %v4564_v40  ;;  %v4670_v40 = vld [vmem:[%s8075_s3 + $0xa0] sm:$0xf0]  ;;  %v4665_v55 = vor.u32 %v5596_v52, %v4662_v54  ;;  %v5577_v59 = vld [vmem:[%s6245_s12 + $0x64] sm:$0xf0]  ;;  %v4754_v0 = vld [vmem:[%s8075_s3 + $0x190] sm:$0xff] }
  0x7b   : > { %884 = vmatpush.bf16.msra.mxu2 %v4568_v43  ;;  %1122 = vmatpush.bf16.msrb.mxu1 %v4685_v15  ;;  %v4673_v41 = vor.u32 %v5598_v38, %v4670_v40  ;;  %v4549_v43 = vld [vmem:[%s6245_s12 + $0x68] sm:$0xf0]  ;;  %v6557_v63 = vor.u32 %v5577_v59, %v4547_v58  ;;  %v1414_v1 = vunpack.c.l.b16 %v4754_v0  ;;  %v1415_v2 = vunpack.c.h.b16 %v4754_v0  ;;  %v4555_v7 = vld [vmem:[%s6245_s12 + $0x70] sm:$0xf]  ;;  %v5579_v9 = vld [vmem:[%s6245_s12 + $0x74] sm:$0xf0] }
  0x7c   : > { %4626 = vmatmul.msk.bf16.gmra.mxu1 %vm747_vm1, %v6392_v45  ;;  %v6529_v47 = vor.u32 %v5576_v42, %v4549_v43  ;;  %v4813_v12 = vld [vmem:[%s8075_s3 + $0x180] sm:$0xf]  ;;  %v5627_v13 = vld [vmem:[%s8075_s3 + $0x184] sm:$0xf0]  ;;  %v5626_v14 = vld [vmem:[%s8075_s3 + $0x184] sm:$0xf]  ;;  %v6584_v18 = vor.u32 %v5579_v9, %v4555_v7 }
  0x7d   : > { %787 = vmatmul.bf16.vlgmr.msra.gmra.mxu0 %v6400_v48  ;;  %v1432_v3 = vpack.c.b16 %v1414_v1, %v1414_v1  ;;  %v4814_v15 = vor.u32 %v5627_v13, %v4813_v12  ;;  %v4815_v16 = vld [vmem:[%s8075_s3 + $0x188] sm:$0xf0]  ;;  %v4805_v24 = vld [vmem:[%s8075_s3 + $0x170] sm:$0xf]  ;;  %v5625_v25 = vld [vmem:[%s8075_s3 + $0x174] sm:$0xf0] }
  0x7e   : > { %1216 = vmatpush.bf16.msrb.mxu0 %v4721_v44  ;;  %885 = vmatmul.bf16.vlgmr.msra.gmra.mxu2 %v6400_v48  ;;  %v4539_v44 = vld [vmem:[%s6245_s12 + $0x50] sm:$0xf]  ;;  %v5624_v26 = vld [vmem:[%s8075_s3 + $0x174] sm:$0xf]  ;;  %v4806_v28 = vor.u32 %v5625_v25, %v4805_v24  ;;  %v4797_v43 = vld [vmem:[%s8075_s3 + $0x160] sm:$0xf] }
  0x7f   : > { %1272 = vmatpush.bf16.msrb.mxu2 %v1116_v49  ;;  %1123 = vmatpush.bf16.msrb.mxu1 %v4677_v27  ;;  %v6531_v49 = vor.u32 %v5575_v46, %v4539_v44  ;;  %v1451_v5 = vsel %vm772_vm0, %v1432_v3, 0  ;;  %v5623_v44 = vld [vmem:[%s8075_s3 + $0x164] sm:$0xf0]  ;;  %v4799_v52 = vld [vmem:[%s8075_s3 + $0x168] sm:$0xf0] }
  0x80   : > { %1512 = vmatpush.bf16.msra.mxu3 %v1451_v5  ;;  %v4789_v7 = vld [vmem:[%s8075_s3 + $0x150] sm:$0xf]  ;;  %v5621_v9 = vld [vmem:[%s8075_s3 + $0x154] sm:$0xf0] }
  0x81   : > { %v4790_v13 = vor.u32 %v5621_v9, %v4789_v7 }
  0x82   : > { %1217 = vmatpush.bf16.msrb.mxu0 %v4713_v50  ;;  %v4660_v50 = vld [vmem:[%s8075_s3 + $0x88] sm:$0xf] }
  0x83   : > { %1124 = vmatpush.bf16.msrb.mxu1 %v4669_v39  ;;  %v4661_v53 = vor.u32 %v5597_v51, %v4660_v50  ;;  %v4798_v50 = vor.u32 %v5623_v44, %v4797_v43  ;;  %v5622_v51 = vld [vmem:[%s8075_s3 + $0x164] sm:$0xf] }
  0x86   : > { %1218 = vmatpush.bf16.msrb.mxu0 %v4705_v56  ;;  %v5578_v56 = vld [vmem:[%s6245_s12 + $0x74] sm:$0xf] }
  0x87   : > { %1125 = vmatpush.bf16.msrb.mxu1 %v4661_v53  ;;  %v6555_v60 = vor.u32 %v5578_v56, %v4557_v57  ;;  %v4802_v53 = vor.u32 %v5622_v51, %v4799_v52 }
  0x89   : > { %4635 = vmatmul.msk.bf16.gmra.mxu3 %vm747_vm1, %v6425_v61 }
  0x8a   : > { %1219 = vmatpush.bf16.msrb.mxu0 %v4697_v4  ;;  %v1433_v4 = vpack.c.b16 %v1415_v2, %v1415_v2 }
  0x8b   : > { %1456 = vmatpush.bf16.msra.mxu1 %v4814_v15  ;;  %v4791_v15 = vld [vmem:[%s8075_s3 + $0x158] sm:$0xf0] }
  0x8c   : > { %4627 = vmatmul.msk.bf16.gmra.mxu1 %vm747_vm1, %v6425_v61  ;;  %v1454_v6 = vsel %vm772_vm0, %v1433_v4, 0 }
  0x8d   : > { %792 = vmatmul.bf16.gmra.mxu0 %v6427_v62  ;;  %1610 = vmatpush.bf16.msra.mxu2 %v1454_v6 }
  0x8e   : > { %890 = vmatmul.bf16.gmra.mxu2 %v6427_v62  ;;  %1220 = vmatpush.bf16.msrb.mxu0 %v4689_v17  ;;  %v4818_v17 = vor.u32 %v5626_v14, %v4815_v16  ;;  %v5620_v14 = vld [vmem:[%s8075_s3 + $0x154] sm:$0xf] }
  0x8f   : > { %1457 = vmatpush.bf16.msra.mxu1 %v4806_v28  ;;  %v4794_v16 = vor.u32 %v5620_v14, %v4791_v15 }
  0x92   : > { %1221 = vmatpush.bf16.msrb.mxu0 %v4681_v29  ;;  %v4807_v29 = vld [vmem:[%s8075_s3 + $0x178] sm:$0xf0] }
  0x93   : > { %v4810_v30 = vor.u32 %v5624_v26, %v4807_v29  ;;  %1458 = vmatpush.bf16.msra.mxu1 %v4798_v50 }
  0x96   : > { %1222 = vmatpush.bf16.msrb.mxu0 %v4673_v41 }
  0x97   : > { %1459 = vmatpush.bf16.msra.mxu1 %v4790_v13 }
  0x99   : > { %4636 = vmatmul.msk.bf16.gmra.mxu3 %vm747_vm1, %v6451_v10 }
  0x9a   : > { %1223 = vmatpush.bf16.msrb.mxu0 %v4665_v55 }
  0x9c   : > { %4628 = vmatmul.msk.bf16.gmra.mxu1 %vm747_vm1, %v6451_v10 }
  0x9d   : > { %797 = vmatmul.bf16.gmra.mxu0 %v6453_v11 }
  0x9e   : > { %895 = vmatmul.bf16.gmra.mxu2 %v6453_v11  ;;  %1554 = vmatpush.bf16.msra.mxu0 %v4818_v17 }
  0xa2   : > { %1555 = vmatpush.bf16.msra.mxu0 %v4810_v30 }
  0xa6   : > { %1556 = vmatpush.bf16.msra.mxu0 %v4802_v53 }
  0xa9   : > { %4637 = vmatmul.msk.bf16.gmra.mxu3 %vm747_vm1, %v6477_v22 }
  0xaa   : > { %1557 = vmatpush.bf16.msra.mxu0 %v4794_v16 }
  0xac   : > { %4629 = vmatmul.msk.bf16.gmra.mxu1 %vm747_vm1, %v6477_v22 }
  0xad   : > { %802 = vmatmul.bf16.gmra.mxu0 %v6479_v23 }
  0xae   : > { %900 = vmatmul.bf16.gmra.mxu2 %v6479_v23 }
  0xb9   : > { %4638 = vmatmul.msk.bf16.gmra.mxu3 %vm747_vm1, %v6503_v34 }
  0xbc   : > { %4630 = vmatmul.msk.bf16.gmra.mxu1 %vm747_vm1, %v6503_v34 }
  0xbd   : > { %807 = vmatmul.bf16.gmra.mxu0 %v6505_v35 }
  0xbe   : > { %905 = vmatmul.bf16.gmra.mxu2 %v6505_v35 }
  0xc9   : > { %4639 = vmatmul.msk.bf16.gmra.mxu3 %vm747_vm1, %v6529_v47 }
  0xcc   : > { %4631 = vmatmul.msk.bf16.gmra.mxu1 %vm747_vm1, %v6529_v47 }
  0xcd   : > { %812 = vmatmul.bf16.gmra.mxu0 %v6531_v49 }
  0xce   : > { %910 = vmatmul.bf16.gmra.mxu2 %v6531_v49 }
  0xd9   : > { %4640 = vmatmul.msk.bf16.gmra.mxu3 %vm747_vm1, %v6555_v60 }
  0xdc   : > { %4632 = vmatmul.msk.bf16.gmra.mxu1 %vm747_vm1, %v6555_v60 }
  0xdd   : > { %817 = vmatmul.bf16.gmra.mxu0 %v6557_v63 }
  0xde   : > { %915 = vmatmul.bf16.gmra.mxu2 %v6557_v63 }
  0xe9   : > { %v837_v19 = vpop.f32.mrf.mxu1  ;;  %4722 = vmatmul.msk.bf16.vlgmr.msrb.gmra.mxu3 %vm747_vm1, %v6329_v8 }
  0xec   : > { %1126 = vmatmul.bf16.vlgmr.msrb.gmra.mxu1 %v6400_v48  ;;  %v935_v20 = vpop.f32.mrf.mxu3 }
  0xed   : > { %822 = vmatmul.bf16.gmra.mxu0 %v6584_v18 }
  0xee   : > { %920 = vmatmul.bf16.gmra.mxu2 %v6584_v18 }
  0xf1   : > { %v839_v21 = vpop.f32.mrf.mxu1 }
  0xf4   : > { %v937_v27 = vpop.f32.mrf.mxu3 }
  0xf9   : > { %v842_v32 = vpop.f32.mrf.mxu1  ;;  %4723 = vmatmul.msk.bf16.gmra.mxu3 %vm747_vm1, %v6392_v45 }
  0xfa   : > { %v788_v31 = vpop.f32.mrf.mxu0 }
  0xfb   : > { %v838_v36 = vadd.f32 %v837_v19, %v788_v31 }
  0xfc   : > { %1131 = vmatmul.bf16.gmra.mxu1 %v6427_v62  ;;  %v940_v33 = vpop.f32.mrf.mxu3 }
  0xfd   : > { %1224 = vmatmul.bf16.vlgmr.msrb.gmra.mxu0 %v6400_v48 }
  0xfe   : > { %4730 = vmatmul.msk.bf16.vlgmr.msrb.gmra.mxu2 %vm747_vm1, %v6329_v8 }
 0x101   : > { %v886_v37 = vpop.f32.mrf.mxu2  ;;  %v844_v40 = vpop.f32.mrf.mxu1 }
 0x102   : > { %v936_v38 = vadd.f32 %v935_v20, %v886_v37  ;;  %v790_v39 = vpop.f32.mrf.mxu0 }
 0x103   : > { %v840_v55 = vadd.f32 %v839_v21, %v790_v39  ;;  %v5618_v39 = vld [vmem:[%s8075_s3 + $0x144] sm:$0xf] }
 0x104   : > { %v975_v42 = vpack.c.bf16 %v936_v38, %v838_v36  ;;  %v942_v46 = vpop.f32.mrf.mxu3  ;;  %v5619_v36 = vld [vmem:[%s8075_s3 + $0x144] sm:$0xf0] }
 0x106   : > { %993 = vst.msk [vmem:[#allocation2] sm:$0xff] %vm6610_vm3, %v975_v42 }
 0x109   : > { %v888_v54 = vpop.f32.mrf.mxu2  ;;  %v847_v58 = vpop.f32.mrf.mxu1  ;;  %4724 = vmatmul.msk.bf16.gmra.mxu3 %vm747_vm1, %v6425_v61 }
 0x10a   : > { %v938_v56 = vadd.f32 %v937_v27, %v888_v54  ;;  %v793_v57 = vpop.f32.mrf.mxu0 }
 0x10b   : > { %v843_v1 = vadd.f32 %v842_v32, %v793_v57 }
 0x10c   : > { %v976_v59 = vpack.c.bf16 %v938_v56, %v840_v55  ;;  %1136 = vmatmul.bf16.gmra.mxu1 %v6453_v11  ;;  %v945_v0 = vpop.f32.mrf.mxu3 }
 0x10d   : > { %1229 = vmatmul.bf16.gmra.mxu0 %v6427_v62 }
 0x10e   : > { %994 = vst.msk [vmem:[#allocation2 + $0x8] sm:$0xff] %vm6610_vm3, %v976_v59  ;;  %4731 = vmatmul.msk.bf16.gmra.mxu2 %vm747_vm1, %v6392_v45 }
 0x111   : > { %v891_v2 = vpop.f32.mrf.mxu2  ;;  %v849_v5 = vpop.f32.mrf.mxu1 }
 0x112   : > { %v941_v3 = vadd.f32 %v940_v33, %v891_v2  ;;  %v795_v4 = vpop.f32.mrf.mxu0  ;;  %v4781_v33 = vld [vmem:[%s8075_s3 + $0x140] sm:$0xf] }
 0x113   : > { %v845_v19 = vadd.f32 %v844_v40, %v795_v4  ;;  %v4782_v38 = vor.u32 %v5619_v36, %v4781_v33  ;;  %v4783_v40 = vld [vmem:[%s8075_s3 + $0x148] sm:$0xf0]  ;;  %v5616_v4 = vld [vmem:[%s8075_s3 + $0x134] sm:$0xf] }
 0x114   : > { %v977_v6 = vpack.c.bf16 %v941_v3, %v843_v1  ;;  %v947_v12 = vpop.f32.mrf.mxu3  ;;  %v4786_v42 = vor.u32 %v5618_v39, %v4783_v40  ;;  %v5617_v1 = vld [vmem:[%s8075_s3 + $0x134] sm:$0xf0] }
 0x115   : > { %1460 = vmatpush.bf16.msra.mxu1 %v4782_v38 }
 0x116   : > { %995 = vst.msk [vmem:[#allocation2 + $0x10] sm:$0xff] %vm6610_vm3, %v977_v6  ;;  %1558 = vmatpush.bf16.msra.mxu0 %v4786_v42 }
 0x119   : > { %v893_v17 = vpop.f32.mrf.mxu2  ;;  %v852_v24 = vpop.f32.mrf.mxu1  ;;  %4725 = vmatmul.msk.bf16.gmra.mxu3 %vm747_vm1, %v6451_v10 }
 0x11a   : > { %v943_v20 = vadd.f32 %v942_v46, %v893_v17  ;;  %v798_v21 = vpop.f32.mrf.mxu0 }
 0x11b   : > { %v848_v27 = vadd.f32 %v847_v58, %v798_v21 }
 0x11c   : > { %v978_v25 = vpack.c.bf16 %v943_v20, %v845_v19  ;;  %1141 = vmatmul.bf16.gmra.mxu1 %v6479_v23  ;;  %v950_v26 = vpop.f32.mrf.mxu3 }
 0x11d   : > { %1234 = vmatmul.bf16.gmra.mxu0 %v6453_v11 }
 0x11e   : > { %996 = vst.msk [vmem:[#allocation2 + $0x18] sm:$0xff] %vm6610_vm3, %v978_v25  ;;  %4732 = vmatmul.msk.bf16.gmra.mxu2 %vm747_vm1, %v6425_v61 }
 0x121   : > { %v896_v28 = vpop.f32.mrf.mxu2  ;;  %v854_v31 = vpop.f32.mrf.mxu1 }
 0x122   : > { %v946_v29 = vadd.f32 %v945_v0, %v896_v28  ;;  %v800_v30 = vpop.f32.mrf.mxu0  ;;  %v4773_v0 = vld [vmem:[%s8075_s3 + $0x130] sm:$0xf] }
 0x123   : > { %v850_v44 = vadd.f32 %v849_v5, %v800_v30  ;;  %v4774_v3 = vor.u32 %v5617_v1, %v4773_v0  ;;  %v4775_v5 = vld [vmem:[%s8075_s3 + $0x138] sm:$0xf0]  ;;  %v5614_v30 = vld [vmem:[%s8075_s3 + $0x124] sm:$0xf] }
 0x124   : > { %v979_v32 = vpack.c.bf16 %v946_v29, %v848_v27  ;;  %v952_v37 = vpop.f32.mrf.mxu3  ;;  %v4778_v6 = vor.u32 %v5616_v4, %v4775_v5  ;;  %v5615_v27 = vld [vmem:[%s8075_s3 + $0x124] sm:$0xf0] }
 0x125   : > { %1461 = vmatpush.bf16.msra.mxu1 %v4774_v3 }
 0x126   : > { %997 = vst.msk [vmem:[#allocation2 + $0x20] sm:$0xff] %vm6610_vm3, %v979_v32  ;;  %1559 = vmatpush.bf16.msra.mxu0 %v4778_v6  ;;  %v4851_v6 = vld [vmem:[%s8075_s3 + $0x218] sm:$0xff] }
 0x129   : > { %v898_v43 = vpop.f32.mrf.mxu2  ;;  %v857_v51 = vpop.f32.mrf.mxu1  ;;  %4726 = vmatmul.msk.bf16.gmra.mxu3 %vm747_vm1, %v6477_v22 }
 0x12a   : > { %v948_v46 = vadd.f32 %v947_v12, %v898_v43  ;;  %v803_v50 = vpop.f32.mrf.mxu0 }
 0x12b   : > { %v853_v54 = vadd.f32 %v852_v24, %v803_v50 }
 0x12c   : > { %v980_v52 = vpack.c.bf16 %v948_v46, %v850_v44  ;;  %1146 = vmatmul.bf16.gmra.mxu1 %v6505_v35  ;;  %v955_v53 = vpop.f32.mrf.mxu3 }
 0x12d   : > { %1239 = vmatmul.bf16.gmra.mxu0 %v6479_v23 }
 0x12e   : > { %998 = vst.msk [vmem:[#allocation2 + $0x28] sm:$0xff] %vm6610_vm3, %v980_v52  ;;  %4733 = vmatmul.msk.bf16.gmra.mxu2 %vm747_vm1, %v6451_v10 }
 0x131   : > { %v901_v55 = vpop.f32.mrf.mxu2  ;;  %v859_v58 = vpop.f32.mrf.mxu1 }
 0x132   : > { %v951_v56 = vadd.f32 %v950_v26, %v901_v55  ;;  %v805_v57 = vpop.f32.mrf.mxu0  ;;  %v4765_v26 = vld [vmem:[%s8075_s3 + $0x120] sm:$0xf] }
 0x133   : > { %v855_v9 = vadd.f32 %v854_v31, %v805_v57  ;;  %v4766_v29 = vor.u32 %v5615_v27, %v4765_v26  ;;  %v4767_v31 = vld [vmem:[%s8075_s3 + $0x128] sm:$0xf0]  ;;  %v5612_v57 = vld [vmem:[%s8075_s3 + $0x114] sm:$0xf]  ;;  %v4910_v26 = vld [vmem:[%s8075_s3 + $0x208] sm:$0xf] }
 0x134   : > { %v981_v59 = vpack.c.bf16 %v951_v56, %v853_v54  ;;  %v957_v2 = vpop.f32.mrf.mxu3  ;;  %v4770_v32 = vor.u32 %v5614_v30, %v4767_v31  ;;  %v5613_v54 = vld [vmem:[%s8075_s3 + $0x114] sm:$0xf0]  ;;  %v5643_v27 = vld [vmem:[%s8075_s3 + $0x20c] sm:$0xf0]  ;;  %v5642_v30 = vld [vmem:[%s8075_s3 + $0x20c] sm:$0xf] }
 0x135   : > { %1462 = vmatpush.bf16.msra.mxu1 %v4766_v29  ;;  %v4911_v29 = vor.u32 %v5643_v27, %v4910_v26  ;;  %v4912_v31 = vld [vmem:[%s8075_s3 + $0x210] sm:$0xf0] }
 0x136   : > { %999 = vst.msk [vmem:[#allocation2 + $0x30] sm:$0xff] %vm6610_vm3, %v981_v59  ;;  %1560 = vmatpush.bf16.msra.mxu0 %v4770_v32  ;;  %v4915_v32 = vor.u32 %v5642_v30, %v4912_v31 }
 0x139   : > { %v903_v7 = vpop.f32.mrf.mxu2  ;;  %v862_v14 = vpop.f32.mrf.mxu1  ;;  %4727 = vmatmul.msk.bf16.gmra.mxu3 %vm747_vm1, %v6503_v34 }
 0x13a   : > { %v953_v12 = vadd.f32 %v952_v37, %v903_v7  ;;  %v808_v13 = vpop.f32.mrf.mxu0 }
 0x13b   : > { %v858_v17 = vadd.f32 %v857_v51, %v808_v13 }
 0x13c   : > { %v982_v15 = vpack.c.bf16 %v953_v12, %v855_v9  ;;  %1151 = vmatmul.bf16.gmra.mxu1 %v6531_v49  ;;  %v960_v16 = vpop.f32.mrf.mxu3  ;;  %v1752_v9 = vunpack.c.l.b16 %v4851_v6  ;;  %v1753_v12 = vunpack.c.h.b16 %v4851_v6 }
 0x13d   : > { %1244 = vmatmul.bf16.gmra.mxu0 %v6505_v35 }
 0x13e   : > { %1000 = vst.msk [vmem:[#allocation2 + $0x38] sm:$0xff] %vm6610_vm3, %v982_v15  ;;  %4734 = vmatmul.msk.bf16.gmra.mxu2 %vm747_vm1, %v6477_v22  ;;  %v1770_v15 = vpack.c.b16 %v1752_v9, %v1752_v9 }
 0x141   : > { %v906_v19 = vpop.f32.mrf.mxu2  ;;  %v864_v24 = vpop.f32.mrf.mxu1 }
 0x142   : > { %v956_v20 = vadd.f32 %v955_v53, %v906_v19  ;;  %v810_v21 = vpop.f32.mrf.mxu0  ;;  %v4757_v53 = vld [vmem:[%s8075_s3 + $0x110] sm:$0xf] }
 0x143   : > { %v860_v36 = vadd.f32 %v859_v58, %v810_v21  ;;  %v4758_v56 = vor.u32 %v5613_v54, %v4757_v53  ;;  %v4759_v58 = vld [vmem:[%s8075_s3 + $0x118] sm:$0xf0]  ;;  %v1789_v21 = vsel %vm772_vm0, %v1770_v15, 0  ;;  %v4902_v53 = vld [vmem:[%s8075_s3 + $0x1f8] sm:$0xf] }
 0x144   : > { %v983_v25 = vpack.c.bf16 %v956_v20, %v858_v17  ;;  %v962_v28 = vpop.f32.mrf.mxu3  ;;  %v4762_v59 = vor.u32 %v5612_v57, %v4759_v58  ;;  %1850 = vmatpush.bf16.msrb.mxu3 %v1789_v21  ;;  %v5641_v54 = vld [vmem:[%s8075_s3 + $0x1fc] sm:$0xf0]  ;;  %v5640_v57 = vld [vmem:[%s8075_s3 + $0x1fc] sm:$0xf]  ;;  %v4904_v58 = vld [vmem:[%s8075_s3 + $0x200] sm:$0xf0] }
 0x145   : > { %1463 = vmatpush.bf16.msra.mxu1 %v4758_v56  ;;  %v4903_v56 = vor.u32 %v5641_v54, %v4902_v53  ;;  %v5638_v21 = vld [vmem:[%s8075_s3 + $0x1ec] sm:$0xf] }
 0x146   : > { %1001 = vst.msk [vmem:[#allocation2 + $0x40] sm:$0xff] %vm6610_vm3, %v983_v25  ;;  %1561 = vmatpush.bf16.msra.mxu0 %v4762_v59  ;;  %v4907_v59 = vor.u32 %v5640_v57, %v4904_v58 }
 0x149   : > { %v908_v33 = vpop.f32.mrf.mxu2  ;;  %v867_v39 = vpop.f32.mrf.mxu1  ;;  %4728 = vmatmul.msk.bf16.gmra.mxu3 %vm747_vm1, %v6529_v47  ;;  %1794 = vmatpush.bf16.msrb.mxu1 %v4911_v29 }
 0x14a   : > { %v958_v37 = vadd.f32 %v957_v2, %v908_v33  ;;  %v813_v38 = vpop.f32.mrf.mxu0  ;;  %1892 = vmatpush.bf16.msrb.mxu0 %v4915_v32 }
 0x14b   : > { %v863_v43 = vadd.f32 %v862_v14, %v813_v38 }
 0x14c   : > { %v984_v40 = vpack.c.bf16 %v958_v37, %v860_v36  ;;  %1156 = vmatmul.bf16.gmra.mxu1 %v6557_v63  ;;  %v965_v42 = vpop.f32.mrf.mxu3 }
 0x14d   : > { %1249 = vmatmul.bf16.gmra.mxu0 %v6531_v49  ;;  %1795 = vmatpush.bf16.msrb.mxu1 %v4903_v56 }
 0x14e   : > { %1002 = vst.msk [vmem:[#allocation2 + $0x48] sm:$0xff] %vm6610_vm3, %v984_v40  ;;  %4735 = vmatmul.msk.bf16.gmra.mxu2 %vm747_vm1, %v6503_v34  ;;  %1893 = vmatpush.bf16.msrb.mxu0 %v4907_v59 }
 0x151   : > { %v911_v44 = vpop.f32.mrf.mxu2  ;;  %v869_v51 = vpop.f32.mrf.mxu1 }
 0x152   : > { %v961_v46 = vadd.f32 %v960_v16, %v911_v44  ;;  %v815_v50 = vpop.f32.mrf.mxu0  ;;  %v1771_v16 = vpack.c.b16 %v1753_v12, %v1753_v12 }
 0x153   : > { %v865_v1 = vadd.f32 %v864_v24, %v815_v50 }
 0x154   : > { %v985_v52 = vpack.c.bf16 %v961_v46, %v863_v43  ;;  %v967_v55 = vpop.f32.mrf.mxu3  ;;  %v1792_v24 = vsel %vm772_vm0, %v1771_v16, 0  ;;  %v4894_v16 = vld [vmem:[%s8075_s3 + $0x1e8] sm:$0xf] }
 0x155   : > { %1948 = vmatpush.bf16.msrb.mxu2 %v1792_v24  ;;  %v4896_v24 = vld [vmem:[%s8075_s3 + $0x1f0] sm:$0xf0] }
 0x156   : > { %1003 = vst.msk [vmem:[#allocation2 + $0x50] sm:$0xff] %vm6610_vm3, %v985_v52 }
 0x159   : > { %v913_v0 = vpop.f32.mrf.mxu2  ;;  %v872_v4 = vpop.f32.mrf.mxu1  ;;  %4729 = vmatmul.msk.bf16.gmra.mxu3 %vm747_vm1, %v6555_v60 }
 0x15a   : > { %v963_v2 = vadd.f32 %v962_v28, %v913_v0  ;;  %v818_v3 = vpop.f32.mrf.mxu0 }
 0x15b   : > { %v868_v13 = vadd.f32 %v867_v39, %v818_v3 }
 0x15c   : > { %v986_v5 = vpack.c.bf16 %v963_v2, %v865_v1  ;;  %1161 = vmatmul.bf16.gmra.mxu1 %v6584_v18  ;;  %v970_v7 = vpop.f32.mrf.mxu3 }
 0x15d   : > { %1254 = vmatmul.bf16.gmra.mxu0 %v6557_v63 }
 0x15e   : > { %1004 = vst.msk [vmem:[#allocation2 + $0x58] sm:$0xff] %vm6610_vm3, %v986_v5  ;;  %4736 = vmatmul.msk.bf16.gmra.mxu2 %vm747_vm1, %v6529_v47 }
 0x161   : > { %v916_v14 = vpop.f32.mrf.mxu2  ;;  %v874_v20 = vpop.f32.mrf.mxu1 }
 0x162   : > { %v966_v17 = vadd.f32 %v965_v42, %v916_v14  ;;  %v820_v19 = vpop.f32.mrf.mxu0 }
 0x163   : > { %v870_v36 = vadd.f32 %v869_v51, %v820_v19 }
 0x164   : > { %v987_v25 = vpack.c.bf16 %v966_v17, %v868_v13  ;;  %v972_v28 = vpop.f32.mrf.mxu3  ;;  %v5639_v17 = vld [vmem:[%s8075_s3 + $0x1ec] sm:$0xf0] }
 0x166   : > { %1005 = vst.msk [vmem:[#allocation2 + $0x60] sm:$0xff] %vm6610_vm3, %v987_v25  ;;  %v4899_v25 = vor.u32 %v5638_v21, %v4896_v24 }
 0x168   : > { %1894 = vmatpush.bf16.msrb.mxu0 %v4899_v25 }
 0x169   : > { %v918_v33 = vpop.f32.mrf.mxu2  ;;  %v1127_v39 = vpop.f32.mrf.mxu1  ;;  %4819 = vmatmul.msk.bf16.vlgmr.msra.gmra.mxu3 %vm747_vm1, %v6329_v8 }
 0x16a   : > { %v968_v37 = vadd.f32 %v967_v55, %v918_v33  ;;  %v823_v38 = vpop.f32.mrf.mxu0 }
 0x16b   : > { %v873_v43 = vadd.f32 %v872_v4, %v823_v38 }
 0x16c   : > { %v988_v40 = vpack.c.bf16 %v968_v37, %v870_v36  ;;  %1464 = vmatmul.bf16.vlgmr.msra.gmra.mxu1 %v6400_v48  ;;  %v1176_v42 = vpop.f32.mrf.mxu3 }
 0x16d   : > { %1259 = vmatmul.bf16.gmra.mxu0 %v6584_v18 }
 0x16e   : > { %1006 = vst.msk [vmem:[#allocation2 + $0x68] sm:$0xff] %vm6610_vm3, %v988_v40  ;;  %4737 = vmatmul.msk.bf16.gmra.mxu2 %vm747_vm1, %v6555_v60 }
 0x171   : > { %v921_v44 = vpop.f32.mrf.mxu2  ;;  %v1129_v51 = vpop.f32.mrf.mxu1 }
 0x172   : > { %v971_v46 = vadd.f32 %v970_v7, %v921_v44  ;;  %v825_v50 = vpop.f32.mrf.mxu0  ;;  %v1177_v7 = vadd.f32 %v1176_v42, %v1127_v39  ;;  %v4886_v42 = vld [vmem:[%s8075_s3 + $0x1d8] sm:$0xf] }
 0x173   : > { %v875_v1 = vadd.f32 %v874_v20, %v825_v50  ;;  %v4895_v20 = vor.u32 %v5639_v17, %v4894_v16  ;;  %v5636_v50 = vld [vmem:[%s8075_s3 + $0x1dc] sm:$0xf] }
 0x174   : > { %v989_v52 = vpack.c.bf16 %v971_v46, %v873_v43  ;;  %v1178_v55 = vpop.f32.mrf.mxu3  ;;  %v5637_v43 = vld [vmem:[%s8075_s3 + $0x1dc] sm:$0xf0] }
 0x175   : > { %1796 = vmatpush.bf16.msrb.mxu1 %v4895_v20  ;;  %v1179_v27 = vadd.f32 %v1178_v55, %v1129_v51  ;;  %v4887_v46 = vor.u32 %v5637_v43, %v4886_v42  ;;  %v4888_v51 = vld [vmem:[%s8075_s3 + $0x1e0] sm:$0xf0] }
 0x176   : > { %1007 = vst.msk [vmem:[#allocation2 + $0x70] sm:$0xff] %vm6610_vm3, %v989_v52  ;;  %v4891_v52 = vor.u32 %v5636_v50, %v4888_v51 }
 0x178   : > { %1895 = vmatpush.bf16.msrb.mxu0 %v4891_v52 }
 0x179   : > { %v923_v0 = vpop.f32.mrf.mxu2  ;;  %v1132_v4 = vpop.f32.mrf.mxu1  ;;  %4820 = vmatmul.msk.bf16.gmra.mxu3 %vm747_vm1, %v6392_v45  ;;  %1797 = vmatpush.bf16.msrb.mxu1 %v4887_v46 }
 0x17a   : > { %v973_v2 = vadd.f32 %v972_v28, %v923_v0  ;;  %v1225_v3 = vpop.f32.mrf.mxu0 }
 0x17c   : > { %v990_v5 = vpack.c.bf16 %v973_v2, %v875_v1  ;;  %1469 = vmatmul.bf16.gmra.mxu1 %v6427_v62  ;;  %v1181_v6 = vpop.f32.mrf.mxu3 }
 0x17d   : > { %1562 = vmatmul.bf16.vlgmr.msra.gmra.mxu0 %v6400_v48  ;;  %v1182_v33 = vadd.f32 %v1181_v6, %v1132_v4  ;;  %v4878_v6 = vld [vmem:[%s8075_s3 + $0x1c8] sm:$0xf] }
 0x17e   : > { %1008 = vst.msk [vmem:[#allocation2 + $0x78] sm:$0xff] %vm6610_vm3, %v990_v5  ;;  %4827 = vmatmul.msk.bf16.vlgmr.msra.gmra.mxu2 %vm747_vm1, %v6329_v8 }
 0x181   : > { %v1274_v9 = vpop.f32.mrf.mxu2  ;;  %v1134_v14 = vpop.f32.mrf.mxu1 }
 0x182   : > { %v1275_v12 = vadd.f32 %v1274_v9, %v1225_v3  ;;  %v1227_v13 = vpop.f32.mrf.mxu0 }
 0x184   : > { %v1314_v15 = vpack.c.bf16 %v1275_v12, %v1177_v7  ;;  %v1183_v19 = vpop.f32.mrf.mxu3  ;;  %v5635_v7 = vld [vmem:[%s8075_s3 + $0x1cc] sm:$0xf0] }
 0x185   : > { %v1184_v54 = vadd.f32 %v1183_v19, %v1134_v14  ;;  %v4879_v12 = vor.u32 %v5635_v7, %v4878_v6  ;;  %v4880_v14 = vld [vmem:[%s8075_s3 + $0x1d0] sm:$0xf0] }
 0x186   : > { %1331 = vst.msk [vmem:[#allocation2 + $0x80] sm:$0xff] %vm6610_vm3, %v1314_v15 }
 0x187   : > { %1798 = vmatpush.bf16.msrb.mxu1 %v4879_v12 }
 0x189   : > { %v1276_v26 = vpop.f32.mrf.mxu2  ;;  %v1137_v30 = vpop.f32.mrf.mxu1  ;;  %4821 = vmatmul.msk.bf16.gmra.mxu3 %vm747_vm1, %v6425_v61 }
 0x18a   : > { %v1277_v28 = vadd.f32 %v1276_v26, %v1227_v13  ;;  %v1230_v29 = vpop.f32.mrf.mxu0  ;;  %v5634_v13 = vld [vmem:[%s8075_s3 + $0x1cc] sm:$0xf] }
 0x18b   : > { %v4883_v15 = vor.u32 %v5634_v13, %v4880_v14 }
 0x18c   : > { %v1315_v31 = vpack.c.bf16 %v1277_v28, %v1179_v27  ;;  %1474 = vmatmul.bf16.gmra.mxu1 %v6453_v11  ;;  %v1186_v32 = vpop.f32.mrf.mxu3 }
 0x18d   : > { %1567 = vmatmul.bf16.gmra.mxu0 %v6427_v62  ;;  %v1187_v0 = vadd.f32 %v1186_v32, %v1137_v30  ;;  %v4870_v32 = vld [vmem:[%s8075_s3 + $0x1b8] sm:$0xf] }
 0x18e   : > { %1332 = vst.msk [vmem:[#allocation2 + $0x88] sm:$0xff] %vm6610_vm3, %v1315_v31  ;;  %4828 = vmatmul.msk.bf16.gmra.mxu2 %vm747_vm1, %v6392_v45  ;;  %1896 = vmatpush.bf16.msrb.mxu0 %v4883_v15 }
 0x191   : > { %v1279_v36 = vpop.f32.mrf.mxu2  ;;  %v1139_v39 = vpop.f32.mrf.mxu1 }
 0x192   : > { %v1280_v37 = vadd.f32 %v1279_v36, %v1230_v29  ;;  %v1232_v38 = vpop.f32.mrf.mxu0 }
 0x194   : > { %v1316_v40 = vpack.c.bf16 %v1280_v37, %v1182_v33  ;;  %v1188_v44 = vpop.f32.mrf.mxu3  ;;  %v5633_v33 = vld [vmem:[%s8075_s3 + $0x1bc] sm:$0xf0] }
 0x195   : > { %v1189_v17 = vadd.f32 %v1188_v44, %v1139_v39  ;;  %v4871_v37 = vor.u32 %v5633_v33, %v4870_v32  ;;  %v4872_v39 = vld [vmem:[%s8075_s3 + $0x1c0] sm:$0xf0] }
 0x196   : > { %1333 = vst.msk [vmem:[#allocation2 + $0x90] sm:$0xff] %vm6610_vm3, %v1316_v40 }
 0x197   : > { %1799 = vmatpush.bf16.msrb.mxu1 %v4871_v37 }
 0x199   : > { %v1281_v53 = vpop.f32.mrf.mxu2  ;;  %v1142_v57 = vpop.f32.mrf.mxu1  ;;  %4822 = vmatmul.msk.bf16.gmra.mxu3 %vm747_vm1, %v6451_v10 }
 0x19a   : > { %v1282_v55 = vadd.f32 %v1281_v53, %v1232_v38  ;;  %v1235_v56 = vpop.f32.mrf.mxu0  ;;  %v5632_v38 = vld [vmem:[%s8075_s3 + $0x1bc] sm:$0xf] }
 0x19b   : > { %v4875_v40 = vor.u32 %v5632_v38, %v4872_v39 }
 0x19c   : > { %v1317_v58 = vpack.c.bf16 %v1282_v55, %v1184_v54  ;;  %1479 = vmatmul.bf16.gmra.mxu1 %v6479_v23  ;;  %v1191_v59 = vpop.f32.mrf.mxu3 }
 0x19d   : > { %1572 = vmatmul.bf16.gmra.mxu0 %v6453_v11  ;;  %v1192_v26 = vadd.f32 %v1191_v59, %v1142_v57  ;;  %v4862_v59 = vld [vmem:[%s8075_s3 + $0x1a8] sm:$0xf] }
 0x19e   : > { %1334 = vst.msk [vmem:[#allocation2 + $0x98] sm:$0xff] %vm6610_vm3, %v1317_v58  ;;  %4829 = vmatmul.msk.bf16.gmra.mxu2 %vm747_vm1, %v6425_v61  ;;  %1897 = vmatpush.bf16.msrb.mxu0 %v4875_v40 }
 0x1a1   : > { %v1284_v1 = vpop.f32.mrf.mxu2  ;;  %v1144_v4 = vpop.f32.mrf.mxu1 }
 0x1a2   : > { %v1285_v2 = vadd.f32 %v1284_v1, %v1235_v56  ;;  %v1237_v3 = vpop.f32.mrf.mxu0 }
 0x1a4   : > { %v1318_v5 = vpack.c.bf16 %v1285_v2, %v1187_v0  ;;  %v1193_v9 = vpop.f32.mrf.mxu3  ;;  %v5631_v0 = vld [vmem:[%s8075_s3 + $0x1ac] sm:$0xf0] }
 0x1a5   : > { %v1194_v43 = vadd.f32 %v1193_v9, %v1144_v4  ;;  %v4863_v2 = vor.u32 %v5631_v0, %v4862_v59  ;;  %v4864_v4 = vld [vmem:[%s8075_s3 + $0x1b0] sm:$0xf0] }
 0x1a6   : > { %1335 = vst.msk [vmem:[#allocation2 + $0xa0] sm:$0xff] %vm6610_vm3, %v1318_v5 }
 0x1a7   : > { %1800 = vmatpush.bf16.msrb.mxu1 %v4863_v2 }
 0x1a9   : > { %v1286_v16 = vpop.f32.mrf.mxu2  ;;  %v1147_v21 = vpop.f32.mrf.mxu1  ;;  %4823 = vmatmul.msk.bf16.gmra.mxu3 %vm747_vm1, %v6477_v22 }
 0x1aa   : > { %v1287_v19 = vadd.f32 %v1286_v16, %v1237_v3  ;;  %v1240_v20 = vpop.f32.mrf.mxu0  ;;  %v5630_v3 = vld [vmem:[%s8075_s3 + $0x1ac] sm:$0xf] }
 0x1ab   : > { %v4867_v5 = vor.u32 %v5630_v3, %v4864_v4 }
 0x1ac   : > { %v1319_v24 = vpack.c.bf16 %v1287_v19, %v1189_v17  ;;  %1484 = vmatmul.bf16.gmra.mxu1 %v6505_v35  ;;  %v1196_v25 = vpop.f32.mrf.mxu3 }
 0x1ad   : > { %1577 = vmatmul.bf16.gmra.mxu0 %v6479_v23  ;;  %v1197_v53 = vadd.f32 %v1196_v25, %v1147_v21  ;;  %v4854_v25 = vld [vmem:[%s8075_s3 + $0x198] sm:$0xf] }
 0x1ae   : > { %1336 = vst.msk [vmem:[#allocation2 + $0xa8] sm:$0xff] %vm6610_vm3, %v1319_v24  ;;  %4830 = vmatmul.msk.bf16.gmra.mxu2 %vm747_vm1, %v6451_v10  ;;  %1898 = vmatpush.bf16.msrb.mxu0 %v4867_v5 }
 0x1b1   : > { %v1289_v27 = vpop.f32.mrf.mxu2  ;;  %v1149_v30 = vpop.f32.mrf.mxu1 }
 0x1b2   : > { %v1290_v28 = vadd.f32 %v1289_v27, %v1240_v20  ;;  %v1242_v29 = vpop.f32.mrf.mxu0 }
 0x1b4   : > { %v1320_v31 = vpack.c.bf16 %v1290_v28, %v1192_v26  ;;  %v1198_v36 = vpop.f32.mrf.mxu3  ;;  %v5629_v26 = vld [vmem:[%s8075_s3 + $0x19c] sm:$0xf0] }
 0x1b5   : > { %v1199_v7 = vadd.f32 %v1198_v36, %v1149_v30  ;;  %v4855_v28 = vor.u32 %v5629_v26, %v4854_v25  ;;  %v4856_v30 = vld [vmem:[%s8075_s3 + $0x1a0] sm:$0xf0] }
 0x1b6   : > { %1337 = vst.msk [vmem:[#allocation2 + $0xb0] sm:$0xff] %vm6610_vm3, %v1320_v31 }
 0x1b7   : > { %1801 = vmatpush.bf16.msrb.mxu1 %v4855_v28 }
 0x1b9   : > { %v1291_v42 = vpop.f32.mrf.mxu2  ;;  %v1152_v50 = vpop.f32.mrf.mxu1  ;;  %4824 = vmatmul.msk.bf16.gmra.mxu3 %vm747_vm1, %v6503_v34 }
 0x1ba   : > { %v1292_v44 = vadd.f32 %v1291_v42, %v1242_v29  ;;  %v1245_v46 = vpop.f32.mrf.mxu0  ;;  %v5628_v29 = vld [vmem:[%s8075_s3 + $0x19c] sm:$0xf] }
 0x1bb   : > { %v4859_v31 = vor.u32 %v5628_v29, %v4856_v30 }
 0x1bc   : > { %v1321_v51 = vpack.c.bf16 %v1292_v44, %v1194_v43  ;;  %1489 = vmatmul.bf16.gmra.mxu1 %v6531_v49  ;;  %v1201_v52 = vpop.f32.mrf.mxu3 }
 0x1bd   : > { %1582 = vmatmul.bf16.gmra.mxu0 %v6505_v35  ;;  %v1202_v16 = vadd.f32 %v1201_v52, %v1152_v50 }
 0x1be   : > { %1338 = vst.msk [vmem:[#allocation2 + $0xb8] sm:$0xff] %vm6610_vm3, %v1321_v51  ;;  %4831 = vmatmul.msk.bf16.gmra.mxu2 %vm747_vm1, %v6477_v22  ;;  %1899 = vmatpush.bf16.msrb.mxu0 %v4859_v31 }
 0x1c1   : > { %v1294_v54 = vpop.f32.mrf.mxu2  ;;  %v1154_v57 = vpop.f32.mrf.mxu1 }
 0x1c2   : > { %v1295_v55 = vadd.f32 %v1294_v54, %v1245_v46  ;;  %v1247_v56 = vpop.f32.mrf.mxu0 }
 0x1c4   : > { %v1322_v58 = vpack.c.bf16 %v1295_v55, %v1197_v53  ;;  %v1203_v1 = vpop.f32.mrf.mxu3 }
 0x1c5   : > { %v1204_v33 = vadd.f32 %v1203_v1, %v1154_v57 }
 0x1c6   : > { %1339 = vst.msk [vmem:[#allocation2 + $0xc0] sm:$0xff] %vm6610_vm3, %v1322_v58 }
 0x1c9   : > { %v1296_v6 = vpop.f32.mrf.mxu2  ;;  %v1157_v13 = vpop.f32.mrf.mxu1  ;;  %4825 = vmatmul.msk.bf16.gmra.mxu3 %vm747_vm1, %v6529_v47 }
 0x1ca   : > { %v1297_v9 = vadd.f32 %v1296_v6, %v1247_v56  ;;  %v1250_v12 = vpop.f32.mrf.mxu0 }
 0x1cc   : > { %v1323_v14 = vpack.c.bf16 %v1297_v9, %v1199_v7  ;;  %1494 = vmatmul.bf16.gmra.mxu1 %v6557_v63  ;;  %v1206_v15 = vpop.f32.mrf.mxu3 }
 0x1cd   : > { %1587 = vmatmul.bf16.gmra.mxu0 %v6531_v49  ;;  %v1207_v42 = vadd.f32 %v1206_v15, %v1157_v13 }
 0x1ce   : > { %1340 = vst.msk [vmem:[#allocation2 + $0xc8] sm:$0xff] %vm6610_vm3, %v1323_v14  ;;  %4832 = vmatmul.msk.bf16.gmra.mxu2 %vm747_vm1, %v6503_v34 }
 0x1d1   : > { %v1299_v17 = vpop.f32.mrf.mxu2  ;;  %v1159_v21 = vpop.f32.mrf.mxu1 }
 0x1d2   : > { %v1300_v19 = vadd.f32 %v1299_v17, %v1250_v12  ;;  %v1252_v20 = vpop.f32.mrf.mxu0 }
 0x1d4   : > { %v1324_v24 = vpack.c.bf16 %v1300_v19, %v1202_v16  ;;  %v1208_v27 = vpop.f32.mrf.mxu3 }
 0x1d5   : > { %v1209_v54 = vadd.f32 %v1208_v27, %v1159_v21 }
 0x1d6   : > { %1341 = vst.msk [vmem:[#allocation2 + $0xd0] sm:$0xff] %vm6610_vm3, %v1324_v24 }
 0x1d9   : > { %v1301_v32 = vpop.f32.mrf.mxu2  ;;  %v1162_v38 = vpop.f32.mrf.mxu1  ;;  %4826 = vmatmul.msk.bf16.gmra.mxu3 %vm747_vm1, %v6555_v60 }
 0x1da   : > { %v1302_v36 = vadd.f32 %v1301_v32, %v1252_v20  ;;  %v1255_v37 = vpop.f32.mrf.mxu0 }
 0x1dc   : > { %v1325_v39 = vpack.c.bf16 %v1302_v36, %v1204_v33  ;;  %1499 = vmatmul.bf16.gmra.mxu1 %v6584_v18  ;;  %v1211_v40 = vpop.f32.mrf.mxu3 }
 0x1dd   : > { %1592 = vmatmul.bf16.gmra.mxu0 %v6557_v63  ;;  %v1212_v0 = vadd.f32 %v1211_v40, %v1162_v38 }
 0x1de   : > { %1342 = vst.msk [vmem:[#allocation2 + $0xd8] sm:$0xff] %vm6610_vm3, %v1325_v39  ;;  %4833 = vmatmul.msk.bf16.gmra.mxu2 %vm747_vm1, %v6529_v47 }
 0x1e1   : > { %v1304_v43 = vpop.f32.mrf.mxu2  ;;  %v1164_v50 = vpop.f32.mrf.mxu1 }
 0x1e2   : > { %v1305_v44 = vadd.f32 %v1304_v43, %v1255_v37  ;;  %v1257_v46 = vpop.f32.mrf.mxu0 }
 0x1e4   : > { %v1326_v51 = vpack.c.bf16 %v1305_v44, %v1207_v42  ;;  %v1213_v52 = vpop.f32.mrf.mxu3 }
 0x1e5   : > { %v1214_v9 = vadd.f32 %v1213_v52, %v1164_v50 }
 0x1e6   : > { %1343 = vst.msk [vmem:[#allocation2 + $0xe0] sm:$0xff] %vm6610_vm3, %v1326_v51 }
 0x1e9   : > { %v1306_v53 = vpop.f32.mrf.mxu2  ;;  %v1465_v57 = vpop.f32.mrf.mxu1  ;;  %4916 = vmatmul.msk.bf16.vlgmr.msrb.gmra.mxu3 %vm747_vm1, %v6329_v8 }
 0x1ea   : > { %v1307_v55 = vadd.f32 %v1306_v53, %v1257_v46  ;;  %v1260_v56 = vpop.f32.mrf.mxu0 }
 0x1ec   : > { %v1327_v58 = vpack.c.bf16 %v1307_v55, %v1209_v54  ;;  %1802 = vmatmul.bf16.vlgmr.msrb.gmra.mxu1 %v6400_v48  ;;  %v1514_v59 = vpop.f32.mrf.mxu3 }
 0x1ed   : > { %1597 = vmatmul.bf16.gmra.mxu0 %v6584_v18  ;;  %v1515_v17 = vadd.f32 %v1514_v59, %v1465_v57 }
 0x1ee   : > { %1344 = vst.msk [vmem:[#allocation2 + $0xe8] sm:$0xff] %vm6610_vm3, %v1327_v58  ;;  %4834 = vmatmul.msk.bf16.gmra.mxu2 %vm747_vm1, %v6555_v60 }
 0x1f1   : > { %v1309_v1 = vpop.f32.mrf.mxu2  ;;  %v1467_v4 = vpop.f32.mrf.mxu1 }
 0x1f2   : > { %v1310_v2 = vadd.f32 %v1309_v1, %v1260_v56  ;;  %v1262_v3 = vpop.f32.mrf.mxu0 }
 0x1f4   : > { %v1328_v5 = vpack.c.bf16 %v1310_v2, %v1212_v0  ;;  %v1516_v6 = vpop.f32.mrf.mxu3 }
 0x1f5   : > { %v1517_v27 = vadd.f32 %v1516_v6, %v1467_v4 }
 0x1f6   : > { %1345 = vst.msk [vmem:[#allocation2 + $0xf0] sm:$0xff] %vm6610_vm3, %v1328_v5 }
 0x1f9   : > { %v1311_v7 = vpop.f32.mrf.mxu2  ;;  %v1470_v14 = vpop.f32.mrf.mxu1  ;;  %4917 = vmatmul.msk.bf16.gmra.mxu3 %vm747_vm1, %v6392_v45 }
 0x1fa   : > { %v1312_v12 = vadd.f32 %v1311_v7, %v1262_v3  ;;  %v1563_v13 = vpop.f32.mrf.mxu0 }
 0x1fc   : > { %v1329_v15 = vpack.c.bf16 %v1312_v12, %v1214_v9  ;;  %1807 = vmatmul.bf16.gmra.mxu1 %v6427_v62  ;;  %v1519_v16 = vpop.f32.mrf.mxu3 }
 0x1fd   : > { %1900 = vmatmul.bf16.vlgmr.msrb.gmra.mxu0 %v6400_v48  ;;  %v1520_v32 = vadd.f32 %v1519_v16, %v1470_v14 }
 0x1fe   : > { %1346 = vst.msk [vmem:[#allocation2 + $0xf8] sm:$0xff] %vm6610_vm3, %v1329_v15  ;;  %4924 = vmatmul.msk.bf16.vlgmr.msrb.gmra.mxu2 %vm747_vm1, %v6329_v8 }
 0x201   : > { %v1612_v19 = vpop.f32.mrf.mxu2  ;;  %v1472_v24 = vpop.f32.mrf.mxu1 }
 0x202   : > { %v1613_v20 = vadd.f32 %v1612_v19, %v1563_v13  ;;  %v1565_v21 = vpop.f32.mrf.mxu0 }
 0x204   : > { %v1652_v25 = vpack.c.bf16 %v1613_v20, %v1515_v17  ;;  %v1521_v26 = vpop.f32.mrf.mxu3 }
 0x205   : > { %v1522_v42 = vadd.f32 %v1521_v26, %v1472_v24 }
 0x206   : > { %1669 = vst.msk [vmem:[#allocation2 + $0x100] sm:$0xff] %vm6610_vm3, %v1652_v25 }
 0x209   : > { %v1614_v48 = vpop.f32.mrf.mxu2  ;;  %v1475_v30 = vpop.f32.mrf.mxu1  ;;  %4918 = vmatmul.msk.bf16.gmra.mxu3 %vm747_vm1, %v6425_v61 }
 0x20a   : > { %v1615_v28 = vadd.f32 %v1614_v48, %v1565_v21  ;;  %v1568_v29 = vpop.f32.mrf.mxu0 }
 0x20c   : > { %v1653_v31 = vpack.c.bf16 %v1615_v28, %v1517_v27  ;;  %1812 = vmatmul.bf16.gmra.mxu1 %v6453_v11  ;;  %v1524_v8 = vpop.f32.mrf.mxu3 }
 0x20d   : > { %1905 = vmatmul.bf16.gmra.mxu0 %v6427_v62  ;;  %v1525_v51 = vadd.f32 %v1524_v8, %v1475_v30 }
 0x20e   : > { %1670 = vst.msk [vmem:[#allocation2 + $0x108] sm:$0xff] %vm6610_vm3, %v1653_v31  ;;  %4925 = vmatmul.msk.bf16.gmra.mxu2 %vm747_vm1, %v6392_v45 }
 0x211   : > { %v1617_v33 = vpop.f32.mrf.mxu2  ;;  %v1477_v38 = vpop.f32.mrf.mxu1 }
 0x212   : > { %v1618_v36 = vadd.f32 %v1617_v33, %v1568_v29  ;;  %v1570_v37 = vpop.f32.mrf.mxu0 }
 0x214   : > { %v1654_v39 = vpack.c.bf16 %v1618_v36, %v1520_v32  ;;  %v1526_v40 = vpop.f32.mrf.mxu3 }
 0x215   : > { %v1527_v58 = vadd.f32 %v1526_v40, %v1477_v38 }
 0x216   : > { %1671 = vst.msk [vmem:[#allocation2 + $0x110] sm:$0xff] %vm6610_vm3, %v1654_v39 }
 0x219   : > { %v1619_v62 = vpop.f32.mrf.mxu2  ;;  %v1480_v46 = vpop.f32.mrf.mxu1  ;;  %4919 = vmatmul.msk.bf16.gmra.mxu3 %vm747_vm1, %v6451_v10 }
 0x21a   : > { %v1620_v43 = vadd.f32 %v1619_v62, %v1570_v37  ;;  %v1573_v44 = vpop.f32.mrf.mxu0 }
 0x21c   : > { %v1655_v50 = vpack.c.bf16 %v1620_v43, %v1522_v42  ;;  %1817 = vmatmul.bf16.gmra.mxu1 %v6479_v23  ;;  %v1529_v45 = vpop.f32.mrf.mxu3 }
 0x21d   : > { %1910 = vmatmul.bf16.gmra.mxu0 %v6453_v11  ;;  %v1530_v3 = vadd.f32 %v1529_v45, %v1480_v46 }
 0x21e   : > { %1672 = vst.msk [vmem:[#allocation2 + $0x118] sm:$0xff] %vm6610_vm3, %v1655_v50  ;;  %4926 = vmatmul.msk.bf16.gmra.mxu2 %vm747_vm1, %v6425_v61 }
 0x221   : > { %v1622_v52 = vpop.f32.mrf.mxu2  ;;  %v1482_v55 = vpop.f32.mrf.mxu1 }
 0x222   : > { %v1623_v53 = vadd.f32 %v1622_v52, %v1573_v44  ;;  %v1575_v54 = vpop.f32.mrf.mxu0 }
 0x224   : > { %v1656_v56 = vpack.c.bf16 %v1623_v53, %v1525_v51  ;;  %v1531_v57 = vpop.f32.mrf.mxu3 }
 0x225   : > { %v1532_v13 = vadd.f32 %v1531_v57, %v1482_v55 }
 0x226   : > { %1673 = vst.msk [vmem:[#allocation2 + $0x120] sm:$0xff] %vm6610_vm3, %v1656_v56 }
 0x229   : > { %v1624_v11 = vpop.f32.mrf.mxu2  ;;  %v1485_v1 = vpop.f32.mrf.mxu1  ;;  %4920 = vmatmul.msk.bf16.gmra.mxu3 %vm747_vm1, %v6477_v22 }
 0x22a   : > { %v1625_v59 = vadd.f32 %v1624_v11, %v1575_v54  ;;  %v1578_v0 = vpop.f32.mrf.mxu0 }
 0x22c   : > { %v1657_v2 = vpack.c.bf16 %v1625_v59, %v1527_v58  ;;  %1822 = vmatmul.bf16.gmra.mxu1 %v6505_v35  ;;  %v1534_v61 = vpop.f32.mrf.mxu3 }
 0x22d   : > { %1915 = vmatmul.bf16.gmra.mxu0 %v6479_v23  ;;  %v1535_v19 = vadd.f32 %v1534_v61, %v1485_v1 }
 0x22e   : > { %1674 = vst.msk [vmem:[#allocation2 + $0x128] sm:$0xff] %vm6610_vm3, %v1657_v2  ;;  %4927 = vmatmul.msk.bf16.gmra.mxu2 %vm747_vm1, %v6451_v10 }
 0x231   : > { %v1627_v4 = vpop.f32.mrf.mxu2  ;;  %v1487_v7 = vpop.f32.mrf.mxu1 }
 0x232   : > { %v1628_v5 = vadd.f32 %v1627_v4, %v1578_v0  ;;  %v1580_v6 = vpop.f32.mrf.mxu0 }
 0x234   : > { %v1658_v9 = vpack.c.bf16 %v1628_v5, %v1530_v3  ;;  %v1536_v12 = vpop.f32.mrf.mxu3 }
 0x235   : > { %v1537_v27 = vadd.f32 %v1536_v12, %v1487_v7 }
 0x236   : > { %1675 = vst.msk [vmem:[#allocation2 + $0x130] sm:$0xff] %vm6610_vm3, %v1658_v9 }
 0x239   : > { %v1629_v23 = vpop.f32.mrf.mxu2  ;;  %v1490_v16 = vpop.f32.mrf.mxu1  ;;  %4921 = vmatmul.msk.bf16.gmra.mxu3 %vm747_vm1, %v6503_v34 }
 0x23a   : > { %v1630_v14 = vadd.f32 %v1629_v23, %v1580_v6  ;;  %v1583_v15 = vpop.f32.mrf.mxu0 }
 0x23c   : > { %v1659_v17 = vpack.c.bf16 %v1630_v14, %v1532_v13  ;;  %1827 = vmatmul.bf16.gmra.mxu1 %v6531_v49  ;;  %v1539_v10 = vpop.f32.mrf.mxu3 }
 0x23d   : > { %1920 = vmatmul.bf16.gmra.mxu0 %v6505_v35  ;;  %v1540_v8 = vadd.f32 %v1539_v10, %v1490_v16 }
 0x23e   : > { %1676 = vst.msk [vmem:[#allocation2 + $0x138] sm:$0xff] %vm6610_vm3, %v1659_v17  ;;  %4928 = vmatmul.msk.bf16.gmra.mxu2 %vm747_vm1, %v6477_v22 }
 0x241   : > { %v1632_v20 = vpop.f32.mrf.mxu2  ;;  %v1492_v25 = vpop.f32.mrf.mxu1 }
 0x242   : > { %v1633_v21 = vadd.f32 %v1632_v20, %v1583_v15  ;;  %v1585_v24 = vpop.f32.mrf.mxu0 }
 0x244   : > { %v1660_v26 = vpack.c.bf16 %v1633_v21, %v1535_v19  ;;  %v1541_v48 = vpop.f32.mrf.mxu3 }
 0x245   : > { %v1542_v40 = vadd.f32 %v1541_v48, %v1492_v25 }
 0x246   : > { %1677 = vst.msk [vmem:[#allocation2 + $0x140] sm:$0xff] %vm6610_vm3, %v1660_v26 }
 0x249   : > { %v1634_v35 = vpop.f32.mrf.mxu2  ;;  %v1495_v30 = vpop.f32.mrf.mxu1  ;;  %4922 = vmatmul.msk.bf16.gmra.mxu3 %vm747_vm1, %v6529_v47 }
 0x24a   : > { %v1635_v28 = vadd.f32 %v1634_v35, %v1585_v24  ;;  %v1588_v29 = vpop.f32.mrf.mxu0 }
 0x24c   : > { %v1661_v31 = vpack.c.bf16 %v1635_v28, %v1537_v27  ;;  %1832 = vmatmul.bf16.gmra.mxu1 %v6557_v63  ;;  %v1544_v22 = vpop.f32.mrf.mxu3 }
 0x24d   : > { %1925 = vmatmul.bf16.gmra.mxu0 %v6531_v49  ;;  %v1545_v46 = vadd.f32 %v1544_v22, %v1495_v30 }
 0x24e   : > { %1678 = vst.msk [vmem:[#allocation2 + $0x148] sm:$0xff] %vm6610_vm3, %v1661_v31  ;;  %4929 = vmatmul.msk.bf16.gmra.mxu2 %vm747_vm1, %v6503_v34 }
 0x251   : > { %v1637_v32 = vpop.f32.mrf.mxu2  ;;  %v1497_v37 = vpop.f32.mrf.mxu1 }
 0x252   : > { %v1638_v33 = vadd.f32 %v1637_v32, %v1588_v29  ;;  %v1590_v36 = vpop.f32.mrf.mxu0 }
 0x254   : > { %v1662_v38 = vpack.c.bf16 %v1638_v33, %v1540_v8  ;;  %v1546_v39 = vpop.f32.mrf.mxu3 }
 0x255   : > { %v1547_v55 = vadd.f32 %v1546_v39, %v1497_v37 }
 0x256   : > { %1679 = vst.msk [vmem:[#allocation2 + $0x150] sm:$0xff] %vm6610_vm3, %v1662_v38 }
 0x259   : > { %v1639_v49 = vpop.f32.mrf.mxu2  ;;  %v1500_v43 = vpop.f32.mrf.mxu1  ;;  %4923 = vmatmul.msk.bf16.gmra.mxu3 %vm747_vm1, %v6555_v60 }
 0x25a   : > { %v1640_v62 = vadd.f32 %v1639_v49, %v1590_v36  ;;  %v1593_v42 = vpop.f32.mrf.mxu0 }
 0x25c   : > { %v1663_v44 = vpack.c.bf16 %v1640_v62, %v1542_v40  ;;  %1837 = vmatmul.bf16.gmra.mxu1 %v6584_v18  ;;  %v1549_v34 = vpop.f32.mrf.mxu3 }
 0x25d   : > { %1930 = vmatmul.bf16.gmra.mxu0 %v6557_v63  ;;  %v1550_v59 = vadd.f32 %v1549_v34, %v1500_v43 }
 0x25e   : > { %1680 = vst.msk [vmem:[#allocation2 + $0x158] sm:$0xff] %vm6610_vm3, %v1663_v44  ;;  %4930 = vmatmul.msk.bf16.gmra.mxu2 %vm747_vm1, %v6529_v47 }
 0x261   : > { %v1642_v50 = vpop.f32.mrf.mxu2  ;;  %v1502_v52 = vpop.f32.mrf.mxu1 }
 0x262   : > { %v1643_v45 = vadd.f32 %v1642_v50, %v1593_v42  ;;  %v1595_v51 = vpop.f32.mrf.mxu0 }
 0x264   : > { %v1664_v53 = vpack.c.bf16 %v1643_v45, %v1545_v46  ;;  %v1551_v54 = vpop.f32.mrf.mxu3 }
 0x265   : > { %v1552_v6 = vadd.f32 %v1551_v54, %v1502_v52 }
 0x266   : > { %1681 = vst.msk [vmem:[#allocation2 + $0x160] sm:$0xff] %vm6610_vm3, %v1664_v53 }
 0x269   : > { %v1644_v63 = vpop.f32.mrf.mxu2  ;;  %v1803_v11 = vpop.f32.mrf.mxu1 }
 0x26a   : > { %v1645_v56 = vadd.f32 %v1644_v63, %v1595_v51  ;;  %v1598_v57 = vpop.f32.mrf.mxu0 }
 0x26c   : > { %v1665_v58 = vpack.c.bf16 %v1645_v56, %v1547_v55  ;;  %v1852_v47 = vpop.f32.mrf.mxu3 }
 0x26d   : > { %1935 = vmatmul.bf16.gmra.mxu0 %v6584_v18  ;;  %v1853_v23 = vadd.f32 %v1852_v47, %v1803_v11 }
 0x26e   : > { %1682 = vst.msk [vmem:[#allocation2 + $0x168] sm:$0xff] %vm6610_vm3, %v1665_v58  ;;  %4931 = vmatmul.msk.bf16.gmra.mxu2 %vm747_vm1, %v6555_v60 }
 0x271   : > { %v1647_v0 = vpop.f32.mrf.mxu2  ;;  %v1805_v61 = vpop.f32.mrf.mxu1 }
 0x272   : > { %v1648_v1 = vadd.f32 %v1647_v0, %v1598_v57  ;;  %v1600_v2 = vpop.f32.mrf.mxu0 }
 0x274   : > { %v1666_v3 = vpack.c.bf16 %v1648_v1, %v1550_v59  ;;  %v1854_v4 = vpop.f32.mrf.mxu3 }
 0x275   : > { %v1855_v20 = vadd.f32 %v1854_v4, %v1805_v61 }
 0x276   : > { %1683 = vst.msk [vmem:[#allocation2 + $0x170] sm:$0xff] %vm6610_vm3, %v1666_v3 }
 0x279   : > { %v1649_v5 = vpop.f32.mrf.mxu2  ;;  %v1808_v9 = vpop.f32.mrf.mxu1 }
 0x27a   : > { %v1650_v18 = vadd.f32 %v1649_v5, %v1600_v2  ;;  %v1901_v7 = vpop.f32.mrf.mxu0 }
 0x27c   : > { %v1667_v12 = vpack.c.bf16 %v1650_v18, %v1552_v6  ;;  %v1857_v60 = vpop.f32.mrf.mxu3 }
 0x27d   : > { %v1858_v35 = vadd.f32 %v1857_v60, %v1808_v9 }
 0x27e   : > { %1684 = vst.msk [vmem:[#allocation2 + $0x178] sm:$0xff] %vm6610_vm3, %v1667_v12 }
 0x281   : > { %v1950_v13 = vpop.f32.mrf.mxu2  ;;  %v1810_v16 = vpop.f32.mrf.mxu1 }
 0x282   : > { %v1951_v14 = vadd.f32 %v1950_v13, %v1901_v7  ;;  %v1903_v15 = vpop.f32.mrf.mxu0 }
 0x284   : > { %v1990_v17 = vpack.c.bf16 %v1951_v14, %v1853_v23  ;;  %v1859_v10 = vpop.f32.mrf.mxu3 }
 0x285   : > { %v1860_v32 = vadd.f32 %v1859_v10, %v1810_v16 }
 0x286   : > { %2007 = vst.msk [vmem:[#allocation2 + $0x180] sm:$0xff] %vm6610_vm3, %v1990_v17 }
 0x289   : > { %v1952_v19 = vpop.f32.mrf.mxu2  ;;  %v1813_v25 = vpop.f32.mrf.mxu1 }
 0x28a   : > { %v1953_v21 = vadd.f32 %v1952_v19, %v1903_v15  ;;  %v1906_v24 = vpop.f32.mrf.mxu0 }
 0x28c   : > { %v1991_v26 = vpack.c.bf16 %v1953_v21, %v1855_v20  ;;  %v1862_v48 = vpop.f32.mrf.mxu3 }
 0x28d   : > { %v1863_v49 = vadd.f32 %v1862_v48, %v1813_v25 }
 0x28e   : > { %2008 = vst.msk [vmem:[#allocation2 + $0x188] sm:$0xff] %vm6610_vm3, %v1991_v26 }
 0x291   : > { %v1955_v27 = vpop.f32.mrf.mxu2  ;;  %v1815_v30 = vpop.f32.mrf.mxu1 }
 0x292   : > { %v1956_v28 = vadd.f32 %v1955_v27, %v1906_v24  ;;  %v1908_v29 = vpop.f32.mrf.mxu0 }
 0x294   : > { %v1992_v31 = vpack.c.bf16 %v1956_v28, %v1858_v35  ;;  %v1864_v22 = vpop.f32.mrf.mxu3 }
 0x295   : > { %v1865_v50 = vadd.f32 %v1864_v22, %v1815_v30 }
 0x296   : > { %2009 = vst.msk [vmem:[#allocation2 + $0x190] sm:$0xff] %vm6610_vm3, %v1992_v31 }
 0x299   : > { %v1957_v8 = vpop.f32.mrf.mxu2  ;;  %v1818_v38 = vpop.f32.mrf.mxu1 }
 0x29a   : > { %v1958_v33 = vadd.f32 %v1957_v8, %v1908_v29  ;;  %v1911_v36 = vpop.f32.mrf.mxu0  ;;  %v6062_v29 = vmov 0.0  }
 0x29b   : > { %2023 = vst [vmem:[%s6254_s24] sm:$0xff] %v6062_v29 }
 0x29c   : > { %v1993_v37 = vpack.c.bf16 %v1958_v33, %v1860_v32  ;;  %v1867_v39 = vpop.f32.mrf.mxu3  ;;  %2024 = vst [vmem:[%s6254_s24 + $0x8] sm:$0xff] %v6062_v29 }
 0x29d   : > { %v1868_v53 = vadd.f32 %v1867_v39, %v1818_v38  ;;  %2025 = vst [vmem:[%s6254_s24 + $0x10] sm:$0xff] %v6062_v29 }
 0x29e   : > { %2010 = vst.msk [vmem:[#allocation2 + $0x198] sm:$0xff] %vm6610_vm3, %v1993_v37 }
 0x29f   : > { %2026 = vst [vmem:[%s6254_s24 + $0x18] sm:$0xff] %v6062_v29 }
 0x2a0   : > { %2027 = vst [vmem:[%s6254_s24 + $0x20] sm:$0xff] %v6062_v29 }
 0x2a1   : > { %v1960_v40 = vpop.f32.mrf.mxu2  ;;  %v1820_v44 = vpop.f32.mrf.mxu1  ;;  %2028 = vst [vmem:[%s6254_s24 + $0x28] sm:$0xff] %v6062_v29 }
 0x2a2   : > { %v1961_v62 = vadd.f32 %v1960_v40, %v1911_v36  ;;  %v1913_v42 = vpop.f32.mrf.mxu0  ;;  %2029 = vst [vmem:[%s6254_s24 + $0x30] sm:$0xff] %v6062_v29 }
 0x2a3   : > { %2030 = vst [vmem:[%s6254_s24 + $0x38] sm:$0xff] %v6062_v29 }
 0x2a4   : > { %v1994_v43 = vpack.c.bf16 %v1961_v62, %v1863_v49  ;;  %v1869_v34 = vpop.f32.mrf.mxu3  ;;  %2031 = vst [vmem:[%s6254_s24 + $0x40] sm:$0xff] %v6062_v29 }
 0x2a5   : > { %v1870_v47 = vadd.f32 %v1869_v34, %v1820_v44  ;;  %2032 = vst [vmem:[%s6254_s24 + $0x48] sm:$0xff] %v6062_v29 }
 0x2a6   : > { %2011 = vst.msk [vmem:[#allocation2 + $0x1a0] sm:$0xff] %vm6610_vm3, %v1994_v43 }
 0x2a7   : > { %2033 = vst [vmem:[%s6254_s24 + $0x50] sm:$0xff] %v6062_v29 }
 0x2a8   : > { %2034 = vst [vmem:[%s6254_s24 + $0x58] sm:$0xff] %v6062_v29 }
 0x2a9   : > { %v1962_v46 = vpop.f32.mrf.mxu2  ;;  %v1823_v54 = vpop.f32.mrf.mxu1  ;;  %2035 = vst [vmem:[%s6254_s24 + $0x60] sm:$0xff] %v6062_v29 }
 0x2aa   : > { %v1963_v45 = vadd.f32 %v1962_v46, %v1913_v42  ;;  %v1916_v51 = vpop.f32.mrf.mxu0  ;;  %2036 = vst [vmem:[%s6254_s24 + $0x68] sm:$0xff] %v6062_v29 }
 0x2ab   : > { %2037 = vst [vmem:[%s6254_s24 + $0x70] sm:$0xff] %v6062_v29 }
 0x2ac   : > { %v1995_v52 = vpack.c.bf16 %v1963_v45, %v1865_v50  ;;  %v1872_v55 = vpop.f32.mrf.mxu3  ;;  %2038 = vst [vmem:[%s6254_s24 + $0x78] sm:$0xff] %v6062_v29 }
 0x2ad   : > { %v1873_v3 = vadd.f32 %v1872_v55, %v1823_v54  ;;  %2039 = vst [vmem:[%s6254_s24 + $0x80] sm:$0xff] %v6062_v29 }
 0x2ae   : > { %2012 = vst.msk [vmem:[#allocation2 + $0x1a8] sm:$0xff] %vm6610_vm3, %v1995_v52 }
 0x2af   : > { %2040 = vst [vmem:[%s6254_s24 + $0x88] sm:$0xff] %v6062_v29 }
 0x2b0   : > { %2041 = vst [vmem:[%s6254_s24 + $0x90] sm:$0xff] %v6062_v29 }
 0x2b1   : > { %v1965_v63 = vpop.f32.mrf.mxu2  ;;  %v1825_v1 = vpop.f32.mrf.mxu1  ;;  %2042 = vst [vmem:[%s6254_s24 + $0x98] sm:$0xff] %v6062_v29 }
 0x2b2   : > { %v1966_v56 = vadd.f32 %v1965_v63, %v1916_v51  ;;  %v1918_v57 = vpop.f32.mrf.mxu0  ;;  %2043 = vst [vmem:[%s6254_s24 + $0xa0] sm:$0xff] %v6062_v29 }
 0x2b3   : > { %2044 = vst [vmem:[%s6254_s24 + $0xa8] sm:$0xff] %v6062_v29 }
 0x2b4   : > { %v1996_v11 = vpack.c.bf16 %v1966_v56, %v1868_v53  ;;  %v1874_v2 = vpop.f32.mrf.mxu3  ;;  %2045 = vst [vmem:[%s6254_s24 + $0xb0] sm:$0xff] %v6062_v29 }
 0x2b5   : > { %v1875_v60 = vadd.f32 %v1874_v2, %v1825_v1  ;;  %2046 = vst [vmem:[%s6254_s24 + $0xb8] sm:$0xff] %v6062_v29 }
 0x2b6   : > { %2013 = vst.msk [vmem:[#allocation2 + $0x1b0] sm:$0xff] %vm6610_vm3, %v1996_v11 }
 0x2b7   : > { %2047 = vst [vmem:[%s6254_s24 + $0xc0] sm:$0xff] %v6062_v29 }
 0x2b8   : > { %2048 = vst [vmem:[%s6254_s24 + $0xc8] sm:$0xff] %v6062_v29 }
 0x2b9   : > { %v1967_v58 = vpop.f32.mrf.mxu2  ;;  %v1828_v7 = vpop.f32.mrf.mxu1  ;;  %2049 = vst [vmem:[%s6254_s24 + $0xd0] sm:$0xff] %v6062_v29 }
 0x2ba   : > { %v1968_v59 = vadd.f32 %v1967_v58, %v1918_v57  ;;  %v1921_v0 = vpop.f32.mrf.mxu0  ;;  %2050 = vst [vmem:[%s6254_s24 + $0xd8] sm:$0xff] %v6062_v29 }
 0x2bb   : > { %2051 = vst [vmem:[%s6254_s24 + $0xe0] sm:$0xff] %v6062_v29 }
 0x2bc   : > { %v1997_v61 = vpack.c.bf16 %v1968_v59, %v1870_v47  ;;  %v1877_v9 = vpop.f32.mrf.mxu3  ;;  %2052 = vst [vmem:[%s6254_s24 + $0xe8] sm:$0xff] %v6062_v29 }
 0x2bd   : > { %v1878_v17 = vadd.f32 %v1877_v9, %v1828_v7  ;;  %2053 = vst [vmem:[%s6254_s24 + $0xf0] sm:$0xff] %v6062_v29 }
 0x2be   : > { %2014 = vst.msk [vmem:[#allocation2 + $0x1b8] sm:$0xff] %vm6610_vm3, %v1997_v61 }
 0x2bf   : > { %2054 = vst [vmem:[%s6254_s24 + $0xf8] sm:$0xff] %v6062_v29 }
 0x2c0   : > { %2055 = vst [vmem:[%s6254_s24 + $0x100] sm:$0xff] %v6062_v29 }
 0x2c1   : > { %v1970_v4 = vpop.f32.mrf.mxu2  ;;  %v1830_v15 = vpop.f32.mrf.mxu1  ;;  %2056 = vst [vmem:[%s6254_s24 + $0x108] sm:$0xff] %v6062_v29 }
 0x2c2   : > { %v1971_v5 = vadd.f32 %v1970_v4, %v1921_v0  ;;  %v1923_v6 = vpop.f32.mrf.mxu0  ;;  %2057 = vst [vmem:[%s6254_s24 + $0x110] sm:$0xff] %v6062_v29 }
 0x2c3   : > { %2058 = vst [vmem:[%s6254_s24 + $0x118] sm:$0xff] %v6062_v29 }
 0x2c4   : > { %v1998_v18 = vpack.c.bf16 %v1971_v5, %v1873_v3  ;;  %v1879_v16 = vpop.f32.mrf.mxu3  ;;  %2059 = vst [vmem:[%s6254_s24 + $0x120] sm:$0xff] %v6062_v29 }
 0x2c5   : > { %v1880_v48 = vadd.f32 %v1879_v16, %v1830_v15  ;;  %2060 = vst [vmem:[%s6254_s24 + $0x128] sm:$0xff] %v6062_v29 }
 0x2c6   : > { %2015 = vst.msk [vmem:[#allocation2 + $0x1c0] sm:$0xff] %vm6610_vm3, %v1998_v18 }
 0x2c7   : > { %2061 = vst [vmem:[%s6254_s24 + $0x130] sm:$0xff] %v6062_v29 }
 0x2c8   : > { %2062 = vst [vmem:[%s6254_s24 + $0x138] sm:$0xff] %v6062_v29 }
 0x2c9   : > { %v1972_v12 = vpop.f32.mrf.mxu2  ;;  %v1833_v24 = vpop.f32.mrf.mxu1  ;;  %2063 = vst [vmem:[%s6254_s24 + $0x140] sm:$0xff] %v6062_v29 }
 0x2ca   : > { %v1973_v23 = vadd.f32 %v1972_v12, %v1923_v6  ;;  %v1926_v13 = vpop.f32.mrf.mxu0  ;;  %2064 = vst [vmem:[%s6254_s24 + $0x148] sm:$0xff] %v6062_v29 }
 0x2cb   : > { %2065 = vst [vmem:[%s6254_s24 + $0x150] sm:$0xff] %v6062_v29 }
 0x2cc   : > { %v1999_v14 = vpack.c.bf16 %v1973_v23, %v1875_v60  ;;  %v1882_v25 = vpop.f32.mrf.mxu3  ;;  %2066 = vst [vmem:[%s6254_s24 + $0x158] sm:$0xff] %v6062_v29 }
 0x2cd   : > { %v1883_v30 = vadd.f32 %v1882_v25, %v1833_v24  ;;  %2067 = vst [vmem:[%s6254_s24 + $0x160] sm:$0xff] %v6062_v29 }
 0x2ce   : > { %2016 = vst.msk [vmem:[#allocation2 + $0x1c8] sm:$0xff] %vm6610_vm3, %v1999_v14 }
 0x2cf   : > { %2068 = vst [vmem:[%s6254_s24 + $0x168] sm:$0xff] %v6062_v29 }
 0x2d0   : > { %2069 = vst [vmem:[%s6254_s24 + $0x170] sm:$0xff] %v6062_v29 }
 0x2d1   : > { %v1975_v10 = vpop.f32.mrf.mxu2  ;;  %v1835_v8 = vpop.f32.mrf.mxu1  ;;  %2070 = vst [vmem:[%s6254_s24 + $0x178] sm:$0xff] %v6062_v29 }
 0x2d2   : > { %v1976_v19 = vadd.f32 %v1975_v10, %v1926_v13  ;;  %v1928_v20 = vpop.f32.mrf.mxu0  ;;  %2071 = vst [vmem:[%s6254_s24 + $0x180] sm:$0xff] %v6062_v29 }
 0x2d3   : > { %2072 = vst [vmem:[%s6254_s24 + $0x188] sm:$0xff] %v6062_v29 }
 0x2d4   : > { %v2000_v21 = vpack.c.bf16 %v1976_v19, %v1878_v17  ;;  %v1884_v32 = vpop.f32.mrf.mxu3  ;;  %2073 = vst [vmem:[%s6254_s24 + $0x190] sm:$0xff] %v6062_v29 }
 0x2d5   : > { %v1885_v38 = vadd.f32 %v1884_v32, %v1835_v8  ;;  %2074 = vst [vmem:[%s6254_s24 + $0x198] sm:$0xff] %v6062_v29 }
 0x2d6   : > { %2017 = vst.msk [vmem:[#allocation2 + $0x1d0] sm:$0xff] %vm6610_vm3, %v2000_v21 }
 0x2d7   : > { %2075 = vst [vmem:[%s6254_s24 + $0x1a0] sm:$0xff] %v6062_v29 }
 0x2d8   : > { %2076 = vst [vmem:[%s6254_s24 + $0x1a8] sm:$0xff] %v6062_v29 }
 0x2d9   : > { %v1977_v26 = vpop.f32.mrf.mxu2  ;;  %v1838_v40 = vpop.f32.mrf.mxu1  ;;  %2077 = vst [vmem:[%s6254_s24 + $0x1b0] sm:$0xff] %v6062_v29 }
 0x2da   : > { %v1978_v35 = vadd.f32 %v1977_v26, %v1928_v20  ;;  %v1931_v27 = vpop.f32.mrf.mxu0  ;;  %2078 = vst [vmem:[%s6254_s24 + $0x1b8] sm:$0xff] %v6062_v29 }
 0x2db   : > { %2079 = vst [vmem:[%s6254_s24 + $0x1c0] sm:$0xff] %v6062_v29 }
 0x2dc   : > { %v2001_v28 = vpack.c.bf16 %v1978_v35, %v1880_v48  ;;  %v1887_v62 = vpop.f32.mrf.mxu3  ;;  %2080 = vst [vmem:[%s6254_s24 + $0x1c8] sm:$0xff] %v6062_v29 }
 0x2dd   : > { %v1888_v43 = vadd.f32 %v1887_v62, %v1838_v40  ;;  %2081 = vst [vmem:[%s6254_s24 + $0x1d0] sm:$0xff] %v6062_v29 }
 0x2de   : > { %2018 = vst.msk [vmem:[#allocation2 + $0x1d8] sm:$0xff] %vm6610_vm3, %v2001_v28 }
 0x2df   : > { %2082 = vst [vmem:[%s6254_s24 + $0x1d8] sm:$0xff] %v6062_v29 }
 0x2e0   : > { %2083 = vst [vmem:[%s6254_s24 + $0x1e0] sm:$0xff] %v6062_v29 }
 0x2e1   : > { %v1980_v31 = vpop.f32.mrf.mxu2  ;;  %v1840_v50 = vpop.f32.mrf.mxu1  ;;  %2084 = vst [vmem:[%s6254_s24 + $0x1e8] sm:$0xff] %v6062_v29 }
 0x2e2   : > { %v1981_v22 = vadd.f32 %v1980_v31, %v1931_v27  ;;  %v1933_v36 = vpop.f32.mrf.mxu0  ;;  %2085 = vst [vmem:[%s6254_s24 + $0x1f0] sm:$0xff] %v6062_v29 }
 0x2e3   : > { %2086 = vst [vmem:[%s6254_s24 + $0x1f8] sm:$0xff] %v6062_v29 }
 0x2e4   : > { %v2002_v33 = vpack.c.bf16 %v1981_v22, %v1883_v30  ;;  %v1889_v45 = vpop.f32.mrf.mxu3 }
 0x2e5   : > { %v1890_v53 = vadd.f32 %v1889_v45, %v1840_v50 }
 0x2e6   : > { %2019 = vst.msk [vmem:[#allocation2 + $0x1e0] sm:$0xff] %vm6610_vm3, %v2002_v33 }
 0x2e9   : > { %v1982_v37 = vpop.f32.mrf.mxu2 }
 0x2ea   : > { %v1983_v39 = vadd.f32 %v1982_v37, %v1933_v36  ;;  %v1936_v42 = vpop.f32.mrf.mxu0 }
 0x2ec   : > { %v2003_v49 = vpack.c.bf16 %v1983_v39, %v1885_v38 }
 0x2ee   : > { %2020 = vst.msk [vmem:[#allocation2 + $0x1e8] sm:$0xff] %vm6610_vm3, %v2003_v49 }
 0x2f1   : > { %v1985_v44 = vpop.f32.mrf.mxu2 }
 0x2f2   : > { %v1986_v34 = vadd.f32 %v1985_v44, %v1936_v42  ;;  %v1938_v51 = vpop.f32.mrf.mxu0 }
 0x2f4   : > { %v2004_v46 = vpack.c.bf16 %v1986_v34, %v1888_v43 }
 0x2f6   : > { %2021 = vst.msk [vmem:[#allocation2 + $0x1f0] sm:$0xff] %vm6610_vm3, %v2004_v46 }
 0x2f9   : > { %v1987_v52 = vpop.f32.mrf.mxu2 }
 0x2fa   : > { %v1988_v54 = vadd.f32 %v1987_v52, %v1938_v51 }
 0x2fc   : > { %v2005_v63 = vpack.c.bf16 %v1988_v54, %v1890_v53 }
 0x2fe   : > { %2022 = vst.msk [vmem:[#allocation2 + $0x1f8] sm:$0xff] %vm6610_vm3, %v2005_v63 }
 0x2ff PF: > { %v5054_v41 = vld [vmem:[%s6250_s17 + $0x70] sm:$0xf]  ;;  %v5659_v55 = vld [vmem:[%s6250_s17 + $0x74] sm:$0xf0]  ;;  %v5658_v56 = vld [vmem:[%s6250_s17 + $0x74] sm:$0xf] }
 0x300   : > { %v7181_v57 = vor.u32 %v5659_v55, %v5054_v41  ;;  %v5056_v11 = vld [vmem:[%s6250_s17 + $0x78] sm:$0xf0]  ;;  %vm2263_vm4 = vcmask 64512   ;;  %v5656_v47 = vld [vmem:[%s6250_s17 + $0x64] sm:$0xf] }
 0x301   : > { %v5059_v58 = vor.u32 %v5658_v56, %v5056_v11  ;;  %v5048_v59 = vld [vmem:[%s6250_s17 + $0x68] sm:$0xf0]  ;;  %v5046_v1 = vld [vmem:[%s6250_s17 + $0x60] sm:$0xf]  ;;  %v5657_v2 = vld [vmem:[%s6250_s17 + $0x64] sm:$0xf0] }
 0x302   : > { %2312 = vmatpush.bf16.xpose.msra.mxu0 %v7181_v57  ;;  %2523 = vmatpush.bf16.xpose.msra.mxu2 %v7181_v57  ;;  %v5051_v61 = vor.u32 %v5656_v47, %v5048_v59  ;;  %v7195_v3 = vor.u32 %v5657_v2, %v5046_v1  ;;  %v5654_v5 = vld [vmem:[%s6250_s17 + $0x54] sm:$0xf]  ;;  %v5040_v6 = vld [vmem:[%s6250_s17 + $0x58] sm:$0xf0]  ;;  %v5038_v18 = vld [vmem:[%s6250_s17 + $0x50] sm:$0xf] }
 0x303   : > { %v7189_v0 = vsel %vm2263_vm4, %v5059_v58, 0  ;;  %v5655_v7 = vld [vmem:[%s6250_s17 + $0x54] sm:$0xf0]  ;;  %v5043_v9 = vor.u32 %v5654_v5, %v5040_v6  ;;  %v5652_v23 = vld [vmem:[%s6250_s17 + $0x44] sm:$0xf] }
 0x304   : > { %2361 = vmatpush.bf16.xpose.msra.mxu1 %v7189_v0  ;;  %2572 = vmatpush.bf16.xpose.msra.mxu3 %v7189_v0  ;;  %v7198_v4 = vsel %vm2263_vm4, %v5051_v61, 0  ;;  %v7208_v12 = vor.u32 %v5655_v7, %v5038_v18  ;;  %v5032_v13 = vld [vmem:[%s6250_s17 + $0x48] sm:$0xf0]  ;;  %v5030_v14 = vld [vmem:[%s6250_s17 + $0x40] sm:$0xf] }
 0x305   : > { %v7211_v60 = vsel %vm2263_vm4, %v5043_v9, 0  ;;  %v5653_v15 = vld [vmem:[%s6250_s17 + $0x44] sm:$0xf0]  ;;  %v5035_v16 = vor.u32 %v5652_v23, %v5032_v13  ;;  %v5650_v19 = vld [vmem:[%s6250_s17 + $0x34] sm:$0xf] }
 0x306   : > { %v7221_v17 = vor.u32 %v5653_v15, %v5030_v14  ;;  %v5024_v20 = vld [vmem:[%s6250_s17 + $0x38] sm:$0xf0]  ;;  %v5022_v21 = vld [vmem:[%s6250_s17 + $0x30] sm:$0xf]  ;;  %v5651_v24 = vld [vmem:[%s6250_s17 + $0x34] sm:$0xf0] }
 0x307   : > { %v7224_v10 = vsel %vm2263_vm4, %v5035_v16, 0  ;;  %v5027_v25 = vor.u32 %v5650_v19, %v5024_v20  ;;  %v7234_v26 = vor.u32 %v5651_v24, %v5022_v21  ;;  %v5648_v35 = vld [vmem:[%s6250_s17 + $0x24] sm:$0xf]  ;;  %v5016_v27 = vld [vmem:[%s6250_s17 + $0x28] sm:$0xf0] }
 0x308   : > { %v5014_v28 = vld [vmem:[%s6250_s17 + $0x20] sm:$0xf]  ;;  %v5649_v29 = vld [vmem:[%s6250_s17 + $0x24] sm:$0xf0]  ;;  %v5019_v30 = vor.u32 %v5648_v35, %v5016_v27  ;;  %v5646_v8 = vld [vmem:[%s6250_s17 + $0x14] sm:$0xf] }
 0x309   : > { %v7237_v48 = vsel %vm2263_vm4, %v5027_v25, 0  ;;  %v7247_v31 = vor.u32 %v5649_v29, %v5014_v28  ;;  %v5008_v32 = vld [vmem:[%s6250_s17 + $0x18] sm:$0xf0]  ;;  %v5006_v33 = vld [vmem:[%s6250_s17 + $0x10] sm:$0xf] }
 0x30a   : > { %2313 = vmatpush.bf16.xpose.msra.mxu0 %v7195_v3  ;;  %2524 = vmatpush.bf16.xpose.msra.mxu2 %v7195_v3  ;;  %v7250_v22 = vsel %vm2263_vm4, %v5019_v30, 0  ;;  %v5647_v36 = vld [vmem:[%s6250_s17 + $0x14] sm:$0xf0]  ;;  %v5011_v37 = vor.u32 %v5646_v8, %v5008_v32  ;;  %v5644_v49 = vld [vmem:[%s6250_s17 + $0x4] sm:$0xf] }
 0x30b   : > { %v7260_v38 = vor.u32 %v5647_v36, %v5006_v33  ;;  %v5000_v40 = vld [vmem:[%s6250_s17 + $0x8] sm:$0xf0]  ;;  %v4998_v62 = vld [vmem:[%s6250_s17] sm:$0xf]  ;;  %v5645_v42 = vld [vmem:[%s6250_s17 + $0x4] sm:$0xf0] }
 0x30c   : > { %2362 = vmatpush.bf16.xpose.msra.mxu1 %v7198_v4  ;;  %2573 = vmatpush.bf16.xpose.msra.mxu3 %v7198_v4  ;;  %v7263_v39 = vsel %vm2263_vm4, %v5011_v37, 0  ;;  %v5003_v43 = vor.u32 %v5644_v49, %v5000_v40  ;;  %v7273_v44 = vor.u32 %v5645_v42, %v4998_v62  ;;  %v4934_v46 = vld [vmem:[#allocation2] sm:$0xf]  ;;  %v5661_v50 = vld [vmem:[#allocation2 + $0x4] sm:$0xf0]  ;;  %s5756_s17 = sshll.u32 (%p6158_p9), %s6048_s20, 7 }
 0x30d   : > { %v5070_v45 = vld [vmem:[#allocation2 + $0x80] sm:$0xf]  ;;  %v5677_v51 = vld [vmem:[#allocation2 + $0x84] sm:$0xf0]  ;;  %v5660_v52 = vld [vmem:[#allocation2 + $0x4] sm:$0xf]  ;;  %v4935_v41 = vor.u32 %v5661_v50, %v4934_v46  ;;  %s7917_s9 = scalar_lea.vmem (%p6158_p9), %s8076_s4, %s5756_s17 }
 0x30e   : > { %v7276_v34 = vsel %vm2263_vm4, %v5003_v43, 0  ;;  %v4936_v53 = vld [vmem:[#allocation2 + $0x8] sm:$0xf0]  ;;  %v5676_v54 = vld [vmem:[#allocation2 + $0x84] sm:$0xf]  ;;  %v5071_v55 = vor.u32 %v5677_v51, %v5070_v45 }
 0x30f   : > { %v5072_v63 = vld [vmem:[#allocation2 + $0x88] sm:$0xf0]  ;;  %v4939_v56 = vor.u32 %v5660_v52, %v4936_v53  ;;  %v5663_v58 = vld [vmem:[#allocation2 + $0x14] sm:$0xf0]  ;;  %v5078_v47 = vld [vmem:[#allocation2 + $0x90] sm:$0xf] }
 0x310   : > { %v5075_v11 = vor.u32 %v5676_v54, %v5072_v63  ;;  %v5679_v59 = vld [vmem:[#allocation2 + $0x94] sm:$0xf0]  ;;  %v4944_v1 = vld [vmem:[#allocation2 + $0x18] sm:$0xf0]  ;;  %v5678_v2 = vld [vmem:[#allocation2 + $0x94] sm:$0xf] }
 0x311   : > { %v5080_v61 = vld [vmem:[#allocation2 + $0x98] sm:$0xf0]  ;;  %v5079_v6 = vor.u32 %v5679_v59, %v5078_v47  ;;  %v4950_v18 = vld [vmem:[#allocation2 + $0x20] sm:$0xf]  ;;  %v5665_v7 = vld [vmem:[#allocation2 + $0x24] sm:$0xf0] }
 0x312   : > { %2314 = vmatpush.bf16.xpose.msra.mxu0 %v7208_v12  ;;  %2525 = vmatpush.bf16.xpose.msra.mxu2 %v7208_v12  ;;  %v5086_v9 = vld [vmem:[#allocation2 + $0xa0] sm:$0xf]  ;;  %v4952_v23 = vld [vmem:[#allocation2 + $0x28] sm:$0xf0]  ;;  %v5680_v13 = vld [vmem:[#allocation2 + $0xa4] sm:$0xf]  ;;  %v4951_v15 = vor.u32 %v5665_v7, %v4950_v18 }
 0x313   : > { %v5088_v14 = vld [vmem:[#allocation2 + $0xa8] sm:$0xf0]  ;;  %v4958_v19 = vld [vmem:[#allocation2 + $0x30] sm:$0xf]  ;;  %v5667_v20 = vld [vmem:[#allocation2 + $0x34] sm:$0xf0] }
 0x314   : > { %2363 = vmatpush.bf16.xpose.msra.mxu1 %v7211_v60  ;;  %2574 = vmatpush.bf16.xpose.msra.mxu3 %v7211_v60  ;;  %v5094_v21 = vld [vmem:[#allocation2 + $0xb0] sm:$0xf]  ;;  %v5683_v24 = vld [vmem:[#allocation2 + $0xb4] sm:$0xf0]  ;;  %v5666_v25 = vld [vmem:[#allocation2 + $0x34] sm:$0xf]  ;;  %v4959_v27 = vor.u32 %v5667_v20, %v4958_v19 }
 0x315   : > { %v5096_v35 = vld [vmem:[#allocation2 + $0xb8] sm:$0xf0]  ;;  %v5095_v28 = vor.u32 %v5683_v24, %v5094_v21  ;;  %v5102_v8 = vld [vmem:[#allocation2 + $0xc0] sm:$0xf]  ;;  %v5685_v32 = vld [vmem:[#allocation2 + $0xc4] sm:$0xf0] }
 0x316   : > { %v5668_v33 = vld [vmem:[#allocation2 + $0x44] sm:$0xf]  ;;  %v4968_v36 = vld [vmem:[#allocation2 + $0x48] sm:$0xf0]  ;;  %v5103_v49 = vor.u32 %v5685_v32, %v5102_v8  ;;  %v4974_v42 = vld [vmem:[#allocation2 + $0x50] sm:$0xf] }
 0x317   : > { %v5684_v37 = vld [vmem:[#allocation2 + $0xc4] sm:$0xf]  ;;  %v4971_v40 = vor.u32 %v5668_v33, %v4968_v36  ;;  %v5671_v43 = vld [vmem:[#allocation2 + $0x54] sm:$0xf0]  ;;  %v5670_v46 = vld [vmem:[#allocation2 + $0x54] sm:$0xf] }
 0x318   : > { %v4976_v50 = vld [vmem:[#allocation2 + $0x58] sm:$0xf0]  ;;  %v5686_v45 = vld [vmem:[#allocation2 + $0xd4] sm:$0xf]  ;;  %v4975_v52 = vor.u32 %v5671_v43, %v4974_v42  ;;  %v5688_v47 = vld [vmem:[#allocation2 + $0xe4] sm:$0xf] }
 0x319   : > { %v5112_v51 = vld [vmem:[#allocation2 + $0xd8] sm:$0xf0]  ;;  %v4979_v54 = vor.u32 %v5670_v46, %v4976_v50  ;;  %v5120_v59 = vld [vmem:[#allocation2 + $0xe8] sm:$0xf0]  ;;  %v5674_v18 = vld [vmem:[#allocation2 + $0x74] sm:$0xf] }
 0x31a   : > { %2315 = vmatpush.bf16.xpose.msra.mxu0 %v7221_v17  ;;  %2526 = vmatpush.bf16.xpose.msra.mxu2 %v7221_v17  ;;  %v5115_v63 = vor.u32 %v5686_v45, %v5112_v51  ;;  %v4992_v7 = vld [vmem:[#allocation2 + $0x78] sm:$0xf0]  ;;  %v5692_v19 = vld [vmem:[#allocation2 + $0x104] sm:$0xf]  ;;  %v5144_v20 = vld [vmem:[#allocation2 + $0x108] sm:$0xf0] }
 0x31b   : > { %v5708_v21 = vld [vmem:[#allocation2 + $0x184] sm:$0xf]  ;;  %v5216_v24 = vld [vmem:[#allocation2 + $0x188] sm:$0xf0]  ;;  %v5152_v42 = vld [vmem:[#allocation2 + $0x118] sm:$0xf0] }
 0x31c   : > { %2364 = vmatpush.bf16.xpose.msra.mxu1 %v7224_v10  ;;  %2575 = vmatpush.bf16.xpose.msra.mxu3 %v7224_v10  ;;  %v5710_v43 = vld [vmem:[#allocation2 + $0x194] sm:$0xf] }
 0x322   : > { %2316 = vmatpush.bf16.xpose.msra.mxu0 %v7234_v26  ;;  %2527 = vmatpush.bf16.xpose.msra.mxu2 %v7234_v26 }
 0x324   : > { %2365 = vmatpush.bf16.xpose.msra.mxu1 %v7237_v48  ;;  %2576 = vmatpush.bf16.xpose.msra.mxu3 %v7237_v48 }
 0x32a   : > { %2317 = vmatpush.bf16.xpose.msra.mxu0 %v7247_v31  ;;  %2528 = vmatpush.bf16.xpose.msra.mxu2 %v7247_v31 }
 0x32c   : > { %2366 = vmatpush.bf16.xpose.msra.mxu1 %v7250_v22  ;;  %2577 = vmatpush.bf16.xpose.msra.mxu3 %v7250_v22 }
 0x332   : > { %2318 = vmatpush.bf16.xpose.msra.mxu0 %v7260_v38  ;;  %2529 = vmatpush.bf16.xpose.msra.mxu2 %v7260_v38 }
 0x334   : > { %2367 = vmatpush.bf16.xpose.msra.mxu1 %v7263_v39  ;;  %2578 = vmatpush.bf16.xpose.msra.mxu3 %v7263_v39 }
 0x33a   : > { %2319 = vmatpush.bf16.xpose.msra.mxu0 %v7273_v44  ;;  %2530 = vmatpush.bf16.xpose.msra.mxu2 %v7273_v44 }
 0x33c   : > { %2368 = vmatpush.bf16.xpose.msra.mxu1 %v7276_v34  ;;  %2579 = vmatpush.bf16.xpose.msra.mxu3 %v7276_v34 }
 0x341   : > { %2320 = vmatmul.bf16.vlgmr.msra.gmra.mxu0 %v4935_v41  ;;  %2531 = vmatmul.bf16.vlgmr.msra.gmra.mxu2 %v5071_v55  ;;  %v4982_v41 = vld [vmem:[#allocation2 + $0x60] sm:$0xf]  ;;  %v5673_v55 = vld [vmem:[#allocation2 + $0x64] sm:$0xf0] }
 0x342   : > { %2945 = vmatpush.bf16.xpose.msrb.mxu2 %v7181_v57  ;;  %2734 = vmatpush.bf16.xpose.msrb.mxu0 %v7181_v57  ;;  %v4942_v57 = vld [vmem:[#allocation2 + $0x10] sm:$0xf] }
 0x343   : > { %5060 = vmatmul.msk.bf16.vlgmr.msra.gmra.mxu1 %vm2263_vm4, %v4939_v56  ;;  %5132 = vmatmul.msk.bf16.vlgmr.msra.gmra.mxu3 %vm2263_vm4, %v5075_v11  ;;  %v4943_v5 = vor.u32 %v5663_v58, %v4942_v57  ;;  %v5118_v56 = vld [vmem:[#allocation2 + $0xe0] sm:$0xf]  ;;  %v5689_v11 = vld [vmem:[#allocation2 + $0xe4] sm:$0xf0]  ;;  %v5672_v57 = vld [vmem:[#allocation2 + $0x64] sm:$0xf] }
 0x344   : > { %2994 = vmatpush.bf16.xpose.msrb.mxu3 %v7189_v0  ;;  %2783 = vmatpush.bf16.xpose.msrb.mxu1 %v7189_v0  ;;  %v5662_v0 = vld [vmem:[#allocation2 + $0x14] sm:$0xf]  ;;  %v4984_v58 = vld [vmem:[#allocation2 + $0x68] sm:$0xf0] }
 0x34a   : > { %2946 = vmatpush.bf16.xpose.msrb.mxu2 %v7195_v3  ;;  %2735 = vmatpush.bf16.xpose.msrb.mxu0 %v7195_v3  ;;  %v4947_v3 = vor.u32 %v5662_v0, %v4944_v1  ;;  %v4983_v0 = vor.u32 %v5673_v55, %v4982_v41  ;;  %v5119_v1 = vor.u32 %v5689_v11, %v5118_v56  ;;  %v5747_v55 = vld [vmem:[%s6252_s15 + $0xb8] sm:$0xff] }
 0x34b   : > { %v5755_v56 = vld [vmem:[%s6252_s15 + $0xf8] sm:$0xff] }
 0x34c   : > { %2995 = vmatpush.bf16.xpose.msrb.mxu3 %v7198_v4  ;;  %2784 = vmatpush.bf16.xpose.msrb.mxu1 %v7198_v4  ;;  %v5083_v4 = vor.u32 %v5678_v2, %v5080_v61  ;;  %v4987_v2 = vor.u32 %v5672_v57, %v4984_v58  ;;  %v5123_v61 = vor.u32 %v5688_v47, %v5120_v59  ;;  %v5731_v57 = vld [vmem:[%s6252_s15 + $0x38] sm:$0xff] }
 0x34d   : > { %v5739_v58 = vld [vmem:[%s6252_s15 + $0x78] sm:$0xff] }
 0x351   : > { %2325 = vmatmul.bf16.gmra.mxu0 %v4943_v5  ;;  %2536 = vmatmul.bf16.gmra.mxu2 %v5079_v6  ;;  %v4990_v5 = vld [vmem:[#allocation2 + $0x70] sm:$0xf]  ;;  %v5675_v6 = vld [vmem:[#allocation2 + $0x74] sm:$0xf0] }
 0x352   : > { %2947 = vmatpush.bf16.xpose.msrb.mxu2 %v7208_v12  ;;  %2736 = vmatpush.bf16.xpose.msrb.mxu0 %v7208_v12  ;;  %v5681_v12 = vld [vmem:[#allocation2 + $0xa4] sm:$0xf0] }
 0x353   : > { %5061 = vmatmul.msk.bf16.gmra.mxu1 %vm2263_vm4, %v4947_v3  ;;  %5133 = vmatmul.msk.bf16.gmra.mxu3 %vm2263_vm4, %v5083_v4  ;;  %v5087_v16 = vor.u32 %v5681_v12, %v5086_v9  ;;  %v5126_v3 = vld [vmem:[#allocation2 + $0xf0] sm:$0xf]  ;;  %v5691_v4 = vld [vmem:[#allocation2 + $0xf4] sm:$0xf0]  ;;  %v5690_v9 = vld [vmem:[#allocation2 + $0xf4] sm:$0xf] }
 0x354   : > { %2996 = vmatpush.bf16.xpose.msrb.mxu3 %v7211_v60  ;;  %2785 = vmatpush.bf16.xpose.msrb.mxu1 %v7211_v60  ;;  %v5664_v60 = vld [vmem:[#allocation2 + $0x24] sm:$0xf]  ;;  %v5128_v12 = vld [vmem:[#allocation2 + $0xf8] sm:$0xf0] }
 0x35a   : > { %2948 = vmatpush.bf16.xpose.msrb.mxu2 %v7221_v17  ;;  %2737 = vmatpush.bf16.xpose.msrb.mxu0 %v7221_v17  ;;  %v4955_v17 = vor.u32 %v5664_v60, %v4952_v23  ;;  %v4991_v60 = vor.u32 %v5675_v6, %v4990_v5  ;;  %v5127_v23 = vor.u32 %v5691_v4, %v5126_v3  ;;  %v5158_v5 = vld [vmem:[#allocation2 + $0x120] sm:$0xf]  ;;  %v5697_v6 = vld [vmem:[#allocation2 + $0x124] sm:$0xf0] }
 0x35b   : > { %v5230_v3 = vld [vmem:[#allocation2 + $0x1a0] sm:$0xf]  ;;  %v5713_v4 = vld [vmem:[#allocation2 + $0x1a4] sm:$0xf0] }
 0x35c   : > { %2997 = vmatpush.bf16.xpose.msrb.mxu3 %v7224_v10  ;;  %2786 = vmatpush.bf16.xpose.msrb.mxu1 %v7224_v10  ;;  %v5091_v10 = vor.u32 %v5680_v13, %v5088_v14  ;;  %v4995_v13 = vor.u32 %v5674_v18, %v4992_v7  ;;  %v5131_v14 = vor.u32 %v5690_v9, %v5128_v12  ;;  %v5696_v18 = vld [vmem:[#allocation2 + $0x124] sm:$0xf]  ;;  %v5160_v9 = vld [vmem:[#allocation2 + $0x128] sm:$0xf0] }
 0x35d   : > { %v5712_v12 = vld [vmem:[#allocation2 + $0x1a4] sm:$0xf] }
 0x361   : > { %2330 = vmatmul.bf16.gmra.mxu0 %v4951_v15  ;;  %2541 = vmatmul.bf16.gmra.mxu2 %v5087_v16  ;;  %v5142_v15 = vld [vmem:[#allocation2 + $0x100] sm:$0xf]  ;;  %v5693_v16 = vld [vmem:[#allocation2 + $0x104] sm:$0xf0] }
 0x362   : > { %2949 = vmatpush.bf16.xpose.msrb.mxu2 %v7234_v26  ;;  %2738 = vmatpush.bf16.xpose.msrb.mxu0 %v7234_v26  ;;  %v4960_v26 = vld [vmem:[#allocation2 + $0x38] sm:$0xf0] }
 0x363   : > { %5062 = vmatmul.msk.bf16.gmra.mxu1 %vm2263_vm4, %v4955_v17  ;;  %5134 = vmatmul.msk.bf16.gmra.mxu3 %vm2263_vm4, %v5091_v10  ;;  %v4963_v29 = vor.u32 %v5666_v25, %v4960_v26  ;;  %v5214_v17 = vld [vmem:[#allocation2 + $0x180] sm:$0xf]  ;;  %v5709_v10 = vld [vmem:[#allocation2 + $0x184] sm:$0xf0]  ;;  %v5143_v25 = vor.u32 %v5693_v16, %v5142_v15 }
 0x364   : > { %2998 = vmatpush.bf16.xpose.msrb.mxu3 %v7237_v48  ;;  %2787 = vmatpush.bf16.xpose.msrb.mxu1 %v7237_v48  ;;  %v5682_v48 = vld [vmem:[#allocation2 + $0xb4] sm:$0xf]  ;;  %v5215_v26 = vor.u32 %v5709_v10, %v5214_v17  ;;  %v5163_v17 = vor.u32 %v5696_v18, %v5160_v9  ;;  %v5174_v9 = vld [vmem:[#allocation2 + $0x140] sm:$0xf] }
 0x365   : > { %v5099_v30 = vor.u32 %v5682_v48, %v5096_v35  ;;  %v5147_v35 = vor.u32 %v5692_v19, %v5144_v20  ;;  %v5724_v20 = vld [vmem:[%s6252_s15] sm:$0xff] }
 0x36a   : > { %2950 = vmatpush.bf16.xpose.msrb.mxu2 %v7247_v31  ;;  %2739 = vmatpush.bf16.xpose.msrb.mxu0 %v7247_v31  ;;  %v4966_v31 = vld [vmem:[#allocation2 + $0x40] sm:$0xf] }
 0x36c   : > { %2999 = vmatpush.bf16.xpose.msrb.mxu3 %v7250_v22  ;;  %2788 = vmatpush.bf16.xpose.msrb.mxu1 %v7250_v22  ;;  %v5669_v22 = vld [vmem:[#allocation2 + $0x44] sm:$0xf0] }
 0x371   : > { %2335 = vmatmul.bf16.gmra.mxu0 %v4959_v27  ;;  %2546 = vmatmul.bf16.gmra.mxu2 %v5095_v28  ;;  %v5219_v27 = vor.u32 %v5708_v21, %v5216_v24  ;;  %v5746_v24 = vld [vmem:[%s6252_s15 + $0xb0] sm:$0xff] }
 0x372   : > { %2951 = vmatpush.bf16.xpose.msrb.mxu2 %v7260_v38  ;;  %2740 = vmatpush.bf16.xpose.msrb.mxu0 %v7260_v38  ;;  %v5104_v38 = vld [vmem:[#allocation2 + $0xc8] sm:$0xf0] }
 0x373   : > { %5063 = vmatmul.msk.bf16.gmra.mxu1 %vm2263_vm4, %v4963_v29  ;;  %5135 = vmatmul.msk.bf16.gmra.mxu3 %vm2263_vm4, %v5099_v30  ;;  %v5107_v62 = vor.u32 %v5684_v37, %v5104_v38  ;;  %v5150_v37 = vld [vmem:[#allocation2 + $0x110] sm:$0xf]  ;;  %v5695_v38 = vld [vmem:[#allocation2 + $0x114] sm:$0xf0] }
 0x374   : > { %3000 = vmatpush.bf16.xpose.msrb.mxu3 %v7263_v39  ;;  %2789 = vmatpush.bf16.xpose.msrb.mxu1 %v7263_v39  ;;  %v4967_v39 = vor.u32 %v5669_v22, %v4966_v31 }
 0x37a   : > { %2952 = vmatpush.bf16.xpose.msrb.mxu2 %v7273_v44  ;;  %2741 = vmatpush.bf16.xpose.msrb.mxu0 %v7273_v44  ;;  %v5110_v44 = vld [vmem:[#allocation2 + $0xd0] sm:$0xf] }
 0x37c   : > { %3001 = vmatpush.bf16.xpose.msrb.mxu3 %v7276_v34  ;;  %2790 = vmatpush.bf16.xpose.msrb.mxu1 %v7276_v34  ;;  %v5687_v34 = vld [vmem:[#allocation2 + $0xd4] sm:$0xf0] }
 0x37d   : > { %v5111_v53 = vor.u32 %v5687_v34, %v5110_v44  ;;  %v5224_v44 = vld [vmem:[#allocation2 + $0x198] sm:$0xf0]  ;;  %v5151_v34 = vor.u32 %v5695_v38, %v5150_v37  ;;  %v5166_v37 = vld [vmem:[#allocation2 + $0x130] sm:$0xf]  ;;  %v5699_v38 = vld [vmem:[#allocation2 + $0x134] sm:$0xf0] }
 0x381   : > { %2340 = vmatmul.bf16.gmra.mxu0 %v4967_v39  ;;  %2551 = vmatmul.bf16.gmra.mxu2 %v5103_v49  ;;  %v5222_v39 = vld [vmem:[#allocation2 + $0x190] sm:$0xf]  ;;  %v5711_v49 = vld [vmem:[#allocation2 + $0x194] sm:$0xf0] }
 0x382   : > { %v5223_v46 = vor.u32 %v5711_v49, %v5222_v39  ;;  %3825 = vmatpush.bf16.msra.mxu2 %v5747_v55  ;;  %3451 = vmatpush.bf16.msra.mxu0 %v5731_v57  ;;  %v5238_v39 = vld [vmem:[#allocation2 + $0x1b0] sm:$0xf]  ;;  %v5715_v49 = vld [vmem:[#allocation2 + $0x1b4] sm:$0xf0]  ;;  %v5745_v57 = vld [vmem:[%s6252_s15 + $0xa8] sm:$0xff] }
 0x383   : > { %5064 = vmatmul.msk.bf16.gmra.mxu1 %vm2263_vm4, %v4971_v40  ;;  %5136 = vmatmul.msk.bf16.gmra.mxu3 %vm2263_vm4, %v5107_v62  ;;  %v5694_v40 = vld [vmem:[#allocation2 + $0x114] sm:$0xf] }
 0x384   : > { %4012 = vmatpush.bf16.msra.mxu3 %v5755_v56  ;;  %3638 = vmatpush.bf16.msra.mxu1 %v5739_v58  ;;  %v5753_v58 = vld [vmem:[%s6252_s15 + $0xe8] sm:$0xff] }
 0x386   : > { %3826 = vmatpush.bf16.msra.mxu2 %v5746_v24 }
 0x38a   : > { %3827 = vmatpush.bf16.msra.mxu2 %v5745_v57 }
 0x391   : > { %2345 = vmatmul.bf16.gmra.mxu0 %v4975_v52  ;;  %2556 = vmatmul.bf16.gmra.mxu2 %v5111_v53  ;;  %v5155_v52 = vor.u32 %v5694_v40, %v5152_v42  ;;  %v5227_v53 = vor.u32 %v5710_v43, %v5224_v44  ;;  %v5698_v40 = vld [vmem:[#allocation2 + $0x134] sm:$0xf]  ;;  %v5168_v42 = vld [vmem:[#allocation2 + $0x138] sm:$0xf0] }
 0x392   : > { %v5714_v43 = vld [vmem:[#allocation2 + $0x1b4] sm:$0xf]  ;;  %v5240_v44 = vld [vmem:[#allocation2 + $0x1b8] sm:$0xf0] }
 0x393   : > { %5065 = vmatmul.msk.bf16.gmra.mxu1 %vm2263_vm4, %v4979_v54  ;;  %5137 = vmatmul.msk.bf16.gmra.mxu3 %vm2263_vm4, %v5115_v63 }
 0x3a1   : > { %2350 = vmatmul.bf16.gmra.mxu0 %v4983_v0  ;;  %2561 = vmatmul.bf16.gmra.mxu2 %v5119_v1 }
 0x3a3   : > { %5066 = vmatmul.msk.bf16.gmra.mxu1 %vm2263_vm4, %v4987_v2  ;;  %5138 = vmatmul.msk.bf16.gmra.mxu3 %vm2263_vm4, %v5123_v61 }
 0x3b1   : > { %2355 = vmatmul.bf16.gmra.mxu0 %v4991_v60  ;;  %2566 = vmatmul.bf16.gmra.mxu2 %v5127_v23  ;;  %v5232_v60 = vld [vmem:[#allocation2 + $0x1a8] sm:$0xf0]  ;;  %v5159_v23 = vor.u32 %v5697_v6, %v5158_v5 }
 0x3b2   : > { %v5235_v10 = vor.u32 %v5712_v12, %v5232_v60  ;;  %v5701_v12 = vld [vmem:[#allocation2 + $0x144] sm:$0xf0]  ;;  %v5246_v60 = vld [vmem:[#allocation2 + $0x1c0] sm:$0xf] }
 0x3b3   : > { %5067 = vmatmul.msk.bf16.gmra.mxu1 %vm2263_vm4, %v4995_v13  ;;  %5139 = vmatmul.msk.bf16.gmra.mxu3 %vm2263_vm4, %v5131_v14  ;;  %v5231_v13 = vor.u32 %v5713_v4, %v5230_v3 }
 0x3be   : > { %v2321_v48 = vpop.f32.mrf.mxu0 }
 0x3c0   : > { %v2370_v28 = vpop.f32.mrf.mxu1 }
 0x3c1   : > { %v7330_v29 = vadd.f32 %v2370_v28, %v2321_v48  ;;  %2742 = vmatmul.bf16.vlgmr.msrb.gmra.mxu0 %v5143_v25  ;;  %2953 = vmatmul.bf16.vlgmr.msrb.gmra.mxu2 %v5215_v26  ;;  %v5754_v25 = vld [vmem:[%s6252_s15 + $0xf0] sm:$0xff] }
 0x3c2   : > { %4013 = vmatpush.bf16.msra.mxu3 %v5754_v25  ;;  %v5730_v48 = vld [vmem:[%s6252_s15 + $0x30] sm:$0xff] }
 0x3c3   : > { %5204 = vmatmul.msk.bf16.vlgmr.msrb.gmra.mxu1 %vm2263_vm4, %v5147_v35  ;;  %5276 = vmatmul.msk.bf16.vlgmr.msrb.gmra.mxu3 %vm2263_vm4, %v5219_v27  ;;  %v5738_v35 = vld [vmem:[%s6252_s15 + $0x70] sm:$0xff] }
 0x3c4   : > { %v2532_v30 = vpop.f32.mrf.mxu2  ;;  %3452 = vmatpush.bf16.msra.mxu0 %v5730_v48  ;;  %3639 = vmatpush.bf16.msra.mxu1 %v5738_v35 }
 0x3c6   : > { %v2581_v31 = vpop.f32.mrf.mxu3  ;;  %v2323_v22 = vpop.f32.mrf.mxu0  ;;  %4014 = vmatpush.bf16.msra.mxu3 %v5753_v58  ;;  %v5184_v58 = vld [vmem:[#allocation2 + $0x158] sm:$0xf0] }
 0x3c7   : > { %v7334_v8 = vadd.f32 %v2581_v31, %v2532_v30 }
 0x3c8   : > { %v2372_v32 = vpop.f32.mrf.mxu1 }
 0x3c9   : > { %v3043_v33 = vmax.f32 %v7330_v29, %v7334_v8  ;;  %v7338_v36 = vadd.f32 %v2372_v32, %v2323_v22  ;;  %v5740_v22 = vld [vmem:[%s6252_s15 + $0x80] sm:$0xff] }
 0x3cc   : > { %v2534_v62 = vpop.f32.mrf.mxu2 }
 0x3ce   : > { %v2583_v50 = vpop.f32.mrf.mxu3  ;;  %v2326_v45 = vpop.f32.mrf.mxu0 }
 0x3cf   : > { %v7340_v51 = vadd.f32 %v2583_v50, %v2534_v62 }
 0x3d0   : > { %v2375_v54 = vpop.f32.mrf.mxu1 }
 0x3d1   : > { %v3044_v63 = vmax.f32 %v7338_v36, %v7340_v51  ;;  %v7344_v41 = vadd.f32 %v2375_v54, %v2326_v45  ;;  %2747 = vmatmul.bf16.gmra.mxu0 %v5151_v34  ;;  %2958 = vmatmul.bf16.gmra.mxu2 %v5223_v46  ;;  %v5167_v34 = vor.u32 %v5699_v38, %v5166_v37  ;;  %v5744_v38 = vld [vmem:[%s6252_s15 + $0xa0] sm:$0xff] }
 0x3d2   : > { %v5239_v46 = vor.u32 %v5715_v49, %v5238_v39  ;;  %v5243_v54 = vor.u32 %v5714_v43, %v5240_v44  ;;  %v5752_v39 = vld [vmem:[%s6252_s15 + $0xe0] sm:$0xff]  ;;  %3828 = vmatpush.bf16.msra.mxu2 %v5744_v38 }
 0x3d3   : > { %5205 = vmatmul.msk.bf16.gmra.mxu1 %vm2263_vm4, %v5155_v52  ;;  %5277 = vmatmul.msk.bf16.gmra.mxu3 %vm2263_vm4, %v5227_v53  ;;  %v5171_v53 = vor.u32 %v5698_v40, %v5168_v42  ;;  %v5728_v40 = vld [vmem:[%s6252_s15 + $0x20] sm:$0xff] }
 0x3d4   : > { %v2537_v11 = vpop.f32.mrf.mxu2  ;;  %4015 = vmatpush.bf16.msra.mxu3 %v5752_v39  ;;  %v5262_v38 = vld [vmem:[#allocation2 + $0x1e0] sm:$0xf]  ;;  %v5721_v39 = vld [vmem:[#allocation2 + $0x1e4] sm:$0xf0] }
 0x3d6   : > { %v2586_v47 = vpop.f32.mrf.mxu3  ;;  %v2328_v59 = vpop.f32.mrf.mxu0 }
 0x3d7   : > { %v7352_v0 = vadd.f32 %v2586_v47, %v2537_v11 }
 0x3d8   : > { %v2377_v1 = vpop.f32.mrf.mxu1 }
 0x3d9   : > { %v3045_v2 = vmax.f32 %v7344_v41, %v7352_v0  ;;  %v7356_v61 = vadd.f32 %v2377_v1, %v2328_v59  ;;  %v5729_v59 = vld [vmem:[%s6252_s15 + $0x28] sm:$0xff] }
 0x3da   : > { %v5737_v1 = vld [vmem:[%s6252_s15 + $0x68] sm:$0xff]  ;;  %3453 = vmatpush.bf16.msra.mxu0 %v5729_v59  ;;  %v5256_v59 = vld [vmem:[#allocation2 + $0x1d8] sm:$0xf0] }
 0x3db   : > { %3640 = vmatpush.bf16.msra.mxu1 %v5737_v1 }
 0x3dc   : > { %v2539_v7 = vpop.f32.mrf.mxu2 }
 0x3de   : > { %v2588_v14 = vpop.f32.mrf.mxu3  ;;  %v2331_v15 = vpop.f32.mrf.mxu0  ;;  %3454 = vmatpush.bf16.msra.mxu0 %v5728_v40 }
 0x3df   : > { %v7358_v16 = vadd.f32 %v2588_v14, %v2539_v7 }
 0x3e0   : > { %v2380_v19 = vpop.f32.mrf.mxu1 }
 0x3e1   : > { %v7362_v21 = vadd.f32 %v2380_v19, %v2331_v15  ;;  %2752 = vmatmul.bf16.gmra.mxu0 %v5159_v23  ;;  %2963 = vmatmul.bf16.gmra.mxu2 %v5231_v13  ;;  %v5717_v23 = vld [vmem:[#allocation2 + $0x1c4] sm:$0xf0]  ;;  %v5700_v13 = vld [vmem:[#allocation2 + $0x144] sm:$0xf]  ;;  %v5176_v15 = vld [vmem:[#allocation2 + $0x148] sm:$0xf0]  ;;  %v5175_v19 = vor.u32 %v5701_v12, %v5174_v9 }
 0x3e2   : > { %v5247_v24 = vor.u32 %v5717_v23, %v5246_v60  ;;  %v5179_v35 = vor.u32 %v5700_v13, %v5176_v15  ;;  %v5743_v13 = vld [vmem:[%s6252_s15 + $0x98] sm:$0xff] }
 0x3e3   : > { %5206 = vmatmul.msk.bf16.gmra.mxu1 %vm2263_vm4, %v5163_v17  ;;  %5278 = vmatmul.msk.bf16.gmra.mxu3 %vm2263_vm4, %v5235_v10  ;;  %v5716_v17 = vld [vmem:[#allocation2 + $0x1c4] sm:$0xf]  ;;  %v5248_v10 = vld [vmem:[#allocation2 + $0x1c8] sm:$0xf0] }
 0x3e4   : > { %v2542_v26 = vpop.f32.mrf.mxu2  ;;  %3829 = vmatpush.bf16.msra.mxu2 %v5743_v13 }
 0x3e6   : > { %v2591_v27 = vpop.f32.mrf.mxu3  ;;  %v2333_v28 = vpop.f32.mrf.mxu0 }
 0x3e7   : > { %v7370_v30 = vadd.f32 %v2591_v27, %v2542_v26  ;;  %v5251_v27 = vor.u32 %v5716_v17, %v5248_v10  ;;  %v5727_v17 = vld [vmem:[%s6252_s15 + $0x18] sm:$0xff] }
 0x3e8   : > { %v2382_v31 = vpop.f32.mrf.mxu1  ;;  %v5735_v10 = vld [vmem:[%s6252_s15 + $0x58] sm:$0xff]  ;;  %3455 = vmatpush.bf16.msra.mxu0 %v5727_v17 }
 0x3e9   : > { %v7374_v32 = vadd.f32 %v2382_v31, %v2333_v28 }
 0x3ec   : > { %v2544_v62 = vpop.f32.mrf.mxu2 }
 0x3ee   : > { %v2593_v50 = vpop.f32.mrf.mxu3  ;;  %v2336_v45 = vpop.f32.mrf.mxu0 }
 0x3ef   : > { %v7376_v52 = vadd.f32 %v2593_v50, %v2544_v62  ;;  %v5736_v62 = vld [vmem:[%s6252_s15 + $0x60] sm:$0xff]  ;;  %v5182_v50 = vld [vmem:[#allocation2 + $0x150] sm:$0xf] }
 0x3f0   : > { %v2385_v55 = vpop.f32.mrf.mxu1  ;;  %3641 = vmatpush.bf16.msra.mxu1 %v5736_v62  ;;  %v5192_v62 = vld [vmem:[#allocation2 + $0x168] sm:$0xf0] }
 0x3f1   : > { %v7380_v11 = vadd.f32 %v2385_v55, %v2336_v45  ;;  %2757 = vmatmul.bf16.gmra.mxu0 %v5167_v34  ;;  %2968 = vmatmul.bf16.gmra.mxu2 %v5239_v46  ;;  %v5703_v45 = vld [vmem:[#allocation2 + $0x154] sm:$0xf0]  ;;  %v5702_v55 = vld [vmem:[#allocation2 + $0x154] sm:$0xf] }
 0x3f2   : > { %v5183_v1 = vor.u32 %v5703_v45, %v5182_v50  ;;  %v5187_v9 = vor.u32 %v5702_v55, %v5184_v58  ;;  %v5264_v50 = vld [vmem:[#allocation2 + $0x1e8] sm:$0xf0] }
 0x3f3   : > { %5207 = vmatmul.msk.bf16.gmra.mxu1 %vm2263_vm4, %v5171_v53  ;;  %5279 = vmatmul.msk.bf16.gmra.mxu3 %vm2263_vm4, %v5243_v54  ;;  %v5254_v53 = vld [vmem:[#allocation2 + $0x1d0] sm:$0xf]  ;;  %v5719_v54 = vld [vmem:[#allocation2 + $0x1d4] sm:$0xf0] }
 0x3f4   : > { %v2547_v47 = vpop.f32.mrf.mxu2  ;;  %3642 = vmatpush.bf16.msra.mxu1 %v5735_v10  ;;  %v5733_v10 = vld [vmem:[%s6252_s15 + $0x48] sm:$0xff] }
 0x3f6   : > { %v2596_v5 = vpop.f32.mrf.mxu3  ;;  %v2338_v6 = vpop.f32.mrf.mxu0 }
 0x3f7   : > { %v7388_v3 = vadd.f32 %v2596_v5, %v2547_v47  ;;  %v5718_v47 = vld [vmem:[#allocation2 + $0x1d4] sm:$0xf]  ;;  %v5255_v5 = vor.u32 %v5719_v54, %v5254_v53  ;;  %v5263_v53 = vor.u32 %v5721_v39, %v5262_v38  ;;  %v5723_v38 = vld [vmem:[#allocation2 + $0x1f4] sm:$0xf0] }
 0x3f8   : > { %v2387_v4 = vpop.f32.mrf.mxu1  ;;  %v5259_v12 = vor.u32 %v5718_v47, %v5256_v59  ;;  %v5706_v39 = vld [vmem:[#allocation2 + $0x174] sm:$0xf] }
 0x3f9   : > { %v7392_v7 = vadd.f32 %v2387_v4, %v2338_v6 }
 0x3fc   : > { %v2549_v14 = vpop.f32.mrf.mxu2 }
 0x3fe   : > { %v2598_v25 = vpop.f32.mrf.mxu3  ;;  %v2341_v26 = vpop.f32.mrf.mxu0 }
 0x3ff   : > { %v7394_v48 = vadd.f32 %v2598_v25, %v2549_v14  ;;  %v5751_v14 = vld [vmem:[%s6252_s15 + $0xd8] sm:$0xff] }
 0x400   : > { %v2390_v28 = vpop.f32.mrf.mxu1  ;;  %4016 = vmatpush.bf16.msra.mxu3 %v5751_v14 }
 0x401   : > { %v7398_v37 = vadd.f32 %v2390_v28, %v2341_v26  ;;  %2762 = vmatmul.bf16.gmra.mxu0 %v5175_v19  ;;  %2973 = vmatmul.bf16.gmra.mxu2 %v5247_v24  ;;  %v5705_v28 = vld [vmem:[#allocation2 + $0x164] sm:$0xf0] }
 0x403   : > { %5208 = vmatmul.msk.bf16.gmra.mxu1 %vm2263_vm4, %v5179_v35  ;;  %5280 = vmatmul.msk.bf16.gmra.mxu3 %vm2263_vm4, %v5251_v27  ;;  %v5190_v27 = vld [vmem:[#allocation2 + $0x160] sm:$0xf] }
 0x404   : > { %v2552_v49 = vpop.f32.mrf.mxu2  ;;  %v5191_v45 = vor.u32 %v5705_v28, %v5190_v27  ;;  %v5707_v27 = vld [vmem:[#allocation2 + $0x174] sm:$0xf0]  ;;  %v5270_v28 = vld [vmem:[#allocation2 + $0x1f0] sm:$0xf] }
 0x406   : > { %v2601_v42 = vpop.f32.mrf.mxu3  ;;  %v7406_v43 = vpop.f32.mrf.mxu0 }
 0x407   : > { %v7408_v44 = vadd.f32 %v2601_v42, %v2552_v49  ;;  %v5704_v49 = vld [vmem:[#allocation2 + $0x164] sm:$0xf] }
 0x408   : > { %v7410_v34 = vpop.f32.mrf.mxu1  ;;  %v5720_v42 = vld [vmem:[#allocation2 + $0x1e4] sm:$0xf]  ;;  %v5195_v58 = vor.u32 %v5704_v49, %v5192_v62  ;;  %v5200_v62 = vld [vmem:[#allocation2 + $0x178] sm:$0xf0] }
 0x409   : > { %v5267_v47 = vor.u32 %v5720_v42, %v5264_v50  ;;  %v5722_v42 = vld [vmem:[#allocation2 + $0x1f4] sm:$0xf]  ;;  %v5272_v50 = vld [vmem:[#allocation2 + $0x1f8] sm:$0xf0] }
 0x40c   : > { %v7414_v57 = vpop.f32.mrf.mxu2 }
 0x40e   : > { %v7416_v6 = vpop.f32.mrf.mxu3  ;;  %v2346_v4 = vpop.f32.mrf.mxu0 }
 0x410   : > { %v2395_v60 = vpop.f32.mrf.mxu1 }
 0x411   : > { %v7418_v23 = vadd.f32 %v2395_v60, %v2346_v4  ;;  %2767 = vmatmul.bf16.gmra.mxu0 %v5183_v1  ;;  %2978 = vmatmul.bf16.gmra.mxu2 %v5255_v5  ;;  %v5742_v5 = vld [vmem:[%s6252_s15 + $0x90] sm:$0xff] }
 0x412   : > { %v5750_v4 = vld [vmem:[%s6252_s15 + $0xd0] sm:$0xff]  ;;  %3830 = vmatpush.bf16.msra.mxu2 %v5742_v5 }
 0x413   : > { %5209 = vmatmul.msk.bf16.gmra.mxu1 %vm2263_vm4, %v5187_v9  ;;  %5281 = vmatmul.msk.bf16.gmra.mxu3 %vm2263_vm4, %v5259_v12  ;;  %v5726_v12 = vld [vmem:[%s6252_s15 + $0x10] sm:$0xff] }
 0x414   : > { %v2557_v15 = vpop.f32.mrf.mxu2  ;;  %4017 = vmatpush.bf16.msra.mxu3 %v5750_v4  ;;  %v5734_v60 = vld [vmem:[%s6252_s15 + $0x50] sm:$0xff]  ;;  %3456 = vmatpush.bf16.msra.mxu0 %v5726_v12 }
 0x415   : > { %3643 = vmatpush.bf16.msra.mxu1 %v5734_v60 }
 0x416   : > { %v2606_v19 = vpop.f32.mrf.mxu3  ;;  %v7426_v24 = vpop.f32.mrf.mxu0 }
 0x417   : > { %v7428_v25 = vadd.f32 %v2606_v19, %v2557_v15  ;;  %v5198_v19 = vld [vmem:[#allocation2 + $0x170] sm:$0xf] }
 0x418   : > { %v7430_v26 = vpop.f32.mrf.mxu1 }
 0x419   : > { %3644 = vmatpush.bf16.msra.mxu1 %v5733_v10 }
 0x41c   : > { %v7434_v40 = vpop.f32.mrf.mxu2 }
 0x41e   : > { %v7436_v54 = vpop.f32.mrf.mxu3  ;;  %v2351_v55 = vpop.f32.mrf.mxu0 }
 0x420   : > { %v2400_v59 = vpop.f32.mrf.mxu1 }
 0x421   : > { %v7438_v1 = vadd.f32 %v2400_v59, %v2351_v55  ;;  %2772 = vmatmul.bf16.gmra.mxu0 %v5191_v45  ;;  %2983 = vmatmul.bf16.gmra.mxu2 %v5263_v53  ;;  %v5199_v45 = vor.u32 %v5707_v27, %v5198_v19  ;;  %v5271_v53 = vor.u32 %v5723_v38, %v5270_v28  ;;  %v5725_v27 = vld [vmem:[%s6252_s15 + $0x8] sm:$0xff] }
 0x422   : > { %v5275_v59 = vor.u32 %v5722_v42, %v5272_v50  ;;  %3457 = vmatpush.bf16.msra.mxu0 %v5725_v27 }
 0x423   : > { %5210 = vmatmul.msk.bf16.gmra.mxu1 %vm2263_vm4, %v5195_v58  ;;  %5282 = vmatmul.msk.bf16.gmra.mxu3 %vm2263_vm4, %v5267_v47  ;;  %v5203_v47 = vor.u32 %v5706_v39, %v5200_v62 }
 0x424   : > { %v2562_v9 = vpop.f32.mrf.mxu2 }
 0x426   : > { %v2611_v13 = vpop.f32.mrf.mxu3  ;;  %v7446_v14 = vpop.f32.mrf.mxu0  ;;  %3458 = vmatpush.bf16.msra.mxu0 %v5724_v20 }
 0x427   : > { %v7448_v15 = vadd.f32 %v2611_v13, %v2562_v9 }
 0x428   : > { %v7450_v17 = vpop.f32.mrf.mxu1 }
 0x42c   : > { %v7454_v49 = vpop.f32.mrf.mxu2 }
 0x42e   : > { %v7456_v55 = vpop.f32.mrf.mxu3  ;;  %v2356_v58 = vpop.f32.mrf.mxu0 }
 0x430   : > { %v2405_v5 = vpop.f32.mrf.mxu1 }
 0x431   : > { %v7458_v4 = vadd.f32 %v2405_v5, %v2356_v58  ;;  %2777 = vmatmul.bf16.gmra.mxu0 %v5199_v45  ;;  %2988 = vmatmul.bf16.gmra.mxu2 %v5271_v53 }
 0x433   : > { %5211 = vmatmul.msk.bf16.gmra.mxu1 %vm2263_vm4, %v5203_v47  ;;  %5283 = vmatmul.msk.bf16.gmra.mxu3 %vm2263_vm4, %v5275_v59 }
 0x434   : > { %v2567_v9 = vpop.f32.mrf.mxu2 }
 0x436   : > { %v2616_v12 = vpop.f32.mrf.mxu3  ;;  %v7462_v60 = vpop.f32.mrf.mxu0 }
 0x437   : > { %v7464_v13 = vadd.f32 %v2616_v12, %v2567_v9  ;;  %v5741_v9 = vld [vmem:[%s6252_s15 + $0x88] sm:$0xff] }
 0x438   : > { %v7466_v19 = vpop.f32.mrf.mxu1  ;;  %v5749_v12 = vld [vmem:[%s6252_s15 + $0xc8] sm:$0xff]  ;;  %3831 = vmatpush.bf16.msra.mxu2 %v5741_v9 }
 0x439   : > { %8082 = vst [vmem:[#allocation5_spill] sm:$0xff] %v7466_v19  ;;  %4018 = vmatpush.bf16.msra.mxu3 %v5749_v12 }
 0x43c   : > { %v7470_v28 = vpop.f32.mrf.mxu2  ;;  %3832 = vmatpush.bf16.msra.mxu2 %v5740_v22 }
 0x43e   : > { %v7472_v38 = vpop.f32.mrf.mxu3  ;;  %v2743_v39 = vpop.f32.mrf.mxu0 }
 0x440   : > { %v2792_v62 = vpop.f32.mrf.mxu1 }
 0x441   : > { %v2793_v42 = vadd.f32 %v2792_v62, %v2743_v39 }
 0x443   : > { %v3059_v58 = vmax.f32 %v3043_v33, %v2793_v42 }
 0x444   : > { %v2954_v50 = vpop.f32.mrf.mxu2 }
 0x446   : > { %v3003_v45 = vpop.f32.mrf.mxu3  ;;  %v2745_v53 = vpop.f32.mrf.mxu0 }
 0x447   : > { %v3004_v47 = vadd.f32 %v3003_v45, %v2954_v50 }
 0x448   : > { %v2794_v59 = vpop.f32.mrf.mxu1 }
 0x449   : > { %v3075_v5 = vmax.f32 %v3059_v58, %v3004_v47  ;;  %v2795_v46 = vadd.f32 %v2794_v59, %v2745_v53  ;;  %v5732_v53 = vld [vmem:[%s6252_s15 + $0x40] sm:$0xff] }
 0x44a   : > { %3645 = vmatpush.bf16.msra.mxu1 %v5732_v53 }
 0x44b   : > { %v3091_v35 = vsub.f32 %v7330_v29, %v3075_v5  ;;  %v3139_v39 = vsub.f32 %v7334_v8, %v3075_v5  ;;  %v3187_v62 = vsub.f32 %v2793_v42, %v3075_v5  ;;  %v3235_v31 = vsub.f32 %v3004_v47, %v3075_v5  ;;  %v5748_v29 = vld [vmem:[%s6252_s15 + $0xc0] sm:$0xff] }
 0x44c   : > { %v2956_v33 = vpop.f32.mrf.mxu2  ;;  %v3060_v8 = vmax.f32 %v3044_v63, %v2795_v46  ;;  %4019 = vmatpush.bf16.msra.mxu3 %v5748_v29 }
 0x44d   : > { %v3107_v50 = vmul.f32 1.442695, %v3091_v35  ;;  %v3155_v45 = vmul.f32 1.442695, %v3139_v39  ;;  %v3203_v58 = vmul.f32 1.442695, %v3187_v62 }
 0x44e   : > { %v3005_v18 = vpop.f32.mrf.mxu3  ;;  %v2748_v56 = vpop.f32.mrf.mxu0  ;;  %v3251_v47 = vmul.f32 1.442695, %v3235_v31 }
 0x44f   : > { %5830 = vpow2.f32 %v3107_v50  ;;  %v3006_v42 = vadd.f32 %v3005_v18, %v2956_v33 }
 0x450   : > { %5832 = vpow2.f32 %v3155_v45  ;;  %v2797_v59 = vpop.f32.mrf.mxu1 }
 0x451   : > { %v3076_v35 = vmax.f32 %v3060_v8, %v3006_v42  ;;  %5834 = vpow2.f32 %v3203_v58  ;;  %v2798_v9 = vadd.f32 %v2797_v59, %v2748_v56 }
 0x452   : > { %5836 = vpow2.f32 %v3251_v47 }
 0x453   : > { %v3092_v10 = vsub.f32 %v7338_v36, %v3076_v35  ;;  %v3140_v27 = vsub.f32 %v7340_v51, %v3076_v35  ;;  %v3188_v5 = vsub.f32 %v2795_v46, %v3076_v35  ;;  %v3236_v12 = vsub.f32 %v3006_v42, %v3076_v35 }
 0x454   : > { %v2959_v63 = vpop.f32.mrf.mxu2  ;;  %v3061_v36 = vmax.f32 %v3045_v2, %v2798_v9 }
 0x455   : > { %v5831_v18 = vpop.eup %5830  ;;  %v3109_v39 = vmul.f32 1.442695, %v3092_v10  ;;  %v3157_v62 = vmul.f32 1.442695, %v3140_v27  ;;  %v3205_v22 = vmul.f32 1.442695, %v3188_v5 }
 0x456   : > { %v7492_v31 = vpop.eup %5832  ;;  %v3008_v33 = vpop.f32.mrf.mxu3  ;;  %v3253_v46 = vmul.f32 1.442695, %v3236_v12 }
 0x457   : > { %v2750_v50 = vpop.f32.mrf.mxu0  ;;  %v3283_v20 = vadd.f32 %v7492_v31, %v5831_v18  ;;  %5838 = vpow2.f32 %v3109_v39  ;;  %v3009_v51 = vadd.f32 %v3008_v33, %v2959_v63  ;;  %v5835_v56 = vpop.eup %5834 }
 0x458   : > { %5840 = vpow2.f32 %v3157_v62  ;;  %v2799_v45 = vpop.f32.mrf.mxu1  ;;  %v5837_v8 = vpop.eup %5836 }
 0x459   : > { %v3299_v58 = vadd.f32 %v5835_v56, %v3283_v20  ;;  %v3077_v29 = vmax.f32 %v3061_v36, %v3009_v51  ;;  %5842 = vpow2.f32 %v3205_v22  ;;  %v2800_v42 = vadd.f32 %v2799_v45, %v2750_v50 }
 0x45a   : > { %5844 = vpow2.f32 %v3253_v46 }
 0x45b   : > { %v3315_v53 = vadd.f32 %v5837_v8, %v3299_v58  ;;  %v3093_v47 = vsub.f32 %v7344_v41, %v3077_v29  ;;  %v3141_v59 = vsub.f32 %v7352_v0, %v3077_v29  ;;  %v3189_v35 = vsub.f32 %v2798_v9, %v3077_v29 }
 0x45c   : > { %v3237_v10 = vsub.f32 %v3009_v51, %v3077_v29  ;;  %v2961_v27 = vpop.f32.mrf.mxu2  ;;  %v8083_v41 = vmax.f32 %v7356_v61, %v7358_v16 }
 0x45d   : > { %v7500_v2 = vpop.eup %5838  ;;  %5846 = vrcp.f32 %v3315_v53  ;;  %v3111_v5 = vmul.f32 1.442695, %v3093_v47  ;;  %v3159_v12 = vmul.f32 1.442695, %v3141_v59  ;;  %v3207_v39 = vmul.f32 1.442695, %v3189_v35 }
 0x45e   : > { %v7502_v63 = vpop.eup %5840  ;;  %v3010_v62 = vpop.f32.mrf.mxu3  ;;  %v3062_v0 = vmax.f32 %v8083_v41, %v2800_v42  ;;  %v3255_v20 = vmul.f32 1.442695, %v3237_v10 }
 0x45f   : > { %v2753_v22 = vpop.f32.mrf.mxu0  ;;  %v3284_v33 = vadd.f32 %v7502_v63, %v7500_v2  ;;  %5848 = vpow2.f32 %v3111_v5  ;;  %v3011_v9 = vadd.f32 %v3010_v62, %v2961_v27  ;;  %v7509_v50 = vpop.eup %5842 }
 0x460   : > { %5850 = vpow2.f32 %v3159_v12  ;;  %v2802_v36 = vpop.f32.mrf.mxu1  ;;  %v5845_v45 = vpop.eup %5844 }
 0x461   : > { %v3300_v51 = vadd.f32 %v7509_v50, %v3284_v33  ;;  %v3078_v46 = vmax.f32 %v3062_v0, %v3011_v9  ;;  %5852 = vpow2.f32 %v3207_v39  ;;  %v2803_v58 = vadd.f32 %v2802_v36, %v2753_v22 }
 0x462   : > { %5854 = vpow2.f32 %v3255_v20 }
 0x463   : > { %v5847_v29 = vpop.eup %5846  ;;  %v3316_v53 = vadd.f32 %v5845_v45, %v3300_v51  ;;  %v3094_v47 = vsub.f32 %v7356_v61, %v3078_v46  ;;  %v3142_v59 = vsub.f32 %v7358_v16, %v3078_v46  ;;  %v3190_v35 = vsub.f32 %v2800_v42, %v3078_v46 }
 0x464   : > { %v7514_v5 = vmul.f32 %v5847_v29, %v5837_v8  ;;  %v3238_v27 = vsub.f32 %v3011_v9, %v3078_v46  ;;  %v2964_v12 = vpop.f32.mrf.mxu2  ;;  %v3347_v10 = vmul.f32 %v5847_v29, %v5831_v18  ;;  %v3532_v61 = vmul.f32 %v5847_v29, %v7492_v31 }
 0x465   : > { %v7516_v62 = vpop.eup %5848  ;;  %5856 = vrcp.f32 %v3316_v53  ;;  %v3113_v33 = vmul.f32 1.442695, %v3094_v47  ;;  %v3161_v41 = vmul.f32 1.442695, %v3142_v59  ;;  %v3209_v22 = vmul.f32 1.442695, %v3190_v35 }
 0x466   : > { %v7518_v39 = vpop.eup %5850  ;;  %v3013_v0 = vpop.f32.mrf.mxu3  ;;  %v3719_v16 = vmul.f32 %v5847_v29, %v5835_v56  ;;  %v8084_v18 = vmax.f32 %v7362_v21, %v7370_v30  ;;  %v3257_v51 = vmul.f32 1.442695, %v3238_v27 }
 0x467   : > { %v2755_v36 = vpop.f32.mrf.mxu0  ;;  %v3285_v8 = vadd.f32 %v7518_v39, %v7516_v62  ;;  %5858 = vpow2.f32 %v3113_v33  ;;  %v3014_v9 = vadd.f32 %v3013_v0, %v2964_v12  ;;  %v7526_v20 = vpop.eup %5852 }
 0x468   : > { %v3063_v42 = vmax.f32 %v8084_v18, %v2803_v58  ;;  %5860 = vpow2.f32 %v3161_v41  ;;  %v2804_v46 = vpop.f32.mrf.mxu1  ;;  %v5855_v31 = vpop.eup %5854 }
 0x469   : > { %v3301_v53 = vadd.f32 %v7526_v20, %v3285_v8  ;;  %v2805_v59 = vadd.f32 %v2804_v46, %v2755_v36  ;;  %5862 = vpow2.f32 %v3209_v22  ;;  %v8085_v22 = vmax.f32 %v7374_v32, %v7376_v52 }
 0x46a   : > { %v3079_v47 = vmax.f32 %v3063_v42, %v3014_v9  ;;  %5864 = vpow2.f32 %v3257_v51 }
 0x46b   : > { %v5857_v56 = vpop.eup %5856  ;;  %v3317_v29 = vadd.f32 %v5855_v31, %v3301_v53  ;;  %v3064_v42 = vmax.f32 %v8085_v22, %v2805_v59 }
 0x46c   : > { %v3095_v35 = vsub.f32 %v7362_v21, %v3079_v47  ;;  %v3143_v33 = vsub.f32 %v7370_v30, %v3079_v47  ;;  %v3191_v19 = vsub.f32 %v2803_v58, %v3079_v47  ;;  %v3907_v18 = vmul.f32 %v5857_v56, %v5845_v45  ;;  %v2966_v0 = vpop.f32.mrf.mxu2 }
 0x46d   : > { %v3239_v12 = vsub.f32 %v3014_v9, %v3079_v47  ;;  %v3348_v27 = vmul.f32 %v5857_v56, %v7500_v2  ;;  %v7532_v41 = vpop.eup %5858  ;;  %5866 = vrcp.f32 %v3317_v29  ;;  %v3533_v9 = vmul.f32 %v5857_v56, %v7502_v63 }
 0x46e   : > { %v3115_v8 = vmul.f32 1.442695, %v3095_v35  ;;  %v3163_v36 = vmul.f32 1.442695, %v3143_v33  ;;  %v7537_v46 = vpop.eup %5860  ;;  %v3211_v21 = vmul.f32 1.442695, %v3191_v19  ;;  %v3015_v30 = vpop.f32.mrf.mxu3  ;;  %v3720_v51 = vmul.f32 %v5857_v56, %v7509_v50 }
 0x46f   : > { %v2758_v58 = vpop.f32.mrf.mxu0  ;;  %v3363_v45 = vpack.c.bf16 %v3348_v27, %v3347_v10  ;;  %v3286_v2 = vadd.f32 %v7537_v46, %v7532_v41  ;;  %v3016_v53 = vadd.f32 %v3015_v30, %v2966_v0  ;;  %v3922_v47 = vpack.c.bf16 %v3907_v18, %v7514_v5  ;;  %v7544_v29 = vpop.eup %5862 }
 0x470   : > { %5868 = vpow2.f32 %v3115_v8  ;;  %v3259_v35 = vmul.f32 1.442695, %v3239_v12  ;;  %v3548_v19 = vpack.c.bf16 %v3533_v9, %v3532_v61  ;;  %v3735_v33 = vpack.c.bf16 %v3720_v51, %v3719_v16  ;;  %v2807_v22 = vpop.f32.mrf.mxu1  ;;  %v7547_v50 = vpop.eup %5864 }
 0x471   : > { %5870 = vpow2.f32 %v3163_v36  ;;  %3459 = vmatmul.bf16.vlgmr.msra.gmra.mxu0 %v3363_v45  ;;  %v3302_v10 = vadd.f32 %v7544_v29, %v3286_v2  ;;  %v3080_v63 = vmax.f32 %v3064_v42, %v3016_v53  ;;  %4020 = vmatmul.bf16.vlgmr.msra.gmra.mxu3 %v3922_v47  ;;  %v2808_v56 = vadd.f32 %v2807_v22, %v2758_v58 }
 0x472   : > { %5872 = vpow2.f32 %v3211_v21  ;;  %3646 = vmatmul.bf16.vlgmr.msra.gmra.mxu1 %v3548_v19  ;;  %3833 = vmatmul.bf16.vlgmr.msra.gmra.mxu2 %v3735_v33 }
 0x473   : > { %v5867_v0 = vpop.eup %5866  ;;  %v3318_v5 = vadd.f32 %v7547_v50, %v3302_v10  ;;  %v3096_v18 = vsub.f32 %v7374_v32, %v3080_v63  ;;  %v3144_v12 = vsub.f32 %v7376_v52, %v3080_v63  ;;  %v3192_v61 = vsub.f32 %v2805_v59, %v3080_v63 }
 0x474   : > { %5874 = vpow2.f32 %v3259_v35  ;;  %v3240_v16 = vsub.f32 %v3016_v53, %v3080_v63  ;;  %v2969_v27 = vpop.f32.mrf.mxu2  ;;  %v3349_v8 = vmul.f32 %v5867_v0, %v7516_v62  ;;  %v3534_v36 = vmul.f32 %v5867_v0, %v7518_v39 }
 0x475   : > { %5876 = vrcp.f32 %v3318_v5  ;;  %v3117_v21 = vmul.f32 1.442695, %v3096_v18  ;;  %v3165_v30 = vmul.f32 1.442695, %v3144_v12  ;;  %v3213_v45 = vmul.f32 1.442695, %v3192_v61 }
 0x476   : > { %v7554_v42 = vpop.eup %5868  ;;  %v3018_v9 = vpop.f32.mrf.mxu3  ;;  %v3721_v52 = vmul.f32 %v5867_v0, %v7526_v20  ;;  %v3908_v59 = vmul.f32 %v5867_v0, %v5855_v31  ;;  %v8086_v62 = vmax.f32 %v7380_v11, %v7388_v3  ;;  %v3261_v47 = vmul.f32 1.442695, %v3240_v16 }
 0x477   : > { %v7556_v58 = vpop.eup %5870  ;;  %v2760_v32 = vpop.f32.mrf.mxu0  ;;  %5878 = vpow2.f32 %v3117_v21  ;;  %v3019_v2 = vadd.f32 %v3018_v9, %v2969_v27 }
 0x478   : > { %v3287_v51 = vadd.f32 %v7556_v58, %v7554_v42  ;;  %v3065_v39 = vmax.f32 %v8086_v62, %v2808_v56  ;;  %v7564_v53 = vpop.eup %5872  ;;  %5880 = vpow2.f32 %v3165_v30  ;;  %v2809_v35 = vpop.f32.mrf.mxu1 }
 0x479   : > { %v2810_v22 = vadd.f32 %v2809_v35, %v2760_v32  ;;  %5882 = vpow2.f32 %v3213_v45  ;;  %v8087_v45 = vmax.f32 %v7392_v7, %v7394_v48 }
 0x47a   : > { %v3303_v19 = vadd.f32 %v7564_v53, %v3287_v51  ;;  %v3081_v33 = vmax.f32 %v3065_v39, %v3019_v2  ;;  %v7567_v20 = vpop.eup %5874  ;;  %5884 = vpow2.f32 %v3261_v47 }
 0x47b   : > { %v5877_v31 = vpop.eup %5876  ;;  %v3066_v9 = vmax.f32 %v8087_v45, %v2810_v22 }
 0x47c   : > { %v3319_v10 = vadd.f32 %v7567_v20, %v3303_v19  ;;  %v3097_v63 = vsub.f32 %v7380_v11, %v3081_v33  ;;  %v3145_v0 = vsub.f32 %v7388_v3, %v3081_v33  ;;  %v3193_v5 = vsub.f32 %v2808_v56, %v3081_v33  ;;  %v2971_v12 = vpop.f32.mrf.mxu2 }
 0x47d   : > { %v3241_v18 = vsub.f32 %v3019_v2, %v3081_v33  ;;  %v3350_v61 = vmul.f32 %v5877_v31, %v7532_v41  ;;  %v3535_v16 = vmul.f32 %v5877_v31, %v7537_v46  ;;  %v7574_v27 = vpop.eup %5878  ;;  %v3722_v41 = vmul.f32 %v5877_v31, %v7544_v29 }
 0x47e   : > { %5886 = vrcp.f32 %v3319_v10  ;;  %v3119_v21 = vmul.f32 1.442695, %v3097_v63  ;;  %v3167_v30 = vmul.f32 1.442695, %v3145_v0  ;;  %v7579_v11 = vpop.eup %5880  ;;  %v3215_v3 = vmul.f32 1.442695, %v3193_v5  ;;  %v3020_v56 = vpop.f32.mrf.mxu3 }
 0x47f   : > { %v2763_v32 = vpop.f32.mrf.mxu0  ;;  %v3364_v51 = vpack.c.bf16 %v3350_v61, %v3349_v8  ;;  %v3549_v62 = vpack.c.bf16 %v3535_v16, %v3534_v36  ;;  %v3288_v46 = vadd.f32 %v7579_v11, %v7574_v27  ;;  %v3021_v39 = vadd.f32 %v3020_v56, %v2971_v12  ;;  %v7585_v47 = vpop.eup %5882 }
 0x480   : > { %5888 = vpow2.f32 %v3119_v21  ;;  %v3909_v2 = vmul.f32 %v5877_v31, %v7547_v50  ;;  %v3263_v35 = vmul.f32 1.442695, %v3241_v18  ;;  %v3736_v19 = vpack.c.bf16 %v3722_v41, %v3721_v52  ;;  %v2812_v33 = vpop.f32.mrf.mxu1  ;;  %v7588_v63 = vpop.eup %5884 }
 0x481   : > { %5890 = vpow2.f32 %v3167_v30  ;;  %3464 = vmatmul.bf16.gmra.mxu0 %v3364_v51  ;;  %v3304_v10 = vadd.f32 %v7585_v47, %v3288_v46  ;;  %v3082_v8 = vmax.f32 %v3066_v9, %v3021_v39  ;;  %v2813_v29 = vadd.f32 %v2812_v33, %v2763_v32 }
 0x482   : > { %v3923_v36 = vpack.c.bf16 %v3909_v2, %v3908_v59  ;;  %5892 = vpow2.f32 %v3215_v3  ;;  %3651 = vmatmul.bf16.gmra.mxu1 %v3549_v62  ;;  %3838 = vmatmul.bf16.gmra.mxu2 %v3736_v19  ;;  %v8088_v56 = vmax.f32 %v7398_v37, %v7408_v44 }
 0x483   : > { %v3320_v50 = vadd.f32 %v7588_v63, %v3304_v10  ;;  %v3098_v31 = vsub.f32 %v7392_v7, %v3082_v8  ;;  %v3146_v5 = vsub.f32 %v7394_v48, %v3082_v8  ;;  %v3194_v18 = vsub.f32 %v2810_v22, %v3082_v8 }
 0x484   : > { %v5887_v0 = vpop.eup %5886  ;;  %4025 = vmatmul.bf16.gmra.mxu3 %v3923_v36  ;;  %5894 = vpow2.f32 %v3263_v35  ;;  %v3242_v52 = vsub.f32 %v3021_v39, %v3082_v8  ;;  %v2974_v12 = vpop.f32.mrf.mxu2  ;;  %v7603_v7 = vadd.f32 %v7416_v6, %v7414_v57  ;;  %v3067_v32 = vmax.f32 %v8088_v56, %v2813_v29 }
 0x485   : > { %v3351_v59 = vmul.f32 %v5887_v0, %v7554_v42  ;;  %v7595_v61 = vmul.f32 %v5887_v0, %v7556_v58  ;;  %5896 = vrcp.f32 %v3320_v50  ;;  %v3121_v21 = vmul.f32 1.442695, %v3098_v31 }
 0x486   : > { %v7597_v16 = vpop.eup %5888  ;;  %v3169_v30 = vmul.f32 1.442695, %v3146_v5  ;;  %v3217_v48 = vmul.f32 1.442695, %v3194_v18  ;;  %v3023_v22 = vpop.f32.mrf.mxu3  ;;  %v3723_v3 = vmul.f32 %v5887_v0, %v7564_v53  ;;  %v3910_v42 = vmul.f32 %v5887_v0, %v7567_v20 }
 0x487   : > { %v7599_v45 = vpop.eup %5890  ;;  %v2765_v9 = vpop.f32.mrf.mxu0  ;;  %5898 = vpow2.f32 %v3121_v21  ;;  %v3024_v51 = vadd.f32 %v3023_v22, %v2974_v12  ;;  %v7616_v57 = vadd.f32 %v7410_v34, %v7406_v43  ;;  %v3265_v6 = vmul.f32 1.442695, %v3242_v52 }
 0x488   : > { %v3289_v58 = vadd.f32 %v7599_v45, %v7597_v16  ;;  %v7612_v62 = vpop.eup %5892  ;;  %5900 = vpow2.f32 %v3169_v30  ;;  %v2814_v53 = vpop.f32.mrf.mxu1 }
 0x489   : > { %v3083_v41 = vmax.f32 %v3067_v32, %v3024_v51  ;;  %v2815_v46 = vadd.f32 %v2814_v53, %v2765_v9  ;;  %v3052_v2 = vmax.f32 %v7616_v57, %v7603_v7  ;;  %5902 = vpow2.f32 %v3217_v48 }
 0x48a   : > { %v3305_v20 = vadd.f32 %v7612_v62, %v3289_v58  ;;  %v7619_v39 = vpop.eup %5894  ;;  %5904 = vpow2.f32 %v3265_v6 }
 0x48b   : > { %v5897_v35 = vpop.eup %5896  ;;  %v3099_v33 = vsub.f32 %v7398_v37, %v3083_v41  ;;  %v3147_v43 = vsub.f32 %v7408_v44, %v3083_v41  ;;  %v3195_v34 = vsub.f32 %v2813_v29, %v3083_v41  ;;  %v3243_v10 = vsub.f32 %v3024_v51, %v3083_v41 }
 0x48c   : > { %v3321_v19 = vadd.f32 %v7619_v39, %v3305_v20  ;;  %v2976_v8 = vpop.f32.mrf.mxu2  ;;  %v3352_v36 = vmul.f32 %v5897_v35, %v7574_v27  ;;  %v3537_v0 = vmul.f32 %v5897_v35, %v7579_v11  ;;  %v3068_v18 = vmax.f32 %v3052_v2, %v2815_v46 }
 0x48d   : > { %v7628_v50 = vpop.eup %5898  ;;  %v3123_v31 = vmul.f32 1.442695, %v3099_v33  ;;  %v3171_v5 = vmul.f32 1.442695, %v3147_v43  ;;  %v3219_v12 = vmul.f32 1.442695, %v3195_v34  ;;  %v3724_v30 = vmul.f32 %v5897_v35, %v7585_v47 }
 0x48e   : > { %5906 = vrcp.f32 %v3321_v19  ;;  %v7630_v52 = vpop.eup %5900  ;;  %v3025_v37 = vpop.f32.mrf.mxu3  ;;  %v3365_v44 = vpack.c.bf16 %v3352_v36, %v3351_v59  ;;  %v3550_v29 = vpack.c.bf16 %v3537_v0, %v7595_v61  ;;  %v3911_v48 = vmul.f32 %v5897_v35, %v7588_v63 }
 0x48f   : > { %v2768_v21 = vpop.f32.mrf.mxu0  ;;  %v3290_v27 = vadd.f32 %v7630_v52, %v7628_v50  ;;  %5908 = vpow2.f32 %v3123_v31  ;;  %v3026_v11 = vadd.f32 %v3025_v37, %v2976_v8  ;;  %v7637_v22 = vpop.eup %5902  ;;  %v3267_v9 = vmul.f32 1.442695, %v3243_v10 }
 0x490   : > { %5910 = vpow2.f32 %v3171_v5  ;;  %v3737_v58 = vpack.c.bf16 %v3724_v30, %v3723_v3  ;;  %v2817_v56 = vpop.f32.mrf.mxu1  ;;  %v3924_v61 = vpack.c.bf16 %v3911_v48, %v3910_v42  ;;  %v7640_v51 = vpop.eup %5904  ;;  %v8089_v36 = vmax.f32 %v7418_v23, %v7428_v25 }
 0x491   : > { %3469 = vmatmul.bf16.gmra.mxu0 %v3365_v44  ;;  %v3306_v59 = vadd.f32 %v7637_v22, %v3290_v27  ;;  %v3084_v32 = vmax.f32 %v3068_v18, %v3026_v11  ;;  %5912 = vpow2.f32 %v3219_v12  ;;  %v2818_v47 = vadd.f32 %v2817_v56, %v2768_v21 }
 0x492   : > { %3656 = vmatmul.bf16.gmra.mxu1 %v3550_v29  ;;  %3843 = vmatmul.bf16.gmra.mxu2 %v3737_v58  ;;  %5914 = vpow2.f32 %v3267_v9 }
 0x493   : > { %v3322_v63 = vadd.f32 %v7640_v51, %v3306_v59  ;;  %v3100_v53 = vsub.f32 %v7616_v57, %v3084_v32  ;;  %v3148_v20 = vsub.f32 %v7603_v7, %v3084_v32  ;;  %v3196_v41 = vsub.f32 %v2815_v46, %v3084_v32 }
 0x494   : > { %v5907_v6 = vpop.eup %5906  ;;  %4030 = vmatmul.bf16.gmra.mxu3 %v3924_v61  ;;  %v3244_v3 = vsub.f32 %v3026_v11, %v3084_v32  ;;  %v2979_v2 = vpop.f32.mrf.mxu2  ;;  %v7655_v7 = vadd.f32 %v7436_v54, %v7434_v40  ;;  %v3069_v0 = vmax.f32 %v8089_v36, %v2818_v47  ;;  %v7668_v40 = vadd.f32 %v7430_v26, %v7426_v24 }
 0x495   : > { %v3353_v42 = vmul.f32 %v5907_v6, %v7597_v16  ;;  %v7647_v35 = vmul.f32 %v5907_v6, %v7599_v45  ;;  %v7649_v19 = vpop.eup %5908  ;;  %5916 = vrcp.f32 %v3322_v63  ;;  %v3125_v33 = vmul.f32 1.442695, %v3100_v53 }
 0x496   : > { %v3173_v43 = vmul.f32 1.442695, %v3148_v20  ;;  %v7651_v34 = vpop.eup %5910  ;;  %v3221_v57 = vmul.f32 1.442695, %v3196_v41  ;;  %v3028_v46 = vpop.f32.mrf.mxu3  ;;  %v3725_v8 = vmul.f32 %v5907_v6, %v7612_v62  ;;  %v3912_v16 = vmul.f32 %v5907_v6, %v7619_v39 }
 0x497   : > { %v2770_v10 = vpop.f32.mrf.mxu0  ;;  %v3291_v45 = vadd.f32 %v7651_v34, %v7649_v19  ;;  %5918 = vpow2.f32 %v3125_v33  ;;  %v3029_v31 = vadd.f32 %v3028_v46, %v2979_v2  ;;  %v7664_v5 = vpop.eup %5912  ;;  %v3269_v54 = vmul.f32 1.442695, %v3244_v3 }
 0x498   : > { %5920 = vpow2.f32 %v3173_v43  ;;  %v2819_v62 = vpop.f32.mrf.mxu1  ;;  %v7671_v37 = vpop.eup %5914  ;;  %v3054_v21 = vmax.f32 %v7668_v40, %v7655_v7 }
 0x499   : > { %v3307_v39 = vadd.f32 %v7664_v5, %v3291_v45  ;;  %v3085_v18 = vmax.f32 %v3069_v0, %v3029_v31  ;;  %v2820_v12 = vadd.f32 %v2819_v62, %v2770_v10  ;;  %5922 = vpow2.f32 %v3221_v57 }
 0x49a   : > { %5924 = vpow2.f32 %v3269_v54 }
 0x49b   : > { %v5917_v44 = vpop.eup %5916  ;;  %v3323_v29 = vadd.f32 %v7671_v37, %v3307_v39  ;;  %v3101_v30 = vsub.f32 %v7418_v23, %v3085_v18  ;;  %v3149_v24 = vsub.f32 %v7428_v25, %v3085_v18  ;;  %v3197_v26 = vsub.f32 %v2818_v47, %v3085_v18 }
 0x49c   : > { %v3245_v27 = vsub.f32 %v3029_v31, %v3085_v18  ;;  %v2981_v11 = vpop.f32.mrf.mxu2  ;;  %v3354_v48 = vmul.f32 %v5917_v44, %v7628_v50  ;;  %v3539_v9 = vmul.f32 %v5917_v44, %v7630_v52  ;;  %v3070_v32 = vmax.f32 %v3054_v21, %v2820_v12 }
 0x49d   : > { %v7680_v58 = vpop.eup %5918  ;;  %5926 = vrcp.f32 %v3323_v29  ;;  %v3127_v56 = vmul.f32 1.442695, %v3101_v30  ;;  %v3175_v59 = vmul.f32 1.442695, %v3149_v24  ;;  %v3223_v6 = vmul.f32 1.442695, %v3197_v26 }
 0x49e   : > { %v7682_v61 = vpop.eup %5920  ;;  %v3030_v23 = vpop.f32.mrf.mxu3  ;;  %v3366_v25 = vpack.c.bf16 %v3354_v48, %v3353_v42  ;;  %v3551_v47 = vpack.c.bf16 %v3539_v9, %v7647_v35  ;;  %v3726_v53 = vmul.f32 %v5917_v44, %v7637_v22  ;;  %v3913_v20 = vmul.f32 %v5917_v44, %v7640_v51 }
 0x49f   : > { %v2773_v63 = vpop.f32.mrf.mxu0  ;;  %v3292_v50 = vadd.f32 %v7682_v61, %v7680_v58  ;;  %5928 = vpow2.f32 %v3127_v56  ;;  %v3031_v52 = vadd.f32 %v3030_v23, %v2981_v11  ;;  %v7689_v41 = vpop.eup %5922  ;;  %v3271_v3 = vmul.f32 1.442695, %v3245_v27 }
 0x4a0   : > { %5930 = vpow2.f32 %v3175_v59  ;;  %v3738_v2 = vpack.c.bf16 %v3726_v53, %v3725_v8  ;;  %v2822_v33 = vpop.f32.mrf.mxu1  ;;  %v3925_v35 = vpack.c.bf16 %v3913_v20, %v3912_v16  ;;  %v7692_v57 = vpop.eup %5924  ;;  %v8090_v29 = vmax.f32 %v7438_v1, %v7448_v15 }
 0x4a1   : > { %3474 = vmatmul.bf16.gmra.mxu0 %v3366_v25  ;;  %v3308_v42 = vadd.f32 %v7689_v41, %v3292_v50  ;;  %v3086_v43 = vmax.f32 %v3070_v32, %v3031_v52  ;;  %5932 = vpow2.f32 %v3223_v6  ;;  %v2823_v22 = vadd.f32 %v2822_v33, %v2773_v63 }
 0x4a2   : > { %3661 = vmatmul.bf16.gmra.mxu1 %v3551_v47  ;;  %3848 = vmatmul.bf16.gmra.mxu2 %v3738_v2  ;;  %5934 = vpow2.f32 %v3271_v3 }
 0x4a3   : > { %v5927_v46 = vpop.eup %5926  ;;  %v3324_v51 = vadd.f32 %v7692_v57, %v3308_v42  ;;  %v3102_v10 = vsub.f32 %v7668_v40, %v3086_v43  ;;  %v3150_v45 = vsub.f32 %v7655_v7, %v3086_v43  ;;  %v3198_v36 = vsub.f32 %v2820_v12, %v3086_v43 }
 0x4a4   : > { %4035 = vmatmul.bf16.gmra.mxu3 %v3925_v35  ;;  %v3246_v8 = vsub.f32 %v3031_v52, %v3086_v43  ;;  %v2984_v0 = vpop.f32.mrf.mxu2  ;;  %v3355_v16 = vmul.f32 %v5927_v46, %v7649_v19  ;;  %v7699_v31 = vmul.f32 %v5927_v46, %v7651_v34  ;;  %v7707_v7 = vadd.f32 %v7456_v55, %v7454_v49 }
 0x4a5   : > { %v7701_v54 = vpop.eup %5928  ;;  %5936 = vrcp.f32 %v3324_v51  ;;  %v3129_v62 = vmul.f32 1.442695, %v3102_v10  ;;  %v3177_v39 = vmul.f32 1.442695, %v3150_v45  ;;  %v3225_v40 = vmul.f32 1.442695, %v3198_v36 }
 0x4a6   : > { %v7703_v18 = vpop.eup %5930  ;;  %v3033_v12 = vpop.f32.mrf.mxu3  ;;  %v3727_v44 = vmul.f32 %v5927_v46, %v7664_v5  ;;  %v3914_v19 = vmul.f32 %v5927_v46, %v7671_v37  ;;  %v3071_v30 = vmax.f32 %v8090_v29, %v2823_v22  ;;  %v7720_v49 = vadd.f32 %v7450_v17, %v7446_v14 }
 0x4a7   : > { %v2775_v21 = vpop.f32.mrf.mxu0  ;;  %v3293_v34 = vadd.f32 %v7703_v18, %v7701_v54  ;;  %5938 = vpow2.f32 %v3129_v62  ;;  %v3034_v24 = vadd.f32 %v3033_v12, %v2984_v0  ;;  %v7716_v26 = vpop.eup %5932  ;;  %v3273_v55 = vmul.f32 1.442695, %v3246_v8 }
 0x4a8   : > { %5940 = vpow2.f32 %v3177_v39  ;;  %v2824_v5 = vpop.f32.mrf.mxu1  ;;  %v7723_v48 = vpop.eup %5934  ;;  %v3056_v9 = vmax.f32 %v7720_v49, %v7707_v7 }
 0x4a9   : > { %v3309_v37 = vadd.f32 %v7716_v26, %v3293_v34  ;;  %v3087_v27 = vmax.f32 %v3071_v30, %v3034_v24  ;;  %v2825_v11 = vadd.f32 %v2824_v5, %v2775_v21  ;;  %5942 = vpow2.f32 %v3225_v40 }
 0x4aa   : > { %5944 = vpow2.f32 %v3273_v55 }
 0x4ab   : > { %v5937_v56 = vpop.eup %5936  ;;  %v3325_v59 = vadd.f32 %v7723_v48, %v3309_v37  ;;  %v3103_v32 = vsub.f32 %v7438_v1, %v3087_v27  ;;  %v3151_v14 = vsub.f32 %v7448_v15, %v3087_v27  ;;  %v3199_v17 = vsub.f32 %v2823_v22, %v3087_v27 }
 0x4ac   : > { %v3247_v6 = vsub.f32 %v3034_v24, %v3087_v27  ;;  %v2986_v23 = vpop.f32.mrf.mxu2  ;;  %v3356_v63 = vmul.f32 %v5937_v56, %v7680_v58  ;;  %v3541_v25 = vmul.f32 %v5937_v56, %v7682_v61  ;;  %v3072_v52 = vmax.f32 %v3056_v9, %v2825_v11 }
 0x4ad   : > { %v7732_v47 = vpop.eup %5938  ;;  %5946 = vrcp.f32 %v3325_v59  ;;  %v3131_v53 = vmul.f32 1.442695, %v3103_v32  ;;  %v3179_v50 = vmul.f32 1.442695, %v3151_v14  ;;  %v3227_v3 = vmul.f32 1.442695, %v3199_v17 }
 0x4ae   : > { %v7734_v20 = vpop.eup %5940  ;;  %v3035_v1 = vpop.f32.mrf.mxu3  ;;  %v3367_v15 = vpack.c.bf16 %v3356_v63, %v3355_v16  ;;  %v3552_v33 = vpack.c.bf16 %v3541_v25, %v7699_v31  ;;  %v3728_v42 = vmul.f32 %v5937_v56, %v7689_v41  ;;  %v3915_v43 = vmul.f32 %v5937_v56, %v7692_v57 }
 0x4af   : > { %v2778_v2 = vpop.f32.mrf.mxu0  ;;  %v3294_v58 = vadd.f32 %v7734_v20, %v7732_v47  ;;  %5948 = vpow2.f32 %v3131_v53  ;;  %v3036_v61 = vadd.f32 %v3035_v1, %v2986_v23  ;;  %v7741_v35 = vpop.eup %5942  ;;  %v3275_v22 = vmul.f32 1.442695, %v3247_v6 }
 0x4b0   : > { %5950 = vpow2.f32 %v3179_v50  ;;  %v3739_v46 = vpack.c.bf16 %v3728_v42, %v3727_v44  ;;  %v2827_v51 = vpop.f32.mrf.mxu1  ;;  %v3926_v36 = vpack.c.bf16 %v3915_v43, %v3914_v19  ;;  %v7744_v8 = vpop.eup %5944  ;;  %v8091_v37 = vmax.f32 %v7458_v4, %v7464_v13 }
 0x4b1   : > { %3479 = vmatmul.bf16.gmra.mxu0 %v3367_v15  ;;  %v3310_v10 = vadd.f32 %v7741_v35, %v3294_v58  ;;  %v3088_v45 = vmax.f32 %v3072_v52, %v3036_v61  ;;  %5952 = vpow2.f32 %v3227_v3  ;;  %v2828_v41 = vadd.f32 %v2827_v51, %v2778_v2 }
 0x4b2   : > { %3666 = vmatmul.bf16.gmra.mxu1 %v3552_v33  ;;  %3853 = vmatmul.bf16.gmra.mxu2 %v3739_v46  ;;  %5954 = vpow2.f32 %v3275_v22 }
 0x4b3   : > { %v5947_v0 = vpop.eup %5946  ;;  %v3326_v57 = vadd.f32 %v7744_v8, %v3310_v10  ;;  %v3104_v16 = vsub.f32 %v7720_v49, %v3088_v45  ;;  %v3152_v31 = vsub.f32 %v7707_v7, %v3088_v45  ;;  %v3200_v62 = vsub.f32 %v2825_v11, %v3088_v45 }
 0x4b4   : > { %4040 = vmatmul.bf16.gmra.mxu3 %v3926_v36  ;;  %v3248_v39 = vsub.f32 %v3036_v61, %v3088_v45  ;;  %v2989_v40 = vpop.f32.mrf.mxu2  ;;  %v3357_v12 = vmul.f32 %v5947_v0, %v7701_v54  ;;  %v7751_v21 = vmul.f32 %v5947_v0, %v7703_v18  ;;  %v7759_v7 = vadd.f32 %v7472_v38, %v7470_v28  ;;  %v8092_v28 = vld [vmem:[#allocation5_spill] sm:$0xff] }
 0x4b5   : > { %v7753_v44 = vpop.eup %5948  ;;  %5956 = vrcp.f32 %v3326_v57  ;;  %v3133_v19 = vmul.f32 1.442695, %v3104_v16  ;;  %v3181_v34 = vmul.f32 1.442695, %v3152_v31  ;;  %v3229_v29 = vmul.f32 1.442695, %v3200_v62 }
 0x4b6   : > { %v7755_v30 = vpop.eup %5950  ;;  %v3277_v24 = vmul.f32 1.442695, %v3248_v39  ;;  %v3038_v49 = vpop.f32.mrf.mxu3  ;;  %v3729_v54 = vmul.f32 %v5947_v0, %v7716_v26  ;;  %v3916_v18 = vmul.f32 %v5947_v0, %v7723_v48  ;;  %v3073_v27 = vmax.f32 %v8091_v37, %v2828_v41 }
 0x4b7   : > { %v2780_v55 = vpop.f32.mrf.mxu0  ;;  %v3295_v5 = vadd.f32 %v7755_v30, %v7753_v44  ;;  %5958 = vpow2.f32 %v3133_v19  ;;  %v3039_v11 = vadd.f32 %v3038_v49, %v2989_v40  ;;  %v5953_v9 = vpop.eup %5952  ;;  %v2408_v38 = vadd.f32 %v8092_v28, %v7462_v60 }
 0x4b8   : > { %5960 = vpow2.f32 %v3181_v34  ;;  %v2829_v56 = vpop.f32.mrf.mxu1  ;;  %v5955_v48 = vpop.eup %5954 }
 0x4b9   : > { %v3311_v59 = vadd.f32 %v5953_v9, %v3295_v5  ;;  %5962 = vpow2.f32 %v3229_v29  ;;  %v3089_v26 = vmax.f32 %v3073_v27, %v3039_v11  ;;  %v2830_v32 = vadd.f32 %v2829_v56, %v2780_v55 }
 0x4ba   : > { %v3058_v14 = vmax.f32 %v2408_v38, %v7759_v7  ;;  %5964 = vpow2.f32 %v3277_v24 }
 0x4bb   : > { %v5957_v17 = vpop.eup %5956  ;;  %v3327_v6 = vadd.f32 %v5955_v48, %v3311_v59  ;;  %v3105_v23 = vsub.f32 %v7458_v4, %v3089_v26  ;;  %v3153_v63 = vsub.f32 %v7464_v13, %v3089_v26  ;;  %v3201_v25 = vsub.f32 %v2828_v41, %v3089_v26 }
 0x4bc   : > { %v3249_v53 = vsub.f32 %v3039_v11, %v3089_v26  ;;  %v3074_v50 = vmax.f32 %v3058_v14, %v2830_v32  ;;  %v2991_v60 = vpop.f32.mrf.mxu2  ;;  %v3358_v52 = vmul.f32 %v5957_v17, %v7732_v47  ;;  %v3543_v3 = vmul.f32 %v5957_v17, %v7734_v20 }
 0x4bd   : > { %v5959_v1 = vpop.eup %5958  ;;  %5966 = vrcp.f32 %v3327_v6  ;;  %v3135_v2 = vmul.f32 1.442695, %v3105_v23  ;;  %v3183_v15 = vmul.f32 1.442695, %v3153_v63  ;;  %v3231_v33 = vmul.f32 1.442695, %v3201_v25 }
 0x4be   : > { %v5961_v42 = vpop.eup %5960  ;;  %v3279_v58 = vmul.f32 1.442695, %v3249_v53  ;;  %v3040_v61 = vpop.f32.mrf.mxu3  ;;  %v3368_v43 = vpack.c.bf16 %v3358_v52, %v3357_v12  ;;  %v3553_v4 = vpack.c.bf16 %v3543_v3, %v7751_v21  ;;  %v3730_v13 = vmul.f32 %v5957_v17, %v7741_v35 }
 0x4bf   : > { %v5963_v22 = vpop.eup %5962  ;;  %v3296_v46 = vadd.f32 %v5961_v42, %v5959_v1  ;;  %5968 = vpow2.f32 %v3135_v2  ;;  %v3041_v51 = vadd.f32 %v3040_v61, %v2991_v60  ;;  %v3917_v47 = vmul.f32 %v5957_v17, %v7744_v8  ;;  %v3371_v61 = vld [vmem:[%s6254_s24] sm:$0xff] }
 0x4c0   : > { %v5965_v20 = vpop.eup %5964  ;;  %5970 = vpow2.f32 %v3183_v15  ;;  %v3740_v10 = vpack.c.bf16 %v3730_v13, %v3729_v54 }
 0x4c1   : > { %3484 = vmatmul.bf16.gmra.mxu0 %v3368_v43  ;;  %v3312_v45 = vadd.f32 %v5963_v22, %v3296_v46  ;;  %5972 = vpow2.f32 %v3231_v33  ;;  %v3090_v36 = vmax.f32 %v3074_v50, %v3041_v51  ;;  %v3927_v41 = vpack.c.bf16 %v3917_v47, %v3916_v18  ;;  %v5396_v47 = vld [vmem:[%s6254_s24 + $0x100] sm:$0xff] }
 0x4c2   : > { %5974 = vpow2.f32 %v3279_v58  ;;  %3671 = vmatmul.bf16.gmra.mxu1 %v3553_v4  ;;  %3858 = vmatmul.bf16.gmra.mxu2 %v3740_v10  ;;  %v5316_v4 = vld [vmem:[%s6254_s24 + $0x80] sm:$0xff] }
 0x4c3   : > { %v5967_v0 = vpop.eup %5966  ;;  %v3328_v57 = vadd.f32 %v5965_v20, %v3312_v45  ;;  %v3106_v35 = vsub.f32 %v2408_v38, %v3090_v36  ;;  %v3154_v16 = vsub.f32 %v7759_v7, %v3090_v36  ;;  %v3202_v31 = vsub.f32 %v2830_v32, %v3090_v36 }
 0x4c4   : > { %4045 = vmatmul.bf16.gmra.mxu3 %v3927_v41  ;;  %v3250_v62 = vsub.f32 %v3041_v51, %v3090_v36  ;;  %v3359_v8 = vmul.f32 %v5967_v0, %v7753_v44  ;;  %v3544_v39 = vmul.f32 %v5967_v0, %v7755_v30  ;;  %v3731_v40 = vmul.f32 %v5967_v0, %v5953_v9  ;;  %v5476_v51 = vld [vmem:[%s6254_s24 + $0x180] sm:$0xff] }
 0x4c5   : > { %v5969_v12 = vpop.eup %5968  ;;  %5976 = vrcp.f32 %v3328_v57  ;;  %v3137_v21 = vmul.f32 1.442695, %v3106_v35  ;;  %v3185_v19 = vmul.f32 1.442695, %v3154_v16  ;;  %v3233_v29 = vmul.f32 1.442695, %v3202_v31 }
 0x4c6   : > { %v5971_v34 = vpop.eup %5970  ;;  %v3918_v24 = vmul.f32 %v5967_v0, %v5955_v48  ;;  %v3281_v54 = vmul.f32 1.442695, %v3250_v62  ;;  %v5317_v0 = vld [vmem:[%s6254_s24 + $0x88] sm:$0xff] }
 0x4c7   : > { %v5973_v49 = vpop.eup %5972  ;;  %v3297_v55 = vadd.f32 %v5971_v34, %v5969_v12  ;;  %5978 = vpow2.f32 %v3137_v21  ;;  %v5477_v62 = vld [vmem:[%s6254_s24 + $0x188] sm:$0xff] }
 0x4c8   : > { %v5975_v7 = vpop.eup %5974  ;;  %5980 = vpow2.f32 %v3185_v19 }
 0x4c9   : > { %v3313_v18 = vadd.f32 %v5973_v49, %v3297_v55  ;;  %5982 = vpow2.f32 %v3233_v29 }
 0x4ca   : > { %5984 = vpow2.f32 %v3281_v54  ;;  %v5398_v54 = vld [vmem:[%s6254_s24 + $0x110] sm:$0xff] }
 0x4cb   : > { %v5977_v5 = vpop.eup %5976  ;;  %v3329_v44 = vadd.f32 %v5975_v7, %v3313_v18  ;;  %v5478_v18 = vld [vmem:[%s6254_s24 + $0x190] sm:$0xff] }
 0x4cc   : > { %v3360_v30 = vmul.f32 %v5977_v5, %v5959_v1  ;;  %v3545_v37 = vmul.f32 %v5977_v5, %v5961_v42  ;;  %v3732_v27 = vmul.f32 %v5977_v5, %v5963_v22  ;;  %v3919_v11 = vmul.f32 %v5977_v5, %v5965_v20  ;;  %v3372_v20 = vld [vmem:[%s6254_s24 + $0x8] sm:$0xff] }
 0x4cd   : > { %v5979_v9 = vpop.eup %5978  ;;  %5986 = vrcp.f32 %v3329_v44 }
 0x4ce   : > { %v5981_v28 = vpop.eup %5980  ;;  %v3369_v38 = vpack.c.bf16 %v3360_v30, %v3359_v8  ;;  %v3554_v56 = vpack.c.bf16 %v3545_v37, %v3544_v39  ;;  %v3741_v59 = vpack.c.bf16 %v3732_v27, %v3731_v40  ;;  %v3928_v32 = vpack.c.bf16 %v3919_v11, %v3918_v24  ;;  %v5397_v8 = vld [vmem:[%s6254_s24 + $0x108] sm:$0xff]  ;;  %v3373_v39 = vld [vmem:[%s6254_s24 + $0x10] sm:$0xff]  ;;  %v5319_v30 = vld [vmem:[%s6254_s24 + $0x98] sm:$0xff] }
 0x4cf   : > { %v3298_v26 = vadd.f32 %v5981_v28, %v5979_v9  ;;  %v5983_v48 = vpop.eup %5982 }
 0x4d0   : > { %v5985_v14 = vpop.eup %5984 }
 0x4d1   : > { %3489 = vmatmul.bf16.gmra.mxu0 %v3369_v38  ;;  %v3314_v17 = vadd.f32 %v5983_v48, %v3298_v26  ;;  %v5479_v26 = vld [vmem:[%s6254_s24 + $0x198] sm:$0xff] }
 0x4d2   : > { %3676 = vmatmul.bf16.gmra.mxu1 %v3554_v56  ;;  %3863 = vmatmul.bf16.gmra.mxu2 %v3741_v59  ;;  %v5399_v56 = vld [vmem:[%s6254_s24 + $0x118] sm:$0xff]  ;;  %v3375_v59 = vld [vmem:[%s6254_s24 + $0x20] sm:$0xff] }
 0x4d3   : > { %v5987_v6 = vpop.eup %5986  ;;  %v3330_v23 = vadd.f32 %v5985_v14, %v3314_v17 }
 0x4d4   : > { %4050 = vmatmul.bf16.gmra.mxu3 %v3928_v32  ;;  %v3361_v63 = vmul.f32 %v5987_v6, %v5969_v12  ;;  %v3546_v25 = vmul.f32 %v5987_v6, %v5971_v34  ;;  %v3733_v53 = vmul.f32 %v5987_v6, %v5973_v49  ;;  %v3920_v50 = vmul.f32 %v5987_v6, %v5975_v7  ;;  %v5318_v34 = vld [vmem:[%s6254_s24 + $0x90] sm:$0xff]  ;;  %v3374_v7 = vld [vmem:[%s6254_s24 + $0x18] sm:$0xff] }
 0x4d5   : > { %5988 = vrcp.f32 %v3330_v23 }
 0x4db   : > { %v5989_v60 = vpop.eup %5988 }
 0x4dc   : > { %v3362_v52 = vmul.f32 %v5989_v60, %v5979_v9  ;;  %v3547_v3 = vmul.f32 %v5989_v60, %v5981_v28  ;;  %v3734_v1 = vmul.f32 %v5989_v60, %v5983_v48  ;;  %v3921_v2 = vmul.f32 %v5989_v60, %v5985_v14  ;;  %v5320_v14 = vld [vmem:[%s6254_s24 + $0xa0] sm:$0xff]  ;;  %v3376_v60 = vld [vmem:[%s6254_s24 + $0x28] sm:$0xff] }
 0x4de   : > { %v3370_v15 = vpack.c.bf16 %v3362_v52, %v3361_v63  ;;  %v3555_v33 = vpack.c.bf16 %v3547_v3, %v3546_v25  ;;  %v3742_v42 = vpack.c.bf16 %v3734_v1, %v3733_v53  ;;  %v3929_v58 = vpack.c.bf16 %v3921_v2, %v3920_v50  ;;  %v5400_v50 = vld [vmem:[%s6254_s24 + $0x120] sm:$0xff]  ;;  %v5321_v2 = vld [vmem:[%s6254_s24 + $0xa8] sm:$0xff] }
 0x4df   : > { %v5480_v52 = vld [vmem:[%s6254_s24 + $0x1a0] sm:$0xff] }
 0x4e1   : > { %3494 = vmatmul.bf16.gmra.mxu0 %v3370_v15 }
 0x4e2   : > { %3681 = vmatmul.bf16.gmra.mxu1 %v3555_v33  ;;  %3868 = vmatmul.bf16.gmra.mxu2 %v3742_v42 }
 0x4e4   : > { %4055 = vmatmul.bf16.gmra.mxu3 %v3929_v58 }
 0x4ee   : > { %v3460_v43 = vpop.f32.mrf.mxu0 }
 0x4ef   : > { %v3500_v13 = vadd.f32 %v3460_v43, %v3371_v61  ;;  %v3647_v22 = vpop.f32.mrf.mxu1 }
 0x4f0   : > { %v3687_v46 = vadd.f32 %v5316_v4, %v3647_v22  ;;  %v5401_v4 = vld [vmem:[%s6254_s24 + $0x128] sm:$0xff] }
 0x4f1   : > { %3516 = vst [vmem:[%s6254_s24] sm:$0xff] %v3500_v13  ;;  %v3377_v13 = vld [vmem:[%s6254_s24 + $0x30] sm:$0xff]  ;;  %v5481_v22 = vld [vmem:[%s6254_s24 + $0x1a8] sm:$0xff] }
 0x4f2   : > { %5380 = vst [vmem:[%s6254_s24 + $0x80] sm:$0xff] %v3687_v46 }
 0x4f4   : > { %v4021_v10 = vpop.f32.mrf.mxu3 }
 0x4f5   : > { %v3834_v45 = vpop.f32.mrf.mxu2  ;;  %v4061_v36 = vadd.f32 %v5476_v51, %v4021_v10 }
 0x4f6   : > { %v3462_v41 = vpop.f32.mrf.mxu0  ;;  %v3874_v57 = vadd.f32 %v5396_v47, %v3834_v45  ;;  %v5322_v47 = vld [vmem:[%s6254_s24 + $0xb0] sm:$0xff] }
 0x4f7   : > { %v3501_v35 = vadd.f32 %v3462_v41, %v3372_v20  ;;  %5540 = vst [vmem:[%s6254_s24 + $0x180] sm:$0xff] %v4061_v36  ;;  %v3649_v16 = vpop.f32.mrf.mxu1 }
 0x4f8   : > { %5460 = vst [vmem:[%s6254_s24 + $0x100] sm:$0xff] %v3874_v57  ;;  %v3688_v31 = vadd.f32 %v5317_v0, %v3649_v16  ;;  %v5402_v57 = vld [vmem:[%s6254_s24 + $0x130] sm:$0xff] }
 0x4f9   : > { %3517 = vst [vmem:[%s6254_s24 + $0x8] sm:$0xff] %v3501_v35  ;;  %v3378_v35 = vld [vmem:[%s6254_s24 + $0x38] sm:$0xff]  ;;  %v5482_v16 = vld [vmem:[%s6254_s24 + $0x1b0] sm:$0xff] }
 0x4fa   : > { %5381 = vst [vmem:[%s6254_s24 + $0x88] sm:$0xff] %v3688_v31 }
 0x4fc   : > { %v4023_v40 = vpop.f32.mrf.mxu3 }
 0x4fd   : > { %v3836_v12 = vpop.f32.mrf.mxu2  ;;  %v4062_v21 = vadd.f32 %v5477_v62, %v4023_v40 }
 0x4fe   : > { %v3465_v19 = vpop.f32.mrf.mxu0  ;;  %v3875_v29 = vadd.f32 %v5397_v8, %v3836_v12  ;;  %v5323_v8 = vld [vmem:[%s6254_s24 + $0xb8] sm:$0xff] }
 0x4ff   : > { %v3502_v24 = vadd.f32 %v3465_v19, %v3373_v39  ;;  %5541 = vst [vmem:[%s6254_s24 + $0x188] sm:$0xff] %v4062_v21  ;;  %v3652_v49 = vpop.f32.mrf.mxu1 }
 0x500   : > { %5461 = vst [vmem:[%s6254_s24 + $0x108] sm:$0xff] %v3875_v29  ;;  %v3689_v55 = vadd.f32 %v5318_v34, %v3652_v49  ;;  %v5403_v29 = vld [vmem:[%s6254_s24 + $0x138] sm:$0xff] }
 0x501   : > { %3518 = vst [vmem:[%s6254_s24 + $0x10] sm:$0xff] %v3502_v24  ;;  %v3379_v24 = vld [vmem:[%s6254_s24 + $0x40] sm:$0xff]  ;;  %v5483_v49 = vld [vmem:[%s6254_s24 + $0x1b8] sm:$0xff] }
 0x502   : > { %5382 = vst [vmem:[%s6254_s24 + $0x90] sm:$0xff] %v3689_v55 }
 0x505   : > { %v3839_v5 = vpop.f32.mrf.mxu2 }
 0x506   : > { %v3467_v44 = vpop.f32.mrf.mxu0  ;;  %v3876_v37 = vadd.f32 %v5398_v54, %v3839_v5 }
 0x507   : > { %v4026_v27 = vpop.f32.mrf.mxu3  ;;  %v3503_v11 = vadd.f32 %v3467_v44, %v3374_v7  ;;  %v3654_v28 = vpop.f32.mrf.mxu1  ;;  %v5324_v7 = vld [vmem:[%s6254_s24 + $0xc0] sm:$0xff] }
 0x508   : > { %v4063_v9 = vadd.f32 %v5478_v18, %v4026_v27  ;;  %5462 = vst [vmem:[%s6254_s24 + $0x110] sm:$0xff] %v3876_v37  ;;  %v3690_v38 = vadd.f32 %v5319_v30, %v3654_v28  ;;  %v5484_v28 = vld [vmem:[%s6254_s24 + $0x1c0] sm:$0xff] }
 0x509   : > { %3519 = vst [vmem:[%s6254_s24 + $0x18] sm:$0xff] %v3503_v11  ;;  %v5404_v11 = vld [vmem:[%s6254_s24 + $0x140] sm:$0xff] }
 0x50a   : > { %5542 = vst [vmem:[%s6254_s24 + $0x190] sm:$0xff] %v4063_v9  ;;  %v3380_v9 = vld [vmem:[%s6254_s24 + $0x48] sm:$0xff] }
 0x50b   : > { %5383 = vst [vmem:[%s6254_s24 + $0x98] sm:$0xff] %v3690_v38 }
 0x50d   : > { %v3841_v32 = vpop.f32.mrf.mxu2 }
 0x50e   : > { %v3470_v48 = vpop.f32.mrf.mxu0  ;;  %v3877_v17 = vadd.f32 %v5399_v56, %v3841_v32 }
 0x50f   : > { %v4028_v6 = vpop.f32.mrf.mxu3  ;;  %v3504_v23 = vadd.f32 %v3470_v48, %v3375_v59  ;;  %v3657_v25 = vpop.f32.mrf.mxu1  ;;  %v5325_v59 = vld [vmem:[%s6254_s24 + $0xc8] sm:$0xff] }
 0x510   : > { %v4064_v63 = vadd.f32 %v5479_v26, %v4028_v6  ;;  %5463 = vst [vmem:[%s6254_s24 + $0x118] sm:$0xff] %v3877_v17  ;;  %v3691_v53 = vadd.f32 %v5320_v14, %v3657_v25  ;;  %v5485_v25 = vld [vmem:[%s6254_s24 + $0x1c8] sm:$0xff] }
 0x511   : > { %3520 = vst [vmem:[%s6254_s24 + $0x20] sm:$0xff] %v3504_v23  ;;  %v5405_v23 = vld [vmem:[%s6254_s24 + $0x148] sm:$0xff] }
 0x512   : > { %5543 = vst [vmem:[%s6254_s24 + $0x198] sm:$0xff] %v4064_v63  ;;  %v3381_v63 = vld [vmem:[%s6254_s24 + $0x50] sm:$0xff] }
 0x513   : > { %5384 = vst [vmem:[%s6254_s24 + $0xa0] sm:$0xff] %v3691_v53 }
 0x515   : > { %v3844_v3 = vpop.f32.mrf.mxu2 }
 0x516   : > { %v3472_v1 = vpop.f32.mrf.mxu0  ;;  %v3878_v15 = vadd.f32 %v5400_v50, %v3844_v3 }
 0x517   : > { %v4031_v33 = vpop.f32.mrf.mxu3  ;;  %v3505_v42 = vadd.f32 %v3472_v1, %v3376_v60  ;;  %v3659_v61 = vpop.f32.mrf.mxu1  ;;  %v5326_v60 = vld [vmem:[%s6254_s24 + $0xd0] sm:$0xff] }
 0x518   : > { %v4065_v58 = vadd.f32 %v5480_v52, %v4031_v33  ;;  %5464 = vst [vmem:[%s6254_s24 + $0x120] sm:$0xff] %v3878_v15  ;;  %v3692_v43 = vadd.f32 %v5321_v2, %v3659_v61  ;;  %v5486_v61 = vld [vmem:[%s6254_s24 + $0x1d0] sm:$0xff] }
 0x519   : > { %3521 = vst [vmem:[%s6254_s24 + $0x28] sm:$0xff] %v3505_v42  ;;  %v5406_v42 = vld [vmem:[%s6254_s24 + $0x150] sm:$0xff] }
 0x51a   : > { %5544 = vst [vmem:[%s6254_s24 + $0x1a0] sm:$0xff] %v4065_v58  ;;  %v3382_v58 = vld [vmem:[%s6254_s24 + $0x58] sm:$0xff] }
 0x51b   : > { %5385 = vst [vmem:[%s6254_s24 + $0xa8] sm:$0xff] %v3692_v43 }
 0x51d   : > { %v3846_v46 = vpop.f32.mrf.mxu2 }
 0x51e   : > { %v3475_v51 = vpop.f32.mrf.mxu0  ;;  %v3879_v20 = vadd.f32 %v5401_v4, %v3846_v46 }
 0x51f   : > { %v4033_v10 = vpop.f32.mrf.mxu3  ;;  %v3506_v45 = vadd.f32 %v3475_v51, %v3377_v13  ;;  %v3662_v41 = vpop.f32.mrf.mxu1  ;;  %v5327_v13 = vld [vmem:[%s6254_s24 + $0xd8] sm:$0xff] }
 0x520   : > { %v4066_v36 = vadd.f32 %v5481_v22, %v4033_v10  ;;  %5465 = vst [vmem:[%s6254_s24 + $0x128] sm:$0xff] %v3879_v20  ;;  %v3693_v0 = vadd.f32 %v5322_v47, %v3662_v41  ;;  %v5487_v41 = vld [vmem:[%s6254_s24 + $0x1d8] sm:$0xff] }
 0x521   : > { %3522 = vst [vmem:[%s6254_s24 + $0x30] sm:$0xff] %v3506_v45  ;;  %v5407_v45 = vld [vmem:[%s6254_s24 + $0x158] sm:$0xff] }
 0x522   : > { %5545 = vst [vmem:[%s6254_s24 + $0x1a8] sm:$0xff] %v4066_v36  ;;  %v3383_v36 = vld [vmem:[%s6254_s24 + $0x60] sm:$0xff] }
 0x523   : > { %5386 = vst [vmem:[%s6254_s24 + $0xb0] sm:$0xff] %v3693_v0 }
 0x525   : > { %v3849_v31 = vpop.f32.mrf.mxu2 }
 0x526   : > { %v3477_v62 = vpop.f32.mrf.mxu0  ;;  %v3880_v39 = vadd.f32 %v5402_v57, %v3849_v31 }
 0x527   : > { %v4036_v40 = vpop.f32.mrf.mxu3  ;;  %v3507_v12 = vadd.f32 %v3477_v62, %v3378_v35  ;;  %v3664_v19 = vpop.f32.mrf.mxu1  ;;  %v5328_v35 = vld [vmem:[%s6254_s24 + $0xe0] sm:$0xff] }
 0x528   : > { %v4067_v21 = vadd.f32 %v5482_v16, %v4036_v40  ;;  %5466 = vst [vmem:[%s6254_s24 + $0x130] sm:$0xff] %v3880_v39  ;;  %v3694_v34 = vadd.f32 %v5323_v8, %v3664_v19  ;;  %v5488_v19 = vld [vmem:[%s6254_s24 + $0x1e0] sm:$0xff] }
 0x529   : > { %3523 = vst [vmem:[%s6254_s24 + $0x38] sm:$0xff] %v3507_v12  ;;  %v5408_v12 = vld [vmem:[%s6254_s24 + $0x160] sm:$0xff] }
 0x52a   : > { %5546 = vst [vmem:[%s6254_s24 + $0x1b0] sm:$0xff] %v4067_v21  ;;  %v3384_v21 = vld [vmem:[%s6254_s24 + $0x68] sm:$0xff] }
 0x52b   : > { %5387 = vst [vmem:[%s6254_s24 + $0xb8] sm:$0xff] %v3694_v34 }
 0x52d   : > { %v3851_v55 = vpop.f32.mrf.mxu2 }
 0x52e   : > { %v3480_v54 = vpop.f32.mrf.mxu0  ;;  %v3881_v18 = vadd.f32 %v5403_v29, %v3851_v55 }
 0x52f   : > { %v4038_v5 = vpop.f32.mrf.mxu3  ;;  %v3508_v44 = vadd.f32 %v3480_v54, %v3379_v24  ;;  %v3667_v37 = vpop.f32.mrf.mxu1  ;;  %v5329_v24 = vld [vmem:[%s6254_s24 + $0xe8] sm:$0xff] }
 0x530   : > { %v4068_v30 = vadd.f32 %v5483_v49, %v4038_v5  ;;  %5467 = vst [vmem:[%s6254_s24 + $0x138] sm:$0xff] %v3881_v18  ;;  %v3695_v27 = vadd.f32 %v5324_v7, %v3667_v37  ;;  %v5489_v37 = vld [vmem:[%s6254_s24 + $0x1e8] sm:$0xff] }
 0x531   : > { %3524 = vst [vmem:[%s6254_s24 + $0x40] sm:$0xff] %v3508_v44  ;;  %v5409_v44 = vld [vmem:[%s6254_s24 + $0x168] sm:$0xff] }
 0x532   : > { %5547 = vst [vmem:[%s6254_s24 + $0x1b8] sm:$0xff] %v4068_v30  ;;  %v3385_v30 = vld [vmem:[%s6254_s24 + $0x70] sm:$0xff] }
 0x533   : > { %5388 = vst [vmem:[%s6254_s24 + $0xc0] sm:$0xff] %v3695_v27 }
 0x535   : > { %v3854_v38 = vpop.f32.mrf.mxu2 }
 0x536   : > { %v3482_v56 = vpop.f32.mrf.mxu0  ;;  %v3882_v26 = vadd.f32 %v5404_v11, %v3854_v38 }
 0x537   : > { %v4041_v32 = vpop.f32.mrf.mxu3  ;;  %v3509_v48 = vadd.f32 %v3482_v56, %v3380_v9  ;;  %v3669_v17 = vpop.f32.mrf.mxu1  ;;  %v5330_v9 = vld [vmem:[%s6254_s24 + $0xf0] sm:$0xff] }
 0x538   : > { %v4069_v14 = vadd.f32 %v5484_v28, %v4041_v32  ;;  %5468 = vst [vmem:[%s6254_s24 + $0x140] sm:$0xff] %v3882_v26  ;;  %v3696_v6 = vadd.f32 %v5325_v59, %v3669_v17  ;;  %v5490_v17 = vld [vmem:[%s6254_s24 + $0x1f0] sm:$0xff] }
 0x539   : > { %3525 = vst [vmem:[%s6254_s24 + $0x48] sm:$0xff] %v3509_v48  ;;  %v5410_v48 = vld [vmem:[%s6254_s24 + $0x170] sm:$0xff] }
 0x53a   : > { %5548 = vst [vmem:[%s6254_s24 + $0x1c0] sm:$0xff] %v4069_v14  ;;  %v3386_v14 = vld [vmem:[%s6254_s24 + $0x78] sm:$0xff] }
 0x53b   : > { %5389 = vst [vmem:[%s6254_s24 + $0xc8] sm:$0xff] %v3696_v6 }
 0x53d   : > { %v3856_v53 = vpop.f32.mrf.mxu2 }
 0x53e   : > { %v3485_v50 = vpop.f32.mrf.mxu0  ;;  %v3883_v52 = vadd.f32 %v5405_v23, %v3856_v53 }
 0x53f   : > { %v4043_v3 = vpop.f32.mrf.mxu3  ;;  %v3510_v1 = vadd.f32 %v3485_v50, %v3381_v63  ;;  %v3672_v15 = vpop.f32.mrf.mxu1  ;;  %v5331_v63 = vld [vmem:[%s6254_s24 + $0xf8] sm:$0xff] }
 0x540   : > { %v4070_v2 = vadd.f32 %v5485_v25, %v4043_v3  ;;  %5469 = vst [vmem:[%s6254_s24 + $0x148] sm:$0xff] %v3883_v52  ;;  %v3697_v33 = vadd.f32 %v5326_v60, %v3672_v15 }
 0x541   : > { %3526 = vst [vmem:[%s6254_s24 + $0x50] sm:$0xff] %v3510_v1  ;;  %v5411_v1 = vld [vmem:[%s6254_s24 + $0x178] sm:$0xff] }
 0x542   : > { %5549 = vst [vmem:[%s6254_s24 + $0x1c8] sm:$0xff] %v4070_v2  ;;  %v5491_v2 = vld [vmem:[%s6254_s24 + $0x1f8] sm:$0xff] }
 0x543   : > { %5390 = vst [vmem:[%s6254_s24 + $0xd0] sm:$0xff] %v3697_v33 }
 0x545   : > { %v3859_v43 = vpop.f32.mrf.mxu2 }
 0x546   : > { %v3487_v4 = vpop.f32.mrf.mxu0  ;;  %v3884_v22 = vadd.f32 %v5406_v42, %v3859_v43  ;;  %v4259_v43 = vld [vmem:[%s6254_s24 + $0x8] sm:$0xff] (%p6158_p9) }
 0x547   : > { %v4046_v46 = vpop.f32.mrf.mxu3  ;;  %v3511_v51 = vadd.f32 %v3487_v4, %v3382_v58  ;;  %v3674_v20 = vpop.f32.mrf.mxu1  ;;  %v4261_v4 = vld [vmem:[%s6254_s24 + $0x10] sm:$0xff] (%p6158_p9)  ;;  %4260 = vst [vmem:[%s7917_s9 + $0x8] sm:$0xff] (%p6158_p9), %v4259_v43 }
 0x548   : > { %v4071_v47 = vadd.f32 %v5486_v61, %v4046_v46  ;;  %5470 = vst [vmem:[%s6254_s24 + $0x150] sm:$0xff] %v3884_v22  ;;  %v3698_v10 = vadd.f32 %v5327_v13, %v3674_v20  ;;  %v4257_v61 = vld [vmem:[%s6254_s24] sm:$0xff] (%p6158_p9)  ;;  %v4263_v13 = vld [vmem:[%s6254_s24 + $0x18] sm:$0xff] (%p6158_p9)  ;;  %v4267_v46 = vld [vmem:[%s6254_s24 + $0x28] sm:$0xff] (%p6158_p9) }
 0x549   : > { %3527 = vst [vmem:[%s6254_s24 + $0x58] sm:$0xff] %v3511_v51  ;;  %v4265_v22 = vld [vmem:[%s6254_s24 + $0x20] sm:$0xff] (%p6158_p9)  ;;  %v4269_v51 = vld [vmem:[%s6254_s24 + $0x30] sm:$0xff] (%p6158_p9) }
 0x54a   : > { %5550 = vst [vmem:[%s6254_s24 + $0x1d0] sm:$0xff] %v4071_v47  ;;  %v4271_v47 = vld [vmem:[%s6254_s24 + $0x38] sm:$0xff] (%p6158_p9)  ;;  %v4273_v20 = vld [vmem:[%s6254_s24 + $0x40] sm:$0xff] (%p6158_p9) }
 0x54b   : > { %5391 = vst [vmem:[%s6254_s24 + $0xd8] sm:$0xff] %v3698_v10  ;;  %v4275_v10 = vld [vmem:[%s6254_s24 + $0x48] sm:$0xff] (%p6158_p9) }
 0x54c   : > { %4258 = vst [vmem:[%s7917_s9] sm:$0xff] (%p6158_p9), %v4257_v61 }
 0x54d   : > { %v3861_v0 = vpop.f32.mrf.mxu2  ;;  %4262 = vst [vmem:[%s7917_s9 + $0x10] sm:$0xff] (%p6158_p9), %v4261_v4 }
 0x54e   : > { %v3490_v57 = vpop.f32.mrf.mxu0  ;;  %v3885_v16 = vadd.f32 %v5407_v45, %v3861_v0  ;;  %4264 = vst [vmem:[%s7917_s9 + $0x18] sm:$0xff] (%p6158_p9), %v4263_v13  ;;  %v4277_v45 = vld [vmem:[%s6254_s24 + $0x50] sm:$0xff] (%p6158_p9) }
 0x54f   : > { %v4048_v31 = vpop.f32.mrf.mxu3  ;;  %v3512_v62 = vadd.f32 %v3490_v57, %v3383_v36  ;;  %v3677_v39 = vpop.f32.mrf.mxu1  ;;  %4266 = vst [vmem:[%s7917_s9 + $0x20] sm:$0xff] (%p6158_p9), %v4265_v22 }
 0x550   : > { %v4072_v8 = vadd.f32 %v5487_v41, %v4048_v31  ;;  %5471 = vst [vmem:[%s6254_s24 + $0x158] sm:$0xff] %v3885_v16  ;;  %v3699_v40 = vadd.f32 %v5328_v35, %v3677_v39  ;;  %v4279_v36 = vld [vmem:[%s6254_s24 + $0x58] sm:$0xff] (%p6158_p9)  ;;  %v4289_v16 = vld [vmem:[%s6254_s24 + $0x80] sm:$0xff] (%p6158_p9)  ;;  %v4291_v31 = vld [vmem:[%s6254_s24 + $0x88] sm:$0xff] (%p6158_p9) }
 0x551   : > { %3528 = vst [vmem:[%s6254_s24 + $0x60] sm:$0xff] %v3512_v62  ;;  %v4293_v62 = vld [vmem:[%s6254_s24 + $0x90] sm:$0xff] (%p6158_p9)  ;;  %v4297_v39 = vld [vmem:[%s6254_s24 + $0xa0] sm:$0xff] (%p6158_p9) }
 0x552   : > { %5551 = vst [vmem:[%s6254_s24 + $0x1d8] sm:$0xff] %v4072_v8  ;;  %v4295_v8 = vld [vmem:[%s6254_s24 + $0x98] sm:$0xff] (%p6158_p9) }
 0x553   : > { %5392 = vst [vmem:[%s6254_s24 + $0xe0] sm:$0xff] %v3699_v40  ;;  %v4299_v40 = vld [vmem:[%s6254_s24 + $0xa8] sm:$0xff] (%p6158_p9) }
 0x554   : > { %4268 = vst [vmem:[%s7917_s9 + $0x28] sm:$0xff] (%p6158_p9), %v4267_v46 }
 0x555   : > { %v3864_v34 = vpop.f32.mrf.mxu2  ;;  %4270 = vst [vmem:[%s7917_s9 + $0x30] sm:$0xff] (%p6158_p9), %v4269_v51 }
 0x556   : > { %v3492_v29 = vpop.f32.mrf.mxu0  ;;  %v3886_v49 = vadd.f32 %v5408_v12, %v3864_v34  ;;  %4272 = vst [vmem:[%s7917_s9 + $0x38] sm:$0xff] (%p6158_p9), %v4271_v47  ;;  %v4301_v12 = vld [vmem:[%s6254_s24 + $0xb0] sm:$0xff] (%p6158_p9)  ;;  %v4307_v34 = vld [vmem:[%s6254_s24 + $0xc8] sm:$0xff] (%p6158_p9) }
 0x557   : > { %v4051_v55 = vpop.f32.mrf.mxu3  ;;  %v3513_v54 = vadd.f32 %v3492_v29, %v3384_v21  ;;  %v3679_v18 = vpop.f32.mrf.mxu1  ;;  %4274 = vst [vmem:[%s7917_s9 + $0x40] sm:$0xff] (%p6158_p9), %v4273_v20  ;;  %v4303_v21 = vld [vmem:[%s6254_s24 + $0xb8] sm:$0xff] (%p6158_p9)  ;;  %v4309_v29 = vld [vmem:[%s6254_s24 + $0xd0] sm:$0xff] (%p6158_p9) }
 0x558   : > { %v4073_v7 = vadd.f32 %v5488_v19, %v4051_v55  ;;  %5472 = vst [vmem:[%s6254_s24 + $0x160] sm:$0xff] %v3886_v49  ;;  %v3700_v5 = vadd.f32 %v5329_v24, %v3679_v18  ;;  %v4281_v41 = vld [vmem:[%s6254_s24 + $0x60] sm:$0xff] (%p6158_p9)  ;;  %v4311_v24 = vld [vmem:[%s6254_s24 + $0xd8] sm:$0xff] (%p6158_p9) }
 0x559   : > { %3529 = vst [vmem:[%s6254_s24 + $0x68] sm:$0xff] %v3513_v54  ;;  %v4305_v19 = vld [vmem:[%s6254_s24 + $0xc0] sm:$0xff] (%p6158_p9) }
 0x55a   : > { %5552 = vst [vmem:[%s6254_s24 + $0x1e0] sm:$0xff] %v4073_v7  ;;  %v4313_v49 = vld [vmem:[%s6254_s24 + $0xe0] sm:$0xff] (%p6158_p9) }
 0x55b   : > { %5393 = vst [vmem:[%s6254_s24 + $0xe8] sm:$0xff] %v3700_v5  ;;  %v4321_v18 = vld [vmem:[%s6254_s24 + $0x100] sm:$0xff] (%p6158_p9)  ;;  %v4323_v5 = vld [vmem:[%s6254_s24 + $0x108] sm:$0xff] (%p6158_p9) }
 0x55c   : > { %4276 = vst [vmem:[%s7917_s9 + $0x48] sm:$0xff] (%p6158_p9), %v4275_v10 }
 0x55d   : > { %v3866_v27 = vpop.f32.mrf.mxu2  ;;  %4278 = vst [vmem:[%s7917_s9 + $0x50] sm:$0xff] (%p6158_p9), %v4277_v45 }
 0x55e   : > { %v3495_v11 = vpop.f32.mrf.mxu0  ;;  %v3887_v28 = vadd.f32 %v5409_v44, %v3866_v27  ;;  %4280 = vst [vmem:[%s7917_s9 + $0x58] sm:$0xff] (%p6158_p9), %v4279_v36  ;;  %v4325_v44 = vld [vmem:[%s6254_s24 + $0x110] sm:$0xff] (%p6158_p9)  ;;  %v4331_v27 = vld [vmem:[%s6254_s24 + $0x128] sm:$0xff] (%p6158_p9) }
 0x55f   : > { %v4053_v38 = vpop.f32.mrf.mxu3  ;;  %v3514_v56 = vadd.f32 %v3495_v11, %v3385_v30  ;;  %v3682_v26 = vpop.f32.mrf.mxu1  ;;  %4282 = vst [vmem:[%s7917_s9 + $0x60] sm:$0xff] (%p6158_p9), %v4281_v41  ;;  %v4327_v30 = vld [vmem:[%s6254_s24 + $0x118] sm:$0xff] (%p6158_p9)  ;;  %v4333_v11 = vld [vmem:[%s6254_s24 + $0x130] sm:$0xff] (%p6158_p9) }
 0x560   : > { %v4074_v59 = vadd.f32 %v5489_v37, %v4053_v38  ;;  %5473 = vst [vmem:[%s6254_s24 + $0x168] sm:$0xff] %v3887_v28  ;;  %v3701_v32 = vadd.f32 %v5330_v9, %v3682_v26  ;;  %v4283_v0 = vld [vmem:[%s6254_s24 + $0x68] sm:$0xff] (%p6158_p9)  ;;  %v4329_v37 = vld [vmem:[%s6254_s24 + $0x120] sm:$0xff] (%p6158_p9)  ;;  %v4335_v9 = vld [vmem:[%s6254_s24 + $0x138] sm:$0xff] (%p6158_p9) }
 0x561   : > { %3530 = vst [vmem:[%s6254_s24 + $0x70] sm:$0xff] %v3514_v56  ;;  %v4337_v28 = vld [vmem:[%s6254_s24 + $0x140] sm:$0xff] (%p6158_p9)  ;;  %v4339_v38 = vld [vmem:[%s6254_s24 + $0x148] sm:$0xff] (%p6158_p9)  ;;  %v4341_v56 = vld [vmem:[%s6254_s24 + $0x150] sm:$0xff] (%p6158_p9) }
 0x562   : > { %5553 = vst [vmem:[%s6254_s24 + $0x1e8] sm:$0xff] %v4074_v59  ;;  %v4315_v55 = vld [vmem:[%s6254_s24 + $0xe8] sm:$0xff] (%p6158_p9)  ;;  %v4343_v59 = vld [vmem:[%s6254_s24 + $0x158] sm:$0xff] (%p6158_p9)  ;;  %v4345_v26 = vld [vmem:[%s6254_s24 + $0x160] sm:$0xff] (%p6158_p9) }
 0x563   : > { %5394 = vst [vmem:[%s6254_s24 + $0xf0] sm:$0xff] %v3701_v32 }
 0x564   : > { %4284 = vst [vmem:[%s7917_s9 + $0x68] sm:$0xff] (%p6158_p9), %v4283_v0 }
 0x565   : > { %v3869_v6 = vpop.f32.mrf.mxu2  ;;  %4290 = vst [vmem:[%s7917_s9 + $0x100] sm:$0xff] (%p6158_p9), %v4289_v16 }
 0x566   : > { %v3497_v23 = vpop.f32.mrf.mxu0  ;;  %v3888_v25 = vadd.f32 %v5410_v48, %v3869_v6  ;;  %4292 = vst [vmem:[%s7917_s9 + $0x108] sm:$0xff] (%p6158_p9), %v4291_v31  ;;  %v4355_v6 = vld [vmem:[%s6254_s24 + $0x188] sm:$0xff] (%p6158_p9) }
 0x567   : > { %v4056_v53 = vpop.f32.mrf.mxu3  ;;  %v3515_v50 = vadd.f32 %v3497_v23, %v3386_v14  ;;  %v3684_v52 = vpop.f32.mrf.mxu1  ;;  %4294 = vst [vmem:[%s7917_s9 + $0x110] sm:$0xff] (%p6158_p9), %v4293_v62  ;;  %v4347_v32 = vld [vmem:[%s6254_s24 + $0x168] sm:$0xff] (%p6158_p9)  ;;  %v4357_v23 = vld [vmem:[%s6254_s24 + $0x190] sm:$0xff] (%p6158_p9) }
 0x568   : > { %v4075_v60 = vadd.f32 %v5490_v17, %v4056_v53  ;;  %5474 = vst [vmem:[%s6254_s24 + $0x170] sm:$0xff] %v3888_v25  ;;  %v3702_v3 = vadd.f32 %v5331_v63, %v3684_v52  ;;  %v4285_v57 = vld [vmem:[%s6254_s24 + $0x70] sm:$0xff] (%p6158_p9)  ;;  %v4353_v17 = vld [vmem:[%s6254_s24 + $0x180] sm:$0xff] (%p6158_p9)  ;;  %v4359_v63 = vld [vmem:[%s6254_s24 + $0x198] sm:$0xff] (%p6158_p9) }
 0x569   : > { %3531 = vst [vmem:[%s6254_s24 + $0x78] sm:$0xff] %v3515_v50  ;;  %v4361_v25 = vld [vmem:[%s6254_s24 + $0x1a0] sm:$0xff] (%p6158_p9)  ;;  %v4363_v53 = vld [vmem:[%s6254_s24 + $0x1a8] sm:$0xff] (%p6158_p9)  ;;  %v4365_v50 = vld [vmem:[%s6254_s24 + $0x1b0] sm:$0xff] (%p6158_p9) }
 0x56a   : > { %5554 = vst [vmem:[%s6254_s24 + $0x1f0] sm:$0xff] %v4075_v60  ;;  %v4317_v54 = vld [vmem:[%s6254_s24 + $0xf0] sm:$0xff] (%p6158_p9)  ;;  %v4367_v60 = vld [vmem:[%s6254_s24 + $0x1b8] sm:$0xff] (%p6158_p9)  ;;  %v4369_v52 = vld [vmem:[%s6254_s24 + $0x1c0] sm:$0xff] (%p6158_p9) }
 0x56b   : > { %5395 = vst [vmem:[%s6254_s24 + $0xf8] sm:$0xff] %v3702_v3  ;;  %v4371_v3 = vld [vmem:[%s6254_s24 + $0x1c8] sm:$0xff] (%p6158_p9) }
 0x56c   : > { %4286 = vst [vmem:[%s7917_s9 + $0x70] sm:$0xff] (%p6158_p9), %v4285_v57 }
 0x56d   : > { %v3871_v15 = vpop.f32.mrf.mxu2  ;;  %4296 = vst [vmem:[%s7917_s9 + $0x118] sm:$0xff] (%p6158_p9), %v4295_v8 }
 0x56e   : > { %v3889_v33 = vadd.f32 %v5411_v1, %v3871_v15  ;;  %4099 = sbr.rel (!%p6158_p9) target bundleno = 1437 (0x59d), region = 85  ;;  %4298 = vst [vmem:[%s7917_s9 + $0x120] sm:$0xff] (%p6158_p9), %v4297_v39  ;;  %v4373_v1 = vld [vmem:[%s6254_s24 + $0x1d0] sm:$0xff] (%p6158_p9)  ;;  %v4377_v15 = vld [vmem:[%s6254_s24 + $0x1e0] sm:$0xff] (%p6158_p9) }
 0x56f   : > { %v4058_v42 = vpop.f32.mrf.mxu3  ;;  %4300 = vst [vmem:[%s7917_s9 + $0x128] sm:$0xff] (%p6158_p9), %v4299_v40  ;;  %v4349_v48 = vld [vmem:[%s6254_s24 + $0x170] sm:$0xff] (%p6158_p9) }
 0x570   : > { %v4076_v58 = vadd.f32 %v5491_v2, %v4058_v42  ;;  %5475 = vst [vmem:[%s6254_s24 + $0x178] sm:$0xff] %v3889_v33  ;;  %v4287_v35 = vld [vmem:[%s6254_s24 + $0x78] sm:$0xff] (%p6158_p9)  ;;  %v4379_v33 = vld [vmem:[%s6254_s24 + $0x1e8] sm:$0xff] (%p6158_p9) }
 0x571   : > { %4288 = vst [vmem:[%s7917_s9 + $0x78] sm:$0xff] (%p6158_p9), %v4287_v35  ;;  %v4375_v2 = vld [vmem:[%s6254_s24 + $0x1d8] sm:$0xff] (%p6158_p9)  ;;  %v4381_v42 = vld [vmem:[%s6254_s24 + $0x1f0] sm:$0xff] (%p6158_p9) }
 0x572   : > { %5555 = vst [vmem:[%s6254_s24 + $0x1f8] sm:$0xff] %v4076_v58  ;;  %v4319_v7 = vld [vmem:[%s6254_s24 + $0xf8] sm:$0xff] (%p6158_p9) }
 0x573   : > { %4302 = vst [vmem:[%s7917_s9 + $0x130] sm:$0xff] %v4301_v12 }
 0x574   : > { %4304 = vst [vmem:[%s7917_s9 + $0x138] sm:$0xff] %v4303_v21 }
 0x575   : > { %4306 = vst [vmem:[%s7917_s9 + $0x140] sm:$0xff] %v4305_v19 }
 0x576   : > { %4308 = vst [vmem:[%s7917_s9 + $0x148] sm:$0xff] %v4307_v34 }
 0x577   : > { %4310 = vst [vmem:[%s7917_s9 + $0x150] sm:$0xff] %v4309_v29  ;;  %v4351_v14 = vld [vmem:[%s6254_s24 + $0x178] sm:$0xff] }
 0x578   : > { %4312 = vst [vmem:[%s7917_s9 + $0x158] sm:$0xff] %v4311_v24 }
 0x579   : > { %4314 = vst [vmem:[%s7917_s9 + $0x160] sm:$0xff] %v4313_v49  ;;  %v4383_v58 = vld [vmem:[%s6254_s24 + $0x1f8] sm:$0xff] }
 0x57a   : > { %4316 = vst [vmem:[%s7917_s9 + $0x168] sm:$0xff] %v4315_v55 }
 0x57b   : > { %4318 = vst [vmem:[%s7917_s9 + $0x170] sm:$0xff] %v4317_v54 }
 0x57c   : > { %4320 = vst [vmem:[%s7917_s9 + $0x178] sm:$0xff] %v4319_v7 }
 0x57d   : > { %4322 = vst [vmem:[%s7917_s9 + $0x200] sm:$0xff] %v4321_v18 }
 0x57e   : > { %4324 = vst [vmem:[%s7917_s9 + $0x208] sm:$0xff] %v4323_v5 }
 0x57f   : > { %4326 = vst [vmem:[%s7917_s9 + $0x210] sm:$0xff] %v4325_v44 }
 0x580   : > { %4328 = vst [vmem:[%s7917_s9 + $0x218] sm:$0xff] %v4327_v30 }
 0x581   : > { %4330 = vst [vmem:[%s7917_s9 + $0x220] sm:$0xff] %v4329_v37 }
 0x582   : > { %4332 = vst [vmem:[%s7917_s9 + $0x228] sm:$0xff] %v4331_v27 }
 0x583   : > { %4334 = vst [vmem:[%s7917_s9 + $0x230] sm:$0xff] %v4333_v11 }
 0x584   : > { %4336 = vst [vmem:[%s7917_s9 + $0x238] sm:$0xff] %v4335_v9 }
 0x585   : > { %4338 = vst [vmem:[%s7917_s9 + $0x240] sm:$0xff] %v4337_v28 }
 0x586   : > { %4340 = vst [vmem:[%s7917_s9 + $0x248] sm:$0xff] %v4339_v38 }
 0x587   : > { %4342 = vst [vmem:[%s7917_s9 + $0x250] sm:$0xff] %v4341_v56 }
 0x588   : > { %4344 = vst [vmem:[%s7917_s9 + $0x258] sm:$0xff] %v4343_v59 }
 0x589   : > { %4346 = vst [vmem:[%s7917_s9 + $0x260] sm:$0xff] %v4345_v26 }
 0x58a   : > { %4348 = vst [vmem:[%s7917_s9 + $0x268] sm:$0xff] %v4347_v32 }
 0x58b   : > { %4350 = vst [vmem:[%s7917_s9 + $0x270] sm:$0xff] %v4349_v48 }
 0x58c   : > { %4352 = vst [vmem:[%s7917_s9 + $0x278] sm:$0xff] %v4351_v14 }
 0x58d   : > { %4354 = vst [vmem:[%s7917_s9 + $0x300] sm:$0xff] %v4353_v17 }
 0x58e   : > { %4356 = vst [vmem:[%s7917_s9 + $0x308] sm:$0xff] %v4355_v6 }
 0x58f   : > { %4358 = vst [vmem:[%s7917_s9 + $0x310] sm:$0xff] %v4357_v23 }
 0x590   : > { %4360 = vst [vmem:[%s7917_s9 + $0x318] sm:$0xff] %v4359_v63 }
 0x591   : > { %4362 = vst [vmem:[%s7917_s9 + $0x320] sm:$0xff] %v4361_v25 }
 0x592   : > { %4364 = vst [vmem:[%s7917_s9 + $0x328] sm:$0xff] %v4363_v53 }
 0x593   : > { %4366 = vst [vmem:[%s7917_s9 + $0x330] sm:$0xff] %v4365_v50 }
 0x594   : > { %4368 = vst [vmem:[%s7917_s9 + $0x338] sm:$0xff] %v4367_v60 }
 0x595   : > { %4370 = vst [vmem:[%s7917_s9 + $0x340] sm:$0xff] %v4369_v52 }
 0x596   : > { %4372 = vst [vmem:[%s7917_s9 + $0x348] sm:$0xff] %v4371_v3 }
 0x597   : > { %4374 = vst [vmem:[%s7917_s9 + $0x350] sm:$0xff] %v4373_v1 }
 0x598   : > { %4376 = vst [vmem:[%s7917_s9 + $0x358] sm:$0xff] %v4375_v2 }
 0x599   : > { %4378 = vst [vmem:[%s7917_s9 + $0x360] sm:$0xff] %v4377_v15 }
 0x59a   : > { %4380 = vst [vmem:[%s7917_s9 + $0x368] sm:$0xff] %v4379_v33 }
 0x59b   : > { %4382 = vst [vmem:[%s7917_s9 + $0x370] sm:$0xff] %v4381_v42 }
 0x59c   : > { %4384 = vst [vmem:[%s7917_s9 + $0x378] sm:$0xff] %v4383_v58 }
 0x59d PF: > { %s14_s23 = sadd.s32 1, %s6060_s23   ;;  %s8093_s15 = smov %s6032_s16 }
 0x59e   : > { %p11_p3 = scmp.ge.s32.totalorder %s14_s23, 6   ;;  %s8094_s16 = smov %s6156_s6 }
 0x59f   : > { %s8095_s17 = smov %s6040_s18  ;;  %s8096_s18 = smov %s6149_s30 }
 0x5a0   : > { %s8097_s19 = smov %s6052_s21  ;;  %s8098_s20 = smov %s6056_s22 }
 0x5a1   : > { %s8099_s21 = smov %s8102_s25  ;;  %s8100_s22 = smov %s8106_s26 }
 0x5a2   :  { %13 = sbr.rel (!%p11_p3) target bundleno = 7 (0x7), region = 175 }

</bundles_post_ra>
